<compile_context>
chip_gen: v7x
topology: tpu7x:2x2x1
jax: 0.10.0
libtpu: 0.0.40
codegen_flags: <defaults>
</compile_context>

<pallas_src>
import functools

import jax
import jax.numpy as jnp
from jax.experimental import pallas as pl
from jax.experimental.pallas import tpu as pltpu

# ----------------------------- configuration -----------------------------
B = 2            # batch
S = 8            # text sequence length
C = 3            # image channels
IMG = 16         # image size
PATCH = 8        # patch size
NPATCH = (IMG // PATCH) ** 2          # 4 patches
SEQV = NPATCH + 1                     # + CLS token = 5
CPP = C * PATCH * PATCH               # 192 im2col features per patch
HV = 32          # vision hidden size
NHV = 4          # vision heads
DHV = HV // NHV  # vision head dim
MLPV = 64        # vision MLP dim

VOCAB = 128      # LM vocab
HL = 32          # LM hidden size
NHL = 4          # LM heads
DHL = HL // NHL  # LM head dim
MLPL = 64        # LM MLP dim
PROMPT = 4       # adaption prompt length

NEG = -1e9


# ----------------------------- in-kernel helpers -----------------------------
def _ln(x, g, b, eps):
    mu = jnp.mean(x, axis=-1, keepdims=True)
    var = jnp.mean(jnp.square(x - mu), axis=-1, keepdims=True)
    return (x - mu) * jax.lax.rsqrt(var + eps) * g + b


def _rms(x, g, eps):
    ms = jnp.mean(jnp.square(x), axis=-1, keepdims=True)
    return x * jax.lax.rsqrt(ms + eps) * g


def _softmax(s):
    s = s - jnp.max(s, axis=-1, keepdims=True)
    p = jnp.exp(s)
    return p * pl.reciprocal(jnp.sum(p, axis=-1, keepdims=True), approx=True)


def _qkT(q, k):
    # (Tq, d) x (Tk, d) -> (Tq, Tk) without an explicit transpose.
    return jax.lax.dot_general(q, k, (((1,), (1,)), ((), ())),
                               preferred_element_type=jnp.float32)


# ----------------------------- fused vision kernel -----------------------------
def _vision_kernel(x_ref, wpatch_ref, poscls_ref,
                   preg_ref, preb_ref, ln1g_ref, ln1b_ref,
                   wqkv_ref, bqkv_ref, wo_ref, bo_ref,
                   ln2g_ref, ln2b_ref, fc1w_ref, fc1b_ref,
                   fc2w_ref, fc2b_ref, postg_ref, postb_ref,
                   vproj_ref, o_ref, *, eps, scale):
    # x: (SEQV, CPP); row 0 is zero (CLS slot), rows 1.. are im2col patches.
    x = x_ref[0]
    h = jnp.dot(x, wpatch_ref[...], preferred_element_type=jnp.float32) + poscls_ref[...]
    h = _ln(h, preg_ref[...], preb_ref[...], eps)

    # --- self-attention block (pre-LN) ---
    xn = _ln(h, ln1g_ref[...], ln1b_ref[...], eps)
    qkv = jnp.dot(xn, wqkv_ref[...], preferred_element_type=jnp.float32) + bqkv_ref[...]
    wo = wo_ref[...]
    acc = None
    for hh in range(NHV):
        q = qkv[:, hh * DHV:(hh + 1) * DHV]
        k = qkv[:, HV + hh * DHV:HV + (hh + 1) * DHV]
        v = qkv[:, 2 * HV + hh * DHV:2 * HV + (hh + 1) * DHV]
        p = _softmax(_qkT(q, k) * scale)
        oh = jnp.dot(p, v, preferred_element_type=jnp.float32)
        contrib = jnp.dot(oh, wo[hh * DHV:(hh + 1) * DHV, :],
                          preferred_element_type=jnp.float32)
        acc = contrib if acc is None else acc + contrib
    h = h + acc + bo_ref[...]

    # --- MLP block (quick-gelu) ---
    xn = _ln(h, ln2g_ref[...], ln2b_ref[...], eps)
    m = jnp.dot(xn, fc1w_ref[...], preferred_element_type=jnp.float32) + fc1b_ref[...]
    m = m * jax.nn.sigmoid(1.702 * m)
    m = jnp.dot(m, fc2w_ref[...], preferred_element_type=jnp.float32) + fc2b_ref[...]
    h = h + m

    # --- pooled CLS -> post-LN -> visual projection ---
    pooled = _ln(h[0:1, :], postg_ref[...], postb_ref[...], eps)
    o_ref[0] = jnp.dot(pooled, vproj_ref[...], preferred_element_type=jnp.float32)


def vision_image_features(params, pixel_values):
    """Fused CLIP vision tower + visual_projection -> image_embeds (B, 1, HL)."""
    Bv = pixel_values.shape[0]
    gh = IMG // PATCH
    # im2col (stride == kernel) with a leading zero row reserved for CLS (glue).
    x = pixel_values.reshape(Bv, C, gh, PATCH, gh, PATCH)
    x = x.transpose(0, 2, 4, 1, 3, 5).reshape(Bv, NPATCH, CPP)
    x_full = jnp.concatenate([jnp.zeros((Bv, 1, CPP), jnp.float32), x], axis=1)

    # position embedding with the CLS embedding folded into row 0 (glue).
    pos_cls = params["v_pos"].at[0].add(params["v_cls"])
    wqkv = jnp.concatenate([params["v_wq"], params["v_wk"], params["v_wv"]], axis=1)
    bqkv = jnp.concatenate([params["v_bq"], params["v_bk"], params["v_bv"]])[None, :]
    r2 = lambda v: v.reshape(1, -1)

    full2d = lambda shp: pl.BlockSpec(shp, lambda b: (0, 0))
    return pl.pallas_call(
        functools.partial(_vision_kernel, eps=1e-5, scale=1.0 / (DHV ** 0.5)),
        grid=(Bv,),
        in_specs=[
            pl.BlockSpec((1, SEQV, CPP), lambda b: (b, 0, 0)),
            full2d((CPP, HV)),            # patch weight
            full2d((SEQV, HV)),           # pos+cls
            full2d((1, HV)), full2d((1, HV)),     # pre-LN g, b
            full2d((1, HV)), full2d((1, HV)),     # ln1 g, b
            full2d((HV, 3 * HV)), full2d((1, 3 * HV)),   # qkv w, b
            full2d((HV, HV)), full2d((1, HV)),    # o-proj w, b
            full2d((1, HV)), full2d((1, HV)),     # ln2 g, b
            full2d((HV, MLPV)), full2d((1, MLPV)),       # fc1 w, b
            full2d((MLPV, HV)), full2d((1, HV)),         # fc2 w, b
            full2d((1, HV)), full2d((1, HV)),     # post-LN g, b
            full2d((HV, HL)),             # visual projection
        ],
        out_specs=pl.BlockSpec((1, 1, HL), lambda b: (b, 0, 0)),
        out_shape=jax.ShapeDtypeStruct((Bv, 1, HL), jnp.float32),
        compiler_params=pltpu.CompilerParams(dimension_semantics=("parallel",)),
    )(x_full, params["v_patch_w"], pos_cls,
      r2(params["v_pre_ln_g"]), r2(params["v_pre_ln_b"]),
      r2(params["v_ln1_g"]), r2(params["v_ln1_b"]),
      wqkv, bqkv, params["v_wo"], r2(params["v_bo"]),
      r2(params["v_ln2_g"]), r2(params["v_ln2_b"]),
      params["v_fc1_w"], r2(params["v_fc1_b"]),
      params["v_fc2_w"], r2(params["v_fc2_b"]),
      r2(params["v_post_ln_g"]), r2(params["v_post_ln_b"]),
      params["visual_projection_w"])


# ----------------------- fused AdaptionPromptV2 LM kernel -----------------------
def _lm_kernel(emb_ref, amask_ref, lab_ref,
               ln1g_ref, wqkv_ref, wo_ref, prompt_ref, gate_ref,
               ln2g_ref, wgu_ref, wdown_ref, lnfg_ref, head_ref,
               logits_ref, loss_ref, cnt_ref, *, eps, scale):
    x = emb_ref[0]                       # (T, HL)
    T = x.shape[0]

    # additive causal + padding mask, built in-kernel (no HBM mask DMA)
    row = jax.lax.broadcasted_iota(jnp.int32, (T, T), 0)
    col = jax.lax.broadcasted_iota(jnp.int32, (T, T), 1)
    causal = jnp.where(col <= row, 0.0, NEG)
    pad = jnp.where(amask_ref[0] > 0.5, 0.0, NEG)          # (1, T) over key axis
    add_mask = causal + pad                                 # (T, T)

    # --- attention block (rmsnorm fused, fused QKV, gated prompt prefix) ---
    xn = _rms(x, ln1g_ref[...], eps)
    wqkv = wqkv_ref[...]
    qkv = jnp.dot(xn, wqkv, preferred_element_type=jnp.float32)            # (T, 3*HL)
    pkv = jnp.dot(prompt_ref[...], wqkv, preferred_element_type=jnp.float32)  # (P, 3*HL)
    gate = jnp.tanh(gate_ref[...])                                          # (1, NHL)
    wo = wo_ref[...]
    acc = None
    for hh in range(NHL):
        q = qkv[:, hh * DHL:(hh + 1) * DHL]
        k = qkv[:, HL + hh * DHL:HL + (hh + 1) * DHL]
        v = qkv[:, 2 * HL + hh * DHL:2 * HL + (hh + 1) * DHL]
        kp = pkv[:, HL + hh * DHL:HL + (hh + 1) * DHL]
        vp = pkv[:, 2 * HL + hh * DHL:2 * HL + (hh + 1) * DHL]
        # main causal attention
        p = _softmax(_qkT(q, k) * scale + add_mask)
        oh = jnp.dot(p, v, preferred_element_type=jnp.float32)
        # adaption-prompt prefix attention (unmasked), gated per head
        pp = _softmax(_qkT(q, kp) * scale)
        oph = jnp.dot(pp, vp, preferred_element_type=jnp.float32)
        oh = oh + gate[:, hh:hh + 1] * oph
        contrib = jnp.dot(oh, wo[hh * DHL:(hh + 1) * DHL, :],
                          preferred_element_type=jnp.float32)
        acc = contrib if acc is None else acc + contrib
    x = x + acc

    # --- MLP block (rmsnorm fused, fused gate/up -> 128-lane output) ---
    xn = _rms(x, ln2g_ref[...], eps)
    gu = jnp.dot(xn, wgu_ref[...], preferred_element_type=jnp.float32)     # (T, 2*MLPL)
    g = gu[:, :MLPL]
    u = gu[:, MLPL:]
    m = (g * jax.nn.sigmoid(g)) * u
    x = x + jnp.dot(m, wdown_ref[...], preferred_element_type=jnp.float32)

    # --- final rmsnorm + LM head (lane-dense VOCAB=128 output) ---
    xn = _rms(x, lnfg_ref[...], eps)
    logits = jnp.dot(xn, head_ref[...], preferred_element_type=jnp.float32)  # (T, V)
    logits_ref[0] = logits

    # --- shifted cross-entropy partial sums for this batch element ---
    sl_logits = logits[:T - 1, :]                      # (T-1, V)
    sl_labels = lab_ref[0, 1:, :]                      # (T-1, 1) int32, -100 == ignore
    mx = jnp.max(sl_logits, axis=-1, keepdims=True)
    lse = jnp.log(jnp.sum(jnp.exp(sl_logits - mx), axis=-1, keepdims=True)) + mx
    cls = jax.lax.broadcasted_iota(jnp.int32, sl_logits.shape, 1)
    tgt = jnp.sum(jnp.where(cls == sl_labels, sl_logits, 0.0), axis=-1, keepdims=True)
    valid = (sl_labels != -100).astype(jnp.float32)
    loss_ref[0] = jnp.sum((lse - tgt) * valid, keepdims=True)
    cnt_ref[0] = jnp.sum(valid, keepdims=True)


def language_model_forward(params, inputs_embeds, attention_mask, labels=None):
    Bx, T, _ = inputs_embeds.shape
    amask = attention_mask.astype(jnp.float32).reshape(Bx, 1, T)
    if labels is None:
        lab = jnp.full((Bx, T, 1), -100, jnp.int32)
    else:
        lab = labels.astype(jnp.int32).reshape(Bx, T, 1)

    wqkv = jnp.concatenate([params["l_wq"], params["l_wk"], params["l_wv"]], axis=1)
    wgu = jnp.concatenate([params["l_wgate"], params["l_wup"]], axis=1)      # (HL, 128)
    r2 = lambda v: v.reshape(1, -1)

    full2d = lambda shp: pl.BlockSpec(shp, lambda b: (0, 0))
    logits, loss_sum, cnt = pl.pallas_call(
        functools.partial(_lm_kernel, eps=1e-6, scale=1.0 / (DHL ** 0.5)),
        grid=(Bx,),
        in_specs=[
            pl.BlockSpec((1, T, HL), lambda b: (b, 0, 0)),       # inputs_embeds
            pl.BlockSpec((1, 1, T), lambda b: (b, 0, 0)),        # attention mask
            pl.BlockSpec((1, T, 1), lambda b: (b, 0, 0)),        # labels
            full2d((1, HL)),                                     # ln1 gain
            full2d((HL, 3 * HL)),                                # fused qkv
            full2d((HL, HL)),                                    # o-proj
            full2d((PROMPT, HL)),                                # adaption prompt
            full2d((1, NHL)),                                    # adaption gate
            full2d((1, HL)),                                     # ln2 gain
            full2d((HL, 2 * MLPL)),                              # fused gate/up
            full2d((MLPL, HL)),                                  # down
            full2d((1, HL)),                                     # final norm gain
            full2d((HL, VOCAB)),                                 # lm head
        ],
        out_specs=[
            pl.BlockSpec((1, T, VOCAB), lambda b: (b, 0, 0)),
            pl.BlockSpec((1, 1, 1), lambda b: (b, 0, 0)),
            pl.BlockSpec((1, 1, 1), lambda b: (b, 0, 0)),
        ],
        out_shape=[
            jax.ShapeDtypeStruct((Bx, T, VOCAB), jnp.float32),
            jax.ShapeDtypeStruct((Bx, 1, 1), jnp.float32),
            jax.ShapeDtypeStruct((Bx, 1, 1), jnp.float32),
        ],
        compiler_params=pltpu.CompilerParams(dimension_semantics=("parallel",)),
    )(inputs_embeds, amask, lab,
      r2(params["l_ln1_g"]), wqkv, params["l_wo"],
      params["l_prompt"], r2(params["l_gate"]),
      r2(params["l_ln2_g"]), wgu, params["l_wdown"],
      r2(params["l_lnf_g"]), params["l_lm_head"])

    loss = None
    if labels is not None:
        loss = jnp.sum(loss_sum) / jnp.maximum(jnp.sum(cnt), 1.0)
    return logits, loss


# ----------------------------- parameter init -----------------------------
def init_params(key):
    def nrm(k, shape, std=0.02):
        return std * jax.random.normal(k, shape, jnp.float32)

    ks = iter(jax.random.split(key, 64))
    p = {}
    # vision tower
    p["v_patch_w"] = nrm(next(ks), (CPP, HV))
    p["v_cls"] = nrm(next(ks), (HV,))
    p["v_pos"] = nrm(next(ks), (SEQV, HV))
    p["v_pre_ln_g"] = jnp.ones((HV,), jnp.float32)
    p["v_pre_ln_b"] = jnp.zeros((HV,), jnp.float32)
    p["v_ln1_g"] = jnp.ones((HV,), jnp.float32)
    p["v_ln1_b"] = jnp.zeros((HV,), jnp.float32)
    for nm in ("q", "k", "v", "o"):
        p[f"v_w{nm}"] = nrm(next(ks), (HV, HV))
        p[f"v_b{nm}"] = jnp.zeros((HV,), jnp.float32)
    p["v_ln2_g"] = jnp.ones((HV,), jnp.float32)
    p["v_ln2_b"] = jnp.zeros((HV,), jnp.float32)
    p["v_fc1_w"] = nrm(next(ks), (HV, MLPV))
    p["v_fc1_b"] = jnp.zeros((MLPV,), jnp.float32)
    p["v_fc2_w"] = nrm(next(ks), (MLPV, HV))
    p["v_fc2_b"] = jnp.zeros((HV,), jnp.float32)
    p["v_post_ln_g"] = jnp.ones((HV,), jnp.float32)
    p["v_post_ln_b"] = jnp.zeros((HV,), jnp.float32)
    # visual projection: nn.Linear(HV, HL, bias=False), std = HV**-0.5
    p["visual_projection_w"] = nrm(next(ks), (HV, HL), std=HV ** (-0.5))
    # language model (llama-like, 1 layer, AdaptionPromptV2)
    p["l_embed"] = nrm(next(ks), (VOCAB, HL))
    p["l_ln1_g"] = jnp.ones((HL,), jnp.float32)
    for nm in ("q", "k", "v", "o"):
        p[f"l_w{nm}"] = nrm(next(ks), (HL, HL))
    p["l_ln2_g"] = jnp.ones((HL,), jnp.float32)
    p["l_wgate"] = nrm(next(ks), (HL, MLPL))
    p["l_wup"] = nrm(next(ks), (HL, MLPL))
    p["l_wdown"] = nrm(next(ks), (MLPL, HL))
    p["l_lnf_g"] = jnp.ones((HL,), jnp.float32)
    p["l_lm_head"] = nrm(next(ks), (HL, VOCAB))
    # adaption-prompt-v2 parameters (gate is zero-initialized, as in PEFT)
    p["l_prompt"] = nrm(next(ks), (PROMPT, HL))
    p["l_gate"] = jnp.zeros((NHL,), jnp.float32)
    return p


# ----------------------------- full module forward -----------------------------
def clip_adaption_forward(params, input_ids, pixel_values=None,
                          attention_mask=None, labels=None):
    # get_text_input_features: embedding lookup (glue gather)
    inputs_embeds = jnp.take(params["l_embed"], input_ids, axis=0)          # (B, S, HL)
    if attention_mask is None:
        attention_mask = jnp.ones_like(input_ids)

    if pixel_values is not None:
        # get_image_input_features: fused vision tower + visual_projection (B, 1, HL)
        image_embeds = vision_image_features(params, pixel_values)
        image_embeds = image_embeds.astype(inputs_embeds.dtype)
        image_attention_mask = jnp.ones(image_embeds.shape[:-1], attention_mask.dtype)
        inputs_embeds = jnp.concatenate([image_embeds, inputs_embeds], axis=1)
        attention_mask = jnp.concatenate([image_attention_mask, attention_mask], axis=1)
        if labels is not None:
            labels = jnp.concatenate(
                [(image_attention_mask * -100).astype(labels.dtype), labels], axis=1)

    # TODO(synk): train_mode freeze/unfreeze of adaption params is a training-time
    # parameter-bookkeeping step with no inference compute; not represented here.
    return language_model_forward(params, inputs_embeds, attention_mask, labels)


# ----------------------------- driver -----------------------------
if __name__ == "__main__":
    key = jax.random.PRNGKey(0)
    kp, kid, kpx = jax.random.split(key, 3)

    params = init_params(kp)
    input_ids = jax.random.randint(kid, (B, S), 0, VOCAB, dtype=jnp.int32)
    pixel_values = jax.random.normal(kpx, (B, C, IMG, IMG), jnp.float32)    # NCHW
    labels = input_ids

    fwd = jax.jit(lambda p, ids, px, lab: clip_adaption_forward(
        p, ids, pixel_values=px, attention_mask=None, labels=lab))
    logits, loss = fwd(params, input_ids, pixel_values, labels)
    jax.block_until_ready((logits, loss))

    assert logits.shape == (B, S + 1, VOCAB)
    assert bool(jnp.isfinite(loss))
    print("KERNEL_OK")
</pallas_src>

<mosaic_0001>
module attributes {stable_mosaic.version = 11 : i64} {
  func.func @_vision_kernel(%arg0: i32, %arg1: memref<1x5x192xf32, #tpu.memory_space<vmem>>, %arg2: memref<192x32xf32, #tpu.memory_space<vmem>>, %arg3: memref<5x32xf32, #tpu.memory_space<vmem>>, %arg4: memref<1x32xf32, #tpu.memory_space<vmem>>, %arg5: memref<1x32xf32, #tpu.memory_space<vmem>>, %arg6: memref<1x32xf32, #tpu.memory_space<vmem>>, %arg7: memref<1x32xf32, #tpu.memory_space<vmem>>, %arg8: memref<32x96xf32, #tpu.memory_space<vmem>>, %arg9: memref<1x96xf32, #tpu.memory_space<vmem>>, %arg10: memref<32x32xf32, #tpu.memory_space<vmem>>, %arg11: memref<1x32xf32, #tpu.memory_space<vmem>>, %arg12: memref<1x32xf32, #tpu.memory_space<vmem>>, %arg13: memref<1x32xf32, #tpu.memory_space<vmem>>, %arg14: memref<32x64xf32, #tpu.memory_space<vmem>>, %arg15: memref<1x64xf32, #tpu.memory_space<vmem>>, %arg16: memref<64x32xf32, #tpu.memory_space<vmem>>, %arg17: memref<1x32xf32, #tpu.memory_space<vmem>>, %arg18: memref<1x32xf32, #tpu.memory_space<vmem>>, %arg19: memref<1x32xf32, #tpu.memory_space<vmem>>, %arg20: memref<32x32xf32, #tpu.memory_space<vmem>>, %arg21: memref<1x1x32xf32, #tpu.memory_space<vmem>>) attributes {dimension_semantics = [#tpu.dimension_semantics<parallel>], iteration_bounds = array<i64: 2>, scalar_prefetch = 0 : i64, scratch_operands = 0 : i64, tpu.core_type = #tpu.core_type<tc>, window_params = [{transform_indices = @transform_0, window_bounds = array<i64: 1, 5, 192>}, {pipeline_mode = #tpu.pipeline_mode<synchronous>, transform_indices = @transform_1, window_bounds = array<i64: 192, 32>}, {pipeline_mode = #tpu.pipeline_mode<synchronous>, transform_indices = @transform_2, window_bounds = array<i64: 5, 32>}, {pipeline_mode = #tpu.pipeline_mode<synchronous>, transform_indices = @transform_3, window_bounds = array<i64: 1, 32>}, {pipeline_mode = #tpu.pipeline_mode<synchronous>, transform_indices = @transform_4, window_bounds = array<i64: 1, 32>}, {pipeline_mode = #tpu.pipeline_mode<synchronous>, transform_indices = @transform_5, window_bounds = array<i64: 1, 32>}, {pipeline_mode = #tpu.pipeline_mode<synchronous>, transform_indices = @transform_6, window_bounds = array<i64: 1, 32>}, {pipeline_mode = #tpu.pipeline_mode<synchronous>, transform_indices = @transform_7, window_bounds = array<i64: 32, 96>}, {pipeline_mode = #tpu.pipeline_mode<synchronous>, transform_indices = @transform_8, window_bounds = array<i64: 1, 96>}, {pipeline_mode = #tpu.pipeline_mode<synchronous>, transform_indices = @transform_9, window_bounds = array<i64: 32, 32>}, {pipeline_mode = #tpu.pipeline_mode<synchronous>, transform_indices = @transform_10, window_bounds = array<i64: 1, 32>}, {pipeline_mode = #tpu.pipeline_mode<synchronous>, transform_indices = @transform_11, window_bounds = array<i64: 1, 32>}, {pipeline_mode = #tpu.pipeline_mode<synchronous>, transform_indices = @transform_12, window_bounds = array<i64: 1, 32>}, {pipeline_mode = #tpu.pipeline_mode<synchronous>, transform_indices = @transform_13, window_bounds = array<i64: 32, 64>}, {pipeline_mode = #tpu.pipeline_mode<synchronous>, transform_indices = @transform_14, window_bounds = array<i64: 1, 64>}, {pipeline_mode = #tpu.pipeline_mode<synchronous>, transform_indices = @transform_15, window_bounds = array<i64: 64, 32>}, {pipeline_mode = #tpu.pipeline_mode<synchronous>, transform_indices = @transform_16, window_bounds = array<i64: 1, 32>}, {pipeline_mode = #tpu.pipeline_mode<synchronous>, transform_indices = @transform_17, window_bounds = array<i64: 1, 32>}, {pipeline_mode = #tpu.pipeline_mode<synchronous>, transform_indices = @transform_18, window_bounds = array<i64: 1, 32>}, {pipeline_mode = #tpu.pipeline_mode<synchronous>, transform_indices = @transform_19, window_bounds = array<i64: 32, 32>}, {transform_indices = @transform_20, window_bounds = array<i64: 1, 1, 32>}]} {
    %c0 = arith.constant 0 : index
    %c0_0 = arith.constant 0 : index
    %c0_1 = arith.constant 0 : index
    %0 = vector.load %arg1[%c0, %c0_0, %c0_1] : memref<1x5x192xf32, #tpu.memory_space<vmem>>, vector<1x5x192xf32>
    %1 = vector.shape_cast %0 : vector<1x5x192xf32> to vector<5x192xf32>
    %c0_2 = arith.constant 0 : index
    %c0_3 = arith.constant 0 : index
    %2 = vector.load %arg2[%c0_2, %c0_3] : memref<192x32xf32, #tpu.memory_space<vmem>>, vector<192x32xf32>
    %cst = arith.constant dense<0.000000e+00> : vector<5x32xf32>
    %3 = tpu.matmul %1, %2, %cst {dimension_numbers = #tpu.dot_dimension_numbers<[1], [0], [0], [1], [0, 0, 1, 1], [], []>} : vector<5x192xf32>, vector<192x32xf32>, vector<5x32xf32> -> vector<5x32xf32>
    %c0_4 = arith.constant 0 : index
    %c0_5 = arith.constant 0 : index
    %4 = vector.load %arg3[%c0_4, %c0_5] : memref<5x32xf32, #tpu.memory_space<vmem>>, vector<5x32xf32>
    %5 = arith.addf %3, %4 : vector<5x32xf32>
    %c0_6 = arith.constant 0 : index
    %c0_7 = arith.constant 0 : index
    %6 = vector.load %arg4[%c0_6, %c0_7] : memref<1x32xf32, #tpu.memory_space<vmem>>, vector<1x32xf32>
    %c0_8 = arith.constant 0 : index
    %c0_9 = arith.constant 0 : index
    %7 = vector.load %arg5[%c0_8, %c0_9] : memref<1x32xf32, #tpu.memory_space<vmem>>, vector<1x32xf32>
    %cst_10 = arith.constant dense<0.000000e+00> : vector<5xf32>
    %8 = vector.multi_reduction <add>, %5, %cst_10 [1] : vector<5x32xf32> to vector<5xf32>
    %9 = vector.shape_cast %8 : vector<5xf32> to vector<5x1xf32>
    %cst_11 = arith.constant 3.200000e+01 : f32
    %10 = vector.broadcast %cst_11 : f32 to vector<5x1xf32>
    %11 = arith.divf %9, %10 : vector<5x1xf32>
    %12 = vector.broadcast %11 : vector<5x1xf32> to vector<5x32xf32>
    %13 = arith.subf %5, %12 : vector<5x32xf32>
    %14 = arith.mulf %13, %13 : vector<5x32xf32>
    %cst_12 = arith.constant dense<0.000000e+00> : vector<5xf32>
    %15 = vector.multi_reduction <add>, %14, %cst_12 [1] : vector<5x32xf32> to vector<5xf32>
    %16 = vector.shape_cast %15 : vector<5xf32> to vector<5x1xf32>
    %cst_13 = arith.constant 3.200000e+01 : f32
    %17 = vector.broadcast %cst_13 : f32 to vector<5x1xf32>
    %18 = arith.divf %16, %17 : vector<5x1xf32>
    %19 = vector.broadcast %11 : vector<5x1xf32> to vector<5x32xf32>
    %20 = arith.subf %5, %19 : vector<5x32xf32>
    %cst_14 = arith.constant 9.99999974E-6 : f32
    %21 = vector.broadcast %cst_14 : f32 to vector<5x1xf32>
    %22 = arith.addf %18, %21 : vector<5x1xf32>
    %23 = math.rsqrt %22 : vector<5x1xf32>
    %24 = vector.broadcast %23 : vector<5x1xf32> to vector<5x32xf32>
    %25 = arith.mulf %20, %24 : vector<5x32xf32>
    %26 = vector.broadcast %6 : vector<1x32xf32> to vector<5x32xf32>
    %27 = arith.mulf %25, %26 : vector<5x32xf32>
    %28 = vector.broadcast %7 : vector<1x32xf32> to vector<5x32xf32>
    %29 = arith.addf %27, %28 : vector<5x32xf32>
    %c0_15 = arith.constant 0 : index
    %c0_16 = arith.constant 0 : index
    %30 = vector.load %arg6[%c0_15, %c0_16] : memref<1x32xf32, #tpu.memory_space<vmem>>, vector<1x32xf32>
    %c0_17 = arith.constant 0 : index
    %c0_18 = arith.constant 0 : index
    %31 = vector.load %arg7[%c0_17, %c0_18] : memref<1x32xf32, #tpu.memory_space<vmem>>, vector<1x32xf32>
    %cst_19 = arith.constant dense<0.000000e+00> : vector<5xf32>
    %32 = vector.multi_reduction <add>, %29, %cst_19 [1] : vector<5x32xf32> to vector<5xf32>
    %33 = vector.shape_cast %32 : vector<5xf32> to vector<5x1xf32>
    %cst_20 = arith.constant 3.200000e+01 : f32
    %34 = vector.broadcast %cst_20 : f32 to vector<5x1xf32>
    %35 = arith.divf %33, %34 : vector<5x1xf32>
    %36 = vector.broadcast %35 : vector<5x1xf32> to vector<5x32xf32>
    %37 = arith.subf %29, %36 : vector<5x32xf32>
    %38 = arith.mulf %37, %37 : vector<5x32xf32>
    %cst_21 = arith.constant dense<0.000000e+00> : vector<5xf32>
    %39 = vector.multi_reduction <add>, %38, %cst_21 [1] : vector<5x32xf32> to vector<5xf32>
    %40 = vector.shape_cast %39 : vector<5xf32> to vector<5x1xf32>
    %cst_22 = arith.constant 3.200000e+01 : f32
    %41 = vector.broadcast %cst_22 : f32 to vector<5x1xf32>
    %42 = arith.divf %40, %41 : vector<5x1xf32>
    %43 = vector.broadcast %35 : vector<5x1xf32> to vector<5x32xf32>
    %44 = arith.subf %29, %43 : vector<5x32xf32>
    %cst_23 = arith.constant 9.99999974E-6 : f32
    %45 = vector.broadcast %cst_23 : f32 to vector<5x1xf32>
    %46 = arith.addf %42, %45 : vector<5x1xf32>
    %47 = math.rsqrt %46 : vector<5x1xf32>
    %48 = vector.broadcast %47 : vector<5x1xf32> to vector<5x32xf32>
    %49 = arith.mulf %44, %48 : vector<5x32xf32>
    %50 = vector.broadcast %30 : vector<1x32xf32> to vector<5x32xf32>
    %51 = arith.mulf %49, %50 : vector<5x32xf32>
    %52 = vector.broadcast %31 : vector<1x32xf32> to vector<5x32xf32>
    %53 = arith.addf %51, %52 : vector<5x32xf32>
    %c0_24 = arith.constant 0 : index
    %c0_25 = arith.constant 0 : index
    %54 = vector.load %arg8[%c0_24, %c0_25] : memref<32x96xf32, #tpu.memory_space<vmem>>, vector<32x96xf32>
    %cst_26 = arith.constant dense<0.000000e+00> : vector<5x96xf32>
    %55 = tpu.matmul %53, %54, %cst_26 {dimension_numbers = #tpu.dot_dimension_numbers<[1], [0], [0], [1], [0, 0, 1, 1], [], []>} : vector<5x32xf32>, vector<32x96xf32>, vector<5x96xf32> -> vector<5x96xf32>
    %c0_27 = arith.constant 0 : index
    %c0_28 = arith.constant 0 : index
    %56 = vector.load %arg9[%c0_27, %c0_28] : memref<1x96xf32, #tpu.memory_space<vmem>>, vector<1x96xf32>
    %57 = vector.broadcast %56 : vector<1x96xf32> to vector<5x96xf32>
    %58 = arith.addf %55, %57 : vector<5x96xf32>
    %c0_29 = arith.constant 0 : index
    %c0_30 = arith.constant 0 : index
    %59 = vector.load %arg10[%c0_29, %c0_30] : memref<32x32xf32, #tpu.memory_space<vmem>>, vector<32x32xf32>
    %60 = vector.extract_strided_slice %58 {offsets = [0, 0], sizes = [5, 8], strides = [1, 1]} : vector<5x96xf32> to vector<5x8xf32>
    %61 = vector.extract_strided_slice %58 {offsets = [0, 32], sizes = [5, 8], strides = [1, 1]} : vector<5x96xf32> to vector<5x8xf32>
    %62 = vector.extract_strided_slice %58 {offsets = [0, 64], sizes = [5, 8], strides = [1, 1]} : vector<5x96xf32> to vector<5x8xf32>
    %cst_31 = arith.constant dense<0.000000e+00> : vector<5x5xf32>
    %63 = tpu.matmul %60, %61, %cst_31 {dimension_numbers = #tpu.dot_dimension_numbers<[1], [1], [0], [0], [0, 0, 1, 0], [], []>} : vector<5x8xf32>, vector<5x8xf32>, vector<5x5xf32> -> vector<5x5xf32>
    %cst_32 = arith.constant 0.353553385 : f32
    %64 = vector.broadcast %cst_32 : f32 to vector<5x5xf32>
    %65 = arith.mulf %63, %64 : vector<5x5xf32>
    %cst_33 = arith.constant dense<0xFF800000> : vector<5xf32>
    %66 = vector.multi_reduction <maximumf>, %65, %cst_33 [1] : vector<5x5xf32> to vector<5xf32>
    %67 = vector.shape_cast %66 : vector<5xf32> to vector<5x1xf32>
    %68 = vector.broadcast %67 : vector<5x1xf32> to vector<5x5xf32>
    %69 = arith.subf %65, %68 : vector<5x5xf32>
    %70 = math.exp %69 : vector<5x5xf32>
    %cst_34 = arith.constant dense<0.000000e+00> : vector<5xf32>
    %71 = vector.multi_reduction <add>, %70, %cst_34 [1] : vector<5x5xf32> to vector<5xf32>
    %72 = vector.shape_cast %71 : vector<5xf32> to vector<5x1xf32>
    %73 = tpu.reciprocal %72 {approx = true} : vector<5x1xf32> -> vector<5x1xf32>
    %74 = vector.broadcast %73 : vector<5x1xf32> to vector<5x5xf32>
    %75 = arith.mulf %70, %74 : vector<5x5xf32>
    %cst_35 = arith.constant dense<0.000000e+00> : vector<5x8xf32>
    %76 = tpu.matmul %75, %62, %cst_35 {dimension_numbers = #tpu.dot_dimension_numbers<[1], [0], [0], [1], [0, 0, 1, 1], [], []>} : vector<5x5xf32>, vector<5x8xf32>, vector<5x8xf32> -> vector<5x8xf32>
    %77 = vector.extract_strided_slice %59 {offsets = [0, 0], sizes = [8, 32], strides = [1, 1]} : vector<32x32xf32> to vector<8x32xf32>
    %cst_36 = arith.constant dense<0.000000e+00> : vector<5x32xf32>
    %78 = tpu.matmul %76, %77, %cst_36 {dimension_numbers = #tpu.dot_dimension_numbers<[1], [0], [0], [1], [0, 0, 1, 1], [], []>} : vector<5x8xf32>, vector<8x32xf32>, vector<5x32xf32> -> vector<5x32xf32>
    %79 = vector.extract_strided_slice %58 {offsets = [0, 8], sizes = [5, 8], strides = [1, 1]} : vector<5x96xf32> to vector<5x8xf32>
    %80 = vector.extract_strided_slice %58 {offsets = [0, 40], sizes = [5, 8], strides = [1, 1]} : vector<5x96xf32> to vector<5x8xf32>
    %81 = vector.extract_strided_slice %58 {offsets = [0, 72], sizes = [5, 8], strides = [1, 1]} : vector<5x96xf32> to vector<5x8xf32>
    %cst_37 = arith.constant dense<0.000000e+00> : vector<5x5xf32>
    %82 = tpu.matmul %79, %80, %cst_37 {dimension_numbers = #tpu.dot_dimension_numbers<[1], [1], [0], [0], [0, 0, 1, 0], [], []>} : vector<5x8xf32>, vector<5x8xf32>, vector<5x5xf32> -> vector<5x5xf32>
    %cst_38 = arith.constant 0.353553385 : f32
    %83 = vector.broadcast %cst_38 : f32 to vector<5x5xf32>
    %84 = arith.mulf %82, %83 : vector<5x5xf32>
    %cst_39 = arith.constant dense<0xFF800000> : vector<5xf32>
    %85 = vector.multi_reduction <maximumf>, %84, %cst_39 [1] : vector<5x5xf32> to vector<5xf32>
    %86 = vector.shape_cast %85 : vector<5xf32> to vector<5x1xf32>
    %87 = vector.broadcast %86 : vector<5x1xf32> to vector<5x5xf32>
    %88 = arith.subf %84, %87 : vector<5x5xf32>
    %89 = math.exp %88 : vector<5x5xf32>
    %cst_40 = arith.constant dense<0.000000e+00> : vector<5xf32>
    %90 = vector.multi_reduction <add>, %89, %cst_40 [1] : vector<5x5xf32> to vector<5xf32>
    %91 = vector.shape_cast %90 : vector<5xf32> to vector<5x1xf32>
    %92 = tpu.reciprocal %91 {approx = true} : vector<5x1xf32> -> vector<5x1xf32>
    %93 = vector.broadcast %92 : vector<5x1xf32> to vector<5x5xf32>
    %94 = arith.mulf %89, %93 : vector<5x5xf32>
    %cst_41 = arith.constant dense<0.000000e+00> : vector<5x8xf32>
    %95 = tpu.matmul %94, %81, %cst_41 {dimension_numbers = #tpu.dot_dimension_numbers<[1], [0], [0], [1], [0, 0, 1, 1], [], []>} : vector<5x5xf32>, vector<5x8xf32>, vector<5x8xf32> -> vector<5x8xf32>
    %96 = vector.extract_strided_slice %59 {offsets = [8, 0], sizes = [8, 32], strides = [1, 1]} : vector<32x32xf32> to vector<8x32xf32>
    %cst_42 = arith.constant dense<0.000000e+00> : vector<5x32xf32>
    %97 = tpu.matmul %95, %96, %cst_42 {dimension_numbers = #tpu.dot_dimension_numbers<[1], [0], [0], [1], [0, 0, 1, 1], [], []>} : vector<5x8xf32>, vector<8x32xf32>, vector<5x32xf32> -> vector<5x32xf32>
    %98 = arith.addf %78, %97 : vector<5x32xf32>
    %99 = vector.extract_strided_slice %58 {offsets = [0, 16], sizes = [5, 8], strides = [1, 1]} : vector<5x96xf32> to vector<5x8xf32>
    %100 = vector.extract_strided_slice %58 {offsets = [0, 48], sizes = [5, 8], strides = [1, 1]} : vector<5x96xf32> to vector<5x8xf32>
    %101 = vector.extract_strided_slice %58 {offsets = [0, 80], sizes = [5, 8], strides = [1, 1]} : vector<5x96xf32> to vector<5x8xf32>
    %cst_43 = arith.constant dense<0.000000e+00> : vector<5x5xf32>
    %102 = tpu.matmul %99, %100, %cst_43 {dimension_numbers = #tpu.dot_dimension_numbers<[1], [1], [0], [0], [0, 0, 1, 0], [], []>} : vector<5x8xf32>, vector<5x8xf32>, vector<5x5xf32> -> vector<5x5xf32>
    %cst_44 = arith.constant 0.353553385 : f32
    %103 = vector.broadcast %cst_44 : f32 to vector<5x5xf32>
    %104 = arith.mulf %102, %103 : vector<5x5xf32>
    %cst_45 = arith.constant dense<0xFF800000> : vector<5xf32>
    %105 = vector.multi_reduction <maximumf>, %104, %cst_45 [1] : vector<5x5xf32> to vector<5xf32>
    %106 = vector.shape_cast %105 : vector<5xf32> to vector<5x1xf32>
    %107 = vector.broadcast %106 : vector<5x1xf32> to vector<5x5xf32>
    %108 = arith.subf %104, %107 : vector<5x5xf32>
    %109 = math.exp %108 : vector<5x5xf32>
    %cst_46 = arith.constant dense<0.000000e+00> : vector<5xf32>
    %110 = vector.multi_reduction <add>, %109, %cst_46 [1] : vector<5x5xf32> to vector<5xf32>
    %111 = vector.shape_cast %110 : vector<5xf32> to vector<5x1xf32>
    %112 = tpu.reciprocal %111 {approx = true} : vector<5x1xf32> -> vector<5x1xf32>
    %113 = vector.broadcast %112 : vector<5x1xf32> to vector<5x5xf32>
    %114 = arith.mulf %109, %113 : vector<5x5xf32>
    %cst_47 = arith.constant dense<0.000000e+00> : vector<5x8xf32>
    %115 = tpu.matmul %114, %101, %cst_47 {dimension_numbers = #tpu.dot_dimension_numbers<[1], [0], [0], [1], [0, 0, 1, 1], [], []>} : vector<5x5xf32>, vector<5x8xf32>, vector<5x8xf32> -> vector<5x8xf32>
    %116 = vector.extract_strided_slice %59 {offsets = [16, 0], sizes = [8, 32], strides = [1, 1]} : vector<32x32xf32> to vector<8x32xf32>
    %cst_48 = arith.constant dense<0.000000e+00> : vector<5x32xf32>
    %117 = tpu.matmul %115, %116, %cst_48 {dimension_numbers = #tpu.dot_dimension_numbers<[1], [0], [0], [1], [0, 0, 1, 1], [], []>} : vector<5x8xf32>, vector<8x32xf32>, vector<5x32xf32> -> vector<5x32xf32>
    %118 = arith.addf %98, %117 : vector<5x32xf32>
    %119 = vector.extract_strided_slice %58 {offsets = [0, 24], sizes = [5, 8], strides = [1, 1]} : vector<5x96xf32> to vector<5x8xf32>
    %120 = vector.extract_strided_slice %58 {offsets = [0, 56], sizes = [5, 8], strides = [1, 1]} : vector<5x96xf32> to vector<5x8xf32>
    %121 = vector.extract_strided_slice %58 {offsets = [0, 88], sizes = [5, 8], strides = [1, 1]} : vector<5x96xf32> to vector<5x8xf32>
    %cst_49 = arith.constant dense<0.000000e+00> : vector<5x5xf32>
    %122 = tpu.matmul %119, %120, %cst_49 {dimension_numbers = #tpu.dot_dimension_numbers<[1], [1], [0], [0], [0, 0, 1, 0], [], []>} : vector<5x8xf32>, vector<5x8xf32>, vector<5x5xf32> -> vector<5x5xf32>
    %cst_50 = arith.constant 0.353553385 : f32
    %123 = vector.broadcast %cst_50 : f32 to vector<5x5xf32>
    %124 = arith.mulf %122, %123 : vector<5x5xf32>
    %cst_51 = arith.constant dense<0xFF800000> : vector<5xf32>
    %125 = vector.multi_reduction <maximumf>, %124, %cst_51 [1] : vector<5x5xf32> to vector<5xf32>
    %126 = vector.shape_cast %125 : vector<5xf32> to vector<5x1xf32>
    %127 = vector.broadcast %126 : vector<5x1xf32> to vector<5x5xf32>
    %128 = arith.subf %124, %127 : vector<5x5xf32>
    %129 = math.exp %128 : vector<5x5xf32>
    %cst_52 = arith.constant dense<0.000000e+00> : vector<5xf32>
    %130 = vector.multi_reduction <add>, %129, %cst_52 [1] : vector<5x5xf32> to vector<5xf32>
    %131 = vector.shape_cast %130 : vector<5xf32> to vector<5x1xf32>
    %132 = tpu.reciprocal %131 {approx = true} : vector<5x1xf32> -> vector<5x1xf32>
    %133 = vector.broadcast %132 : vector<5x1xf32> to vector<5x5xf32>
    %134 = arith.mulf %129, %133 : vector<5x5xf32>
    %cst_53 = arith.constant dense<0.000000e+00> : vector<5x8xf32>
    %135 = tpu.matmul %134, %121, %cst_53 {dimension_numbers = #tpu.dot_dimension_numbers<[1], [0], [0], [1], [0, 0, 1, 1], [], []>} : vector<5x5xf32>, vector<5x8xf32>, vector<5x8xf32> -> vector<5x8xf32>
    %136 = vector.extract_strided_slice %59 {offsets = [24, 0], sizes = [8, 32], strides = [1, 1]} : vector<32x32xf32> to vector<8x32xf32>
    %cst_54 = arith.constant dense<0.000000e+00> : vector<5x32xf32>
    %137 = tpu.matmul %135, %136, %cst_54 {dimension_numbers = #tpu.dot_dimension_numbers<[1], [0], [0], [1], [0, 0, 1, 1], [], []>} : vector<5x8xf32>, vector<8x32xf32>, vector<5x32xf32> -> vector<5x32xf32>
    %138 = arith.addf %118, %137 : vector<5x32xf32>
    %139 = arith.addf %29, %138 : vector<5x32xf32>
    %c0_55 = arith.constant 0 : index
    %c0_56 = arith.constant 0 : index
    %140 = vector.load %arg11[%c0_55, %c0_56] : memref<1x32xf32, #tpu.memory_space<vmem>>, vector<1x32xf32>
    %141 = vector.broadcast %140 : vector<1x32xf32> to vector<5x32xf32>
    %142 = arith.addf %139, %141 : vector<5x32xf32>
    %c0_57 = arith.constant 0 : index
    %c0_58 = arith.constant 0 : index
    %143 = vector.load %arg12[%c0_57, %c0_58] : memref<1x32xf32, #tpu.memory_space<vmem>>, vector<1x32xf32>
    %c0_59 = arith.constant 0 : index
    %c0_60 = arith.constant 0 : index
    %144 = vector.load %arg13[%c0_59, %c0_60] : memref<1x32xf32, #tpu.memory_space<vmem>>, vector<1x32xf32>
    %cst_61 = arith.constant dense<0.000000e+00> : vector<5xf32>
    %145 = vector.multi_reduction <add>, %142, %cst_61 [1] : vector<5x32xf32> to vector<5xf32>
    %146 = vector.shape_cast %145 : vector<5xf32> to vector<5x1xf32>
    %cst_62 = arith.constant 3.200000e+01 : f32
    %147 = vector.broadcast %cst_62 : f32 to vector<5x1xf32>
    %148 = arith.divf %146, %147 : vector<5x1xf32>
    %149 = vector.broadcast %148 : vector<5x1xf32> to vector<5x32xf32>
    %150 = arith.subf %142, %149 : vector<5x32xf32>
    %151 = arith.mulf %150, %150 : vector<5x32xf32>
    %cst_63 = arith.constant dense<0.000000e+00> : vector<5xf32>
    %152 = vector.multi_reduction <add>, %151, %cst_63 [1] : vector<5x32xf32> to vector<5xf32>
    %153 = vector.shape_cast %152 : vector<5xf32> to vector<5x1xf32>
    %cst_64 = arith.constant 3.200000e+01 : f32
    %154 = vector.broadcast %cst_64 : f32 to vector<5x1xf32>
    %155 = arith.divf %153, %154 : vector<5x1xf32>
    %156 = vector.broadcast %148 : vector<5x1xf32> to vector<5x32xf32>
    %157 = arith.subf %142, %156 : vector<5x32xf32>
    %cst_65 = arith.constant 9.99999974E-6 : f32
    %158 = vector.broadcast %cst_65 : f32 to vector<5x1xf32>
    %159 = arith.addf %155, %158 : vector<5x1xf32>
    %160 = math.rsqrt %159 : vector<5x1xf32>
    %161 = vector.broadcast %160 : vector<5x1xf32> to vector<5x32xf32>
    %162 = arith.mulf %157, %161 : vector<5x32xf32>
    %163 = vector.broadcast %143 : vector<1x32xf32> to vector<5x32xf32>
    %164 = arith.mulf %162, %163 : vector<5x32xf32>
    %165 = vector.broadcast %144 : vector<1x32xf32> to vector<5x32xf32>
    %166 = arith.addf %164, %165 : vector<5x32xf32>
    %c0_66 = arith.constant 0 : index
    %c0_67 = arith.constant 0 : index
    %167 = vector.load %arg14[%c0_66, %c0_67] : memref<32x64xf32, #tpu.memory_space<vmem>>, vector<32x64xf32>
    %cst_68 = arith.constant dense<0.000000e+00> : vector<5x64xf32>
    %168 = tpu.matmul %166, %167, %cst_68 {dimension_numbers = #tpu.dot_dimension_numbers<[1], [0], [0], [1], [0, 0, 1, 1], [], []>} : vector<5x32xf32>, vector<32x64xf32>, vector<5x64xf32> -> vector<5x64xf32>
    %c0_69 = arith.constant 0 : index
    %c0_70 = arith.constant 0 : index
    %169 = vector.load %arg15[%c0_69, %c0_70] : memref<1x64xf32, #tpu.memory_space<vmem>>, vector<1x64xf32>
    %170 = vector.broadcast %169 : vector<1x64xf32> to vector<5x64xf32>
    %171 = arith.addf %168, %170 : vector<5x64xf32>
    %cst_71 = arith.constant 1.702000e+00 : f32
    %172 = vector.broadcast %cst_71 : f32 to vector<5x64xf32>
    %173 = arith.mulf %172, %171 : vector<5x64xf32>
    %174 = arith.negf %173 : vector<5x64xf32>
    %175 = math.exp %174 : vector<5x64xf32>
    %cst_72 = arith.constant 1.000000e+00 : f32
    %176 = vector.broadcast %cst_72 : f32 to vector<5x64xf32>
    %177 = arith.addf %176, %175 : vector<5x64xf32>
    %178 = arith.divf %176, %177 : vector<5x64xf32>
    %179 = arith.mulf %171, %178 : vector<5x64xf32>
    %c0_73 = arith.constant 0 : index
    %c0_74 = arith.constant 0 : index
    %180 = vector.load %arg16[%c0_73, %c0_74] : memref<64x32xf32, #tpu.memory_space<vmem>>, vector<64x32xf32>
    %cst_75 = arith.constant dense<0.000000e+00> : vector<5x32xf32>
    %181 = tpu.matmul %179, %180, %cst_75 {dimension_numbers = #tpu.dot_dimension_numbers<[1], [0], [0], [1], [0, 0, 1, 1], [], []>} : vector<5x64xf32>, vector<64x32xf32>, vector<5x32xf32> -> vector<5x32xf32>
    %c0_76 = arith.constant 0 : index
    %c0_77 = arith.constant 0 : index
    %182 = vector.load %arg17[%c0_76, %c0_77] : memref<1x32xf32, #tpu.memory_space<vmem>>, vector<1x32xf32>
    %183 = vector.broadcast %182 : vector<1x32xf32> to vector<5x32xf32>
    %184 = arith.addf %181, %183 : vector<5x32xf32>
    %185 = arith.addf %142, %184 : vector<5x32xf32>
    %186 = vector.extract_strided_slice %185 {offsets = [0, 0], sizes = [1, 32], strides = [1, 1]} : vector<5x32xf32> to vector<1x32xf32>
    %c0_78 = arith.constant 0 : index
    %c0_79 = arith.constant 0 : index
    %187 = vector.load %arg18[%c0_78, %c0_79] : memref<1x32xf32, #tpu.memory_space<vmem>>, vector<1x32xf32>
    %c0_80 = arith.constant 0 : index
    %c0_81 = arith.constant 0 : index
    %188 = vector.load %arg19[%c0_80, %c0_81] : memref<1x32xf32, #tpu.memory_space<vmem>>, vector<1x32xf32>
    %cst_82 = arith.constant dense<0.000000e+00> : vector<1xf32>
    %189 = vector.multi_reduction <add>, %186, %cst_82 [1] : vector<1x32xf32> to vector<1xf32>
    %190 = vector.shape_cast %189 : vector<1xf32> to vector<1x1xf32>
    %cst_83 = arith.constant 3.200000e+01 : f32
    %191 = vector.broadcast %cst_83 : f32 to vector<1x1xf32>
    %192 = arith.divf %190, %191 : vector<1x1xf32>
    %193 = vector.broadcast %192 : vector<1x1xf32> to vector<1x32xf32>
    %194 = arith.subf %186, %193 : vector<1x32xf32>
    %195 = arith.mulf %194, %194 : vector<1x32xf32>
    %cst_84 = arith.constant dense<0.000000e+00> : vector<1xf32>
    %196 = vector.multi_reduction <add>, %195, %cst_84 [1] : vector<1x32xf32> to vector<1xf32>
    %197 = vector.shape_cast %196 : vector<1xf32> to vector<1x1xf32>
    %cst_85 = arith.constant 3.200000e+01 : f32
    %198 = vector.broadcast %cst_85 : f32 to vector<1x1xf32>
    %199 = arith.divf %197, %198 : vector<1x1xf32>
    %200 = vector.broadcast %192 : vector<1x1xf32> to vector<1x32xf32>
    %201 = arith.subf %186, %200 : vector<1x32xf32>
    %cst_86 = arith.constant 9.99999974E-6 : f32
    %202 = vector.broadcast %cst_86 : f32 to vector<1x1xf32>
    %203 = arith.addf %199, %202 : vector<1x1xf32>
    %204 = math.rsqrt %203 : vector<1x1xf32>
    %205 = vector.broadcast %204 : vector<1x1xf32> to vector<1x32xf32>
    %206 = arith.mulf %201, %205 : vector<1x32xf32>
    %207 = arith.mulf %206, %187 : vector<1x32xf32>
    %208 = arith.addf %207, %188 : vector<1x32xf32>
    %c0_87 = arith.constant 0 : index
    %c0_88 = arith.constant 0 : index
    %209 = vector.load %arg20[%c0_87, %c0_88] : memref<32x32xf32, #tpu.memory_space<vmem>>, vector<32x32xf32>
    %cst_89 = arith.constant dense<0.000000e+00> : vector<1x32xf32>
    %210 = tpu.matmul %208, %209, %cst_89 {dimension_numbers = #tpu.dot_dimension_numbers<[1], [0], [0], [1], [0, 0, 1, 1], [], []>} : vector<1x32xf32>, vector<32x32xf32>, vector<1x32xf32> -> vector<1x32xf32>
    %c0_90 = arith.constant 0 : index
    %c0_91 = arith.constant 0 : index
    %c0_92 = arith.constant 0 : index
    %211 = vector.load %arg21[%c0_90, %c0_91, %c0_92] : memref<1x1x32xf32, #tpu.memory_space<vmem>>, vector<1x1x32xf32>
    %212 = vector.shape_cast %211 : vector<1x1x32xf32> to vector<1x32xf32>
    %213 = vector.shape_cast %210 : vector<1x32xf32> to vector<1x1x32xf32>
    tpu.vector_store %arg21[%c0_90, %c0_91, %c0_92], %213 {strides = array<i32>} : memref<1x1x32xf32, #tpu.memory_space<vmem>>, vector<1x1x32xf32>,
    return
  }
  func.func @transform_0(%arg0: i32) -> (i32, i32, i32) {
    %c0_i32 = arith.constant 0 : i32
    %c0_i32_0 = arith.constant 0 : i32
    %c0_i32_1 = arith.constant 0 : i32
    return %arg0, %c0_i32, %c0_i32_0 : i32, i32, i32
  }
  func.func @transform_1(%arg0: i32) -> (i32, i32) {
    %c0_i32 = arith.constant 0 : i32
    %c0_i32_0 = arith.constant 0 : i32
    %c0_i32_1 = arith.constant 0 : i32
    return %c0_i32, %c0_i32_0 : i32, i32
  }
  func.func @transform_2(%arg0: i32) -> (i32, i32) {
    %c0_i32 = arith.constant 0 : i32
    %c0_i32_0 = arith.constant 0 : i32
    %c0_i32_1 = arith.constant 0 : i32
    return %c0_i32, %c0_i32_0 : i32, i32
  }
  func.func @transform_3(%arg0: i32) -> (i32, i32) {
    %c0_i32 = arith.constant 0 : i32
    %c0_i32_0 = arith.constant 0 : i32
    %c0_i32_1 = arith.constant 0 : i32
    return %c0_i32, %c0_i32_0 : i32, i32
  }
  func.func @transform_4(%arg0: i32) -> (i32, i32) {
    %c0_i32 = arith.constant 0 : i32
    %c0_i32_0 = arith.constant 0 : i32
    %c0_i32_1 = arith.constant 0 : i32
    return %c0_i32, %c0_i32_0 : i32, i32
  }
  func.func @transform_5(%arg0: i32) -> (i32, i32) {
    %c0_i32 = arith.constant 0 : i32
    %c0_i32_0 = arith.constant 0 : i32
    %c0_i32_1 = arith.constant 0 : i32
    return %c0_i32, %c0_i32_0 : i32, i32
  }
  func.func @transform_6(%arg0: i32) -> (i32, i32) {
    %c0_i32 = arith.constant 0 : i32
    %c0_i32_0 = arith.constant 0 : i32
    %c0_i32_1 = arith.constant 0 : i32
    return %c0_i32, %c0_i32_0 : i32, i32
  }
  func.func @transform_7(%arg0: i32) -> (i32, i32) {
    %c0_i32 = arith.constant 0 : i32
    %c0_i32_0 = arith.constant 0 : i32
    %c0_i32_1 = arith.constant 0 : i32
    return %c0_i32, %c0_i32_0 : i32, i32
  }
  func.func @transform_8(%arg0: i32) -> (i32, i32) {
    %c0_i32 = arith.constant 0 : i32
    %c0_i32_0 = arith.constant 0 : i32
    %c0_i32_1 = arith.constant 0 : i32
    return %c0_i32, %c0_i32_0 : i32, i32
  }
  func.func @transform_9(%arg0: i32) -> (i32, i32) {
    %c0_i32 = arith.constant 0 : i32
    %c0_i32_0 = arith.constant 0 : i32
    %c0_i32_1 = arith.constant 0 : i32
    return %c0_i32, %c0_i32_0 : i32, i32
  }
  func.func @transform_10(%arg0: i32) -> (i32, i32) {
    %c0_i32 = arith.constant 0 : i32
    %c0_i32_0 = arith.constant 0 : i32
    %c0_i32_1 = arith.constant 0 : i32
    return %c0_i32, %c0_i32_0 : i32, i32
  }
  func.func @transform_11(%arg0: i32) -> (i32, i32) {
    %c0_i32 = arith.constant 0 : i32
    %c0_i32_0 = arith.constant 0 : i32
    %c0_i32_1 = arith.constant 0 : i32
    return %c0_i32, %c0_i32_0 : i32, i32
  }
  func.func @transform_12(%arg0: i32) -> (i32, i32) {
    %c0_i32 = arith.constant 0 : i32
    %c0_i32_0 = arith.constant 0 : i32
    %c0_i32_1 = arith.constant 0 : i32
    return %c0_i32, %c0_i32_0 : i32, i32
  }
  func.func @transform_13(%arg0: i32) -> (i32, i32) {
    %c0_i32 = arith.constant 0 : i32
    %c0_i32_0 = arith.constant 0 : i32
    %c0_i32_1 = arith.constant 0 : i32
    return %c0_i32, %c0_i32_0 : i32, i32
  }
  func.func @transform_14(%arg0: i32) -> (i32, i32) {
    %c0_i32 = arith.constant 0 : i32
    %c0_i32_0 = arith.constant 0 : i32
    %c0_i32_1 = arith.constant 0 : i32
    return %c0_i32, %c0_i32_0 : i32, i32
  }
  func.func @transform_15(%arg0: i32) -> (i32, i32) {
    %c0_i32 = arith.constant 0 : i32
    %c0_i32_0 = arith.constant 0 : i32
    %c0_i32_1 = arith.constant 0 : i32
    return %c0_i32, %c0_i32_0 : i32, i32
  }
  func.func @transform_16(%arg0: i32) -> (i32, i32) {
    %c0_i32 = arith.constant 0 : i32
    %c0_i32_0 = arith.constant 0 : i32
    %c0_i32_1 = arith.constant 0 : i32
    return %c0_i32, %c0_i32_0 : i32, i32
  }
  func.func @transform_17(%arg0: i32) -> (i32, i32) {
    %c0_i32 = arith.constant 0 : i32
    %c0_i32_0 = arith.constant 0 : i32
    %c0_i32_1 = arith.constant 0 : i32
    return %c0_i32, %c0_i32_0 : i32, i32
  }
  func.func @transform_18(%arg0: i32) -> (i32, i32) {
    %c0_i32 = arith.constant 0 : i32
    %c0_i32_0 = arith.constant 0 : i32
    %c0_i32_1 = arith.constant 0 : i32
    return %c0_i32, %c0_i32_0 : i32, i32
  }
  func.func @transform_19(%arg0: i32) -> (i32, i32) {
    %c0_i32 = arith.constant 0 : i32
    %c0_i32_0 = arith.constant 0 : i32
    %c0_i32_1 = arith.constant 0 : i32
    return %c0_i32, %c0_i32_0 : i32, i32
  }
  func.func @transform_20(%arg0: i32) -> (i32, i32, i32) {
    %c0_i32 = arith.constant 0 : i32
    %c0_i32_0 = arith.constant 0 : i32
    %c0_i32_1 = arith.constant 0 : i32
    return %arg0, %c0_i32, %c0_i32_0 : i32, i32, i32
  }
}

module attributes {stable_mosaic.version = 11 : i64} {
  func.func @_lm_kernel(%arg0: i32, %arg1: memref<1x9x32xf32, #tpu.memory_space<vmem>>, %arg2: memref<1x1x9xf32, #tpu.memory_space<vmem>>, %arg3: memref<1x9x1xi32, #tpu.memory_space<vmem>>, %arg4: memref<1x32xf32, #tpu.memory_space<vmem>>, %arg5: memref<32x96xf32, #tpu.memory_space<vmem>>, %arg6: memref<32x32xf32, #tpu.memory_space<vmem>>, %arg7: memref<4x32xf32, #tpu.memory_space<vmem>>, %arg8: memref<1x4xf32, #tpu.memory_space<vmem>>, %arg9: memref<1x32xf32, #tpu.memory_space<vmem>>, %arg10: memref<32x128xf32, #tpu.memory_space<vmem>>, %arg11: memref<64x32xf32, #tpu.memory_space<vmem>>, %arg12: memref<1x32xf32, #tpu.memory_space<vmem>>, %arg13: memref<32x128xf32, #tpu.memory_space<vmem>>, %arg14: memref<1x9x128xf32, #tpu.memory_space<vmem>>, %arg15: memref<1x1x1xf32, #tpu.memory_space<vmem>>, %arg16: memref<1x1x1xf32, #tpu.memory_space<vmem>>) attributes {dimension_semantics = [#tpu.dimension_semantics<parallel>], iteration_bounds = array<i64: 2>, scalar_prefetch = 0 : i64, scratch_operands = 0 : i64, tpu.core_type = #tpu.core_type<tc>, window_params = [{transform_indices = @transform_0, window_bounds = array<i64: 1, 9, 32>}, {transform_indices = @transform_1, window_bounds = array<i64: 1, 1, 9>}, {transform_indices = @transform_2, window_bounds = array<i64: 1, 9, 1>}, {pipeline_mode = #tpu.pipeline_mode<synchronous>, transform_indices = @transform_3, window_bounds = array<i64: 1, 32>}, {pipeline_mode = #tpu.pipeline_mode<synchronous>, transform_indices = @transform_4, window_bounds = array<i64: 32, 96>}, {pipeline_mode = #tpu.pipeline_mode<synchronous>, transform_indices = @transform_5, window_bounds = array<i64: 32, 32>}, {pipeline_mode = #tpu.pipeline_mode<synchronous>, transform_indices = @transform_6, window_bounds = array<i64: 4, 32>}, {pipeline_mode = #tpu.pipeline_mode<synchronous>, transform_indices = @transform_7, window_bounds = array<i64: 1, 4>}, {pipeline_mode = #tpu.pipeline_mode<synchronous>, transform_indices = @transform_8, window_bounds = array<i64: 1, 32>}, {pipeline_mode = #tpu.pipeline_mode<synchronous>, transform_indices = @transform_9, window_bounds = array<i64: 32, 128>}, {pipeline_mode = #tpu.pipeline_mode<synchronous>, transform_indices = @transform_10, window_bounds = array<i64: 64, 32>}, {pipeline_mode = #tpu.pipeline_mode<synchronous>, transform_indices = @transform_11, window_bounds = array<i64: 1, 32>}, {pipeline_mode = #tpu.pipeline_mode<synchronous>, transform_indices = @transform_12, window_bounds = array<i64: 32, 128>}, {transform_indices = @transform_13, window_bounds = array<i64: 1, 9, 128>}, {transform_indices = @transform_14, window_bounds = array<i64: 1, 1, 1>}, {transform_indices = @transform_15, window_bounds = array<i64: 1, 1, 1>}]} {
    %c0 = arith.constant 0 : index
    %c0_0 = arith.constant 0 : index
    %c0_1 = arith.constant 0 : index
    %0 = vector.load %arg1[%c0, %c0_0, %c0_1] : memref<1x9x32xf32, #tpu.memory_space<vmem>>, vector<1x9x32xf32>
    %1 = vector.shape_cast %0 : vector<1x9x32xf32> to vector<9x32xf32>
    %2 = tpu.iota {dimensions = array<i32: 0>} : vector<9x9xi32>
    %3 = tpu.iota {dimensions = array<i32: 1>} : vector<9x9xi32>
    %4 = arith.cmpi sle, %3, %2 : vector<9x9xi32>
    %cst = arith.constant 0.000000e+00 : f32
    %cst_2 = arith.constant -1.000000e+09 : f32
    %5 = vector.broadcast %cst : f32 to vector<9x9xf32>
    %6 = vector.broadcast %cst_2 : f32 to vector<9x9xf32>
    %7 = arith.select %4, %5, %6 : vector<9x9xi1>, vector<9x9xf32>
    %c0_3 = arith.constant 0 : index
    %c0_4 = arith.constant 0 : index
    %c0_5 = arith.constant 0 : index
    %8 = vector.load %arg2[%c0_3, %c0_4, %c0_5] : memref<1x1x9xf32, #tpu.memory_space<vmem>>, vector<1x1x9xf32>
    %9 = vector.shape_cast %8 : vector<1x1x9xf32> to vector<1x9xf32>
    %cst_6 = arith.constant 5.000000e-01 : f32
    %10 = vector.broadcast %cst_6 : f32 to vector<1x9xf32>
    %11 = arith.cmpf ogt, %9, %10 : vector<1x9xf32>
    %cst_7 = arith.constant 0.000000e+00 : f32
    %cst_8 = arith.constant -1.000000e+09 : f32
    %12 = vector.broadcast %cst_7 : f32 to vector<1x9xf32>
    %13 = vector.broadcast %cst_8 : f32 to vector<1x9xf32>
    %14 = arith.select %11, %12, %13 : vector<1x9xi1>, vector<1x9xf32>
    %15 = vector.broadcast %14 : vector<1x9xf32> to vector<9x9xf32>
    %16 = arith.addf %7, %15 : vector<9x9xf32>
    %c0_9 = arith.constant 0 : index
    %c0_10 = arith.constant 0 : index
    %17 = vector.load %arg4[%c0_9, %c0_10] : memref<1x32xf32, #tpu.memory_space<vmem>>, vector<1x32xf32>
    %18 = arith.mulf %1, %1 : vector<9x32xf32>
    %cst_11 = arith.constant dense<0.000000e+00> : vector<9xf32>
    %19 = vector.multi_reduction <add>, %18, %cst_11 [1] : vector<9x32xf32> to vector<9xf32>
    %20 = vector.shape_cast %19 : vector<9xf32> to vector<9x1xf32>
    %cst_12 = arith.constant 3.200000e+01 : f32
    %21 = vector.broadcast %cst_12 : f32 to vector<9x1xf32>
    %22 = arith.divf %20, %21 : vector<9x1xf32>
    %cst_13 = arith.constant 9.99999997E-7 : f32
    %23 = vector.broadcast %cst_13 : f32 to vector<9x1xf32>
    %24 = arith.addf %22, %23 : vector<9x1xf32>
    %25 = math.rsqrt %24 : vector<9x1xf32>
    %26 = vector.broadcast %25 : vector<9x1xf32> to vector<9x32xf32>
    %27 = arith.mulf %1, %26 : vector<9x32xf32>
    %28 = vector.broadcast %17 : vector<1x32xf32> to vector<9x32xf32>
    %29 = arith.mulf %27, %28 : vector<9x32xf32>
    %c0_14 = arith.constant 0 : index
    %c0_15 = arith.constant 0 : index
    %30 = vector.load %arg5[%c0_14, %c0_15] : memref<32x96xf32, #tpu.memory_space<vmem>>, vector<32x96xf32>
    %cst_16 = arith.constant dense<0.000000e+00> : vector<9x96xf32>
    %31 = tpu.matmul %29, %30, %cst_16 {dimension_numbers = #tpu.dot_dimension_numbers<[1], [0], [0], [1], [0, 0, 1, 1], [], []>} : vector<9x32xf32>, vector<32x96xf32>, vector<9x96xf32> -> vector<9x96xf32>
    %c0_17 = arith.constant 0 : index
    %c0_18 = arith.constant 0 : index
    %32 = vector.load %arg7[%c0_17, %c0_18] : memref<4x32xf32, #tpu.memory_space<vmem>>, vector<4x32xf32>
    %cst_19 = arith.constant dense<0.000000e+00> : vector<4x96xf32>
    %33 = tpu.matmul %32, %30, %cst_19 {dimension_numbers = #tpu.dot_dimension_numbers<[1], [0], [0], [1], [0, 0, 1, 1], [], []>} : vector<4x32xf32>, vector<32x96xf32>, vector<4x96xf32> -> vector<4x96xf32>
    %c0_20 = arith.constant 0 : index
    %c0_21 = arith.constant 0 : index
    %34 = vector.load %arg8[%c0_20, %c0_21] : memref<1x4xf32, #tpu.memory_space<vmem>>, vector<1x4xf32>
    %35 = math.tanh %34 : vector<1x4xf32>
    %c0_22 = arith.constant 0 : index
    %c0_23 = arith.constant 0 : index
    %36 = vector.load %arg6[%c0_22, %c0_23] : memref<32x32xf32, #tpu.memory_space<vmem>>, vector<32x32xf32>
    %37 = vector.extract_strided_slice %31 {offsets = [0, 0], sizes = [9, 8], strides = [1, 1]} : vector<9x96xf32> to vector<9x8xf32>
    %38 = vector.extract_strided_slice %31 {offsets = [0, 32], sizes = [9, 8], strides = [1, 1]} : vector<9x96xf32> to vector<9x8xf32>
    %39 = vector.extract_strided_slice %31 {offsets = [0, 64], sizes = [9, 8], strides = [1, 1]} : vector<9x96xf32> to vector<9x8xf32>
    %40 = vector.extract_strided_slice %33 {offsets = [0, 32], sizes = [4, 8], strides = [1, 1]} : vector<4x96xf32> to vector<4x8xf32>
    %41 = vector.extract_strided_slice %33 {offsets = [0, 64], sizes = [4, 8], strides = [1, 1]} : vector<4x96xf32> to vector<4x8xf32>
    %cst_24 = arith.constant dense<0.000000e+00> : vector<9x9xf32>
    %42 = tpu.matmul %37, %38, %cst_24 {dimension_numbers = #tpu.dot_dimension_numbers<[1], [1], [0], [0], [0, 0, 1, 0], [], []>} : vector<9x8xf32>, vector<9x8xf32>, vector<9x9xf32> -> vector<9x9xf32>
    %cst_25 = arith.constant 0.353553385 : f32
    %43 = vector.broadcast %cst_25 : f32 to vector<9x9xf32>
    %44 = arith.mulf %42, %43 : vector<9x9xf32>
    %45 = arith.addf %44, %16 : vector<9x9xf32>
    %cst_26 = arith.constant dense<0xFF800000> : vector<9xf32>
    %46 = vector.multi_reduction <maximumf>, %45, %cst_26 [1] : vector<9x9xf32> to vector<9xf32>
    %47 = vector.shape_cast %46 : vector<9xf32> to vector<9x1xf32>
    %48 = vector.broadcast %47 : vector<9x1xf32> to vector<9x9xf32>
    %49 = arith.subf %45, %48 : vector<9x9xf32>
    %50 = math.exp %49 : vector<9x9xf32>
    %cst_27 = arith.constant dense<0.000000e+00> : vector<9xf32>
    %51 = vector.multi_reduction <add>, %50, %cst_27 [1] : vector<9x9xf32> to vector<9xf32>
    %52 = vector.shape_cast %51 : vector<9xf32> to vector<9x1xf32>
    %53 = tpu.reciprocal %52 {approx = true} : vector<9x1xf32> -> vector<9x1xf32>
    %54 = vector.broadcast %53 : vector<9x1xf32> to vector<9x9xf32>
    %55 = arith.mulf %50, %54 : vector<9x9xf32>
    %cst_28 = arith.constant dense<0.000000e+00> : vector<9x8xf32>
    %56 = tpu.matmul %55, %39, %cst_28 {dimension_numbers = #tpu.dot_dimension_numbers<[1], [0], [0], [1], [0, 0, 1, 1], [], []>} : vector<9x9xf32>, vector<9x8xf32>, vector<9x8xf32> -> vector<9x8xf32>
    %cst_29 = arith.constant dense<0.000000e+00> : vector<9x4xf32>
    %57 = tpu.matmul %37, %40, %cst_29 {dimension_numbers = #tpu.dot_dimension_numbers<[1], [1], [0], [0], [0, 0, 1, 0], [], []>} : vector<9x8xf32>, vector<4x8xf32>, vector<9x4xf32> -> vector<9x4xf32>
    %cst_30 = arith.constant 0.353553385 : f32
    %58 = vector.broadcast %cst_30 : f32 to vector<9x4xf32>
    %59 = arith.mulf %57, %58 : vector<9x4xf32>
    %cst_31 = arith.constant dense<0xFF800000> : vector<9xf32>
    %60 = vector.multi_reduction <maximumf>, %59, %cst_31 [1] : vector<9x4xf32> to vector<9xf32>
    %61 = vector.shape_cast %60 : vector<9xf32> to vector<9x1xf32>
    %62 = vector.broadcast %61 : vector<9x1xf32> to vector<9x4xf32>
    %63 = arith.subf %59, %62 : vector<9x4xf32>
    %64 = math.exp %63 : vector<9x4xf32>
    %cst_32 = arith.constant dense<0.000000e+00> : vector<9xf32>
    %65 = vector.multi_reduction <add>, %64, %cst_32 [1] : vector<9x4xf32> to vector<9xf32>
    %66 = vector.shape_cast %65 : vector<9xf32> to vector<9x1xf32>
    %67 = tpu.reciprocal %66 {approx = true} : vector<9x1xf32> -> vector<9x1xf32>
    %68 = vector.broadcast %67 : vector<9x1xf32> to vector<9x4xf32>
    %69 = arith.mulf %64, %68 : vector<9x4xf32>
    %cst_33 = arith.constant dense<0.000000e+00> : vector<9x8xf32>
    %70 = tpu.matmul %69, %41, %cst_33 {dimension_numbers = #tpu.dot_dimension_numbers<[1], [0], [0], [1], [0, 0, 1, 1], [], []>} : vector<9x4xf32>, vector<4x8xf32>, vector<9x8xf32> -> vector<9x8xf32>
    %71 = vector.extract_strided_slice %35 {offsets = [0, 0], sizes = [1, 1], strides = [1, 1]} : vector<1x4xf32> to vector<1x1xf32>
    %72 = vector.broadcast %71 : vector<1x1xf32> to vector<9x8xf32>
    %73 = arith.mulf %72, %70 : vector<9x8xf32>
    %74 = arith.addf %56, %73 : vector<9x8xf32>
    %75 = vector.extract_strided_slice %36 {offsets = [0, 0], sizes = [8, 32], strides = [1, 1]} : vector<32x32xf32> to vector<8x32xf32>
    %cst_34 = arith.constant dense<0.000000e+00> : vector<9x32xf32>
    %76 = tpu.matmul %74, %75, %cst_34 {dimension_numbers = #tpu.dot_dimension_numbers<[1], [0], [0], [1], [0, 0, 1, 1], [], []>} : vector<9x8xf32>, vector<8x32xf32>, vector<9x32xf32> -> vector<9x32xf32>
    %77 = vector.extract_strided_slice %31 {offsets = [0, 8], sizes = [9, 8], strides = [1, 1]} : vector<9x96xf32> to vector<9x8xf32>
    %78 = vector.extract_strided_slice %31 {offsets = [0, 40], sizes = [9, 8], strides = [1, 1]} : vector<9x96xf32> to vector<9x8xf32>
    %79 = vector.extract_strided_slice %31 {offsets = [0, 72], sizes = [9, 8], strides = [1, 1]} : vector<9x96xf32> to vector<9x8xf32>
    %80 = vector.extract_strided_slice %33 {offsets = [0, 40], sizes = [4, 8], strides = [1, 1]} : vector<4x96xf32> to vector<4x8xf32>
    %81 = vector.extract_strided_slice %33 {offsets = [0, 72], sizes = [4, 8], strides = [1, 1]} : vector<4x96xf32> to vector<4x8xf32>
    %cst_35 = arith.constant dense<0.000000e+00> : vector<9x9xf32>
    %82 = tpu.matmul %77, %78, %cst_35 {dimension_numbers = #tpu.dot_dimension_numbers<[1], [1], [0], [0], [0, 0, 1, 0], [], []>} : vector<9x8xf32>, vector<9x8xf32>, vector<9x9xf32> -> vector<9x9xf32>
    %cst_36 = arith.constant 0.353553385 : f32
    %83 = vector.broadcast %cst_36 : f32 to vector<9x9xf32>
    %84 = arith.mulf %82, %83 : vector<9x9xf32>
    %85 = arith.addf %84, %16 : vector<9x9xf32>
    %cst_37 = arith.constant dense<0xFF800000> : vector<9xf32>
    %86 = vector.multi_reduction <maximumf>, %85, %cst_37 [1] : vector<9x9xf32> to vector<9xf32>
    %87 = vector.shape_cast %86 : vector<9xf32> to vector<9x1xf32>
    %88 = vector.broadcast %87 : vector<9x1xf32> to vector<9x9xf32>
    %89 = arith.subf %85, %88 : vector<9x9xf32>
    %90 = math.exp %89 : vector<9x9xf32>
    %cst_38 = arith.constant dense<0.000000e+00> : vector<9xf32>
    %91 = vector.multi_reduction <add>, %90, %cst_38 [1] : vector<9x9xf32> to vector<9xf32>
    %92 = vector.shape_cast %91 : vector<9xf32> to vector<9x1xf32>
    %93 = tpu.reciprocal %92 {approx = true} : vector<9x1xf32> -> vector<9x1xf32>
    %94 = vector.broadcast %93 : vector<9x1xf32> to vector<9x9xf32>
    %95 = arith.mulf %90, %94 : vector<9x9xf32>
    %cst_39 = arith.constant dense<0.000000e+00> : vector<9x8xf32>
    %96 = tpu.matmul %95, %79, %cst_39 {dimension_numbers = #tpu.dot_dimension_numbers<[1], [0], [0], [1], [0, 0, 1, 1], [], []>} : vector<9x9xf32>, vector<9x8xf32>, vector<9x8xf32> -> vector<9x8xf32>
    %cst_40 = arith.constant dense<0.000000e+00> : vector<9x4xf32>
    %97 = tpu.matmul %77, %80, %cst_40 {dimension_numbers = #tpu.dot_dimension_numbers<[1], [1], [0], [0], [0, 0, 1, 0], [], []>} : vector<9x8xf32>, vector<4x8xf32>, vector<9x4xf32> -> vector<9x4xf32>
    %cst_41 = arith.constant 0.353553385 : f32
    %98 = vector.broadcast %cst_41 : f32 to vector<9x4xf32>
    %99 = arith.mulf %97, %98 : vector<9x4xf32>
    %cst_42 = arith.constant dense<0xFF800000> : vector<9xf32>
    %100 = vector.multi_reduction <maximumf>, %99, %cst_42 [1] : vector<9x4xf32> to vector<9xf32>
    %101 = vector.shape_cast %100 : vector<9xf32> to vector<9x1xf32>
    %102 = vector.broadcast %101 : vector<9x1xf32> to vector<9x4xf32>
    %103 = arith.subf %99, %102 : vector<9x4xf32>
    %104 = math.exp %103 : vector<9x4xf32>
    %cst_43 = arith.constant dense<0.000000e+00> : vector<9xf32>
    %105 = vector.multi_reduction <add>, %104, %cst_43 [1] : vector<9x4xf32> to vector<9xf32>
    %106 = vector.shape_cast %105 : vector<9xf32> to vector<9x1xf32>
    %107 = tpu.reciprocal %106 {approx = true} : vector<9x1xf32> -> vector<9x1xf32>
    %108 = vector.broadcast %107 : vector<9x1xf32> to vector<9x4xf32>
    %109 = arith.mulf %104, %108 : vector<9x4xf32>
    %cst_44 = arith.constant dense<0.000000e+00> : vector<9x8xf32>
    %110 = tpu.matmul %109, %81, %cst_44 {dimension_numbers = #tpu.dot_dimension_numbers<[1], [0], [0], [1], [0, 0, 1, 1], [], []>} : vector<9x4xf32>, vector<4x8xf32>, vector<9x8xf32> -> vector<9x8xf32>
    %111 = vector.extract_strided_slice %35 {offsets = [0, 1], sizes = [1, 1], strides = [1, 1]} : vector<1x4xf32> to vector<1x1xf32>
    %112 = vector.broadcast %111 : vector<1x1xf32> to vector<9x8xf32>
    %113 = arith.mulf %112, %110 : vector<9x8xf32>
    %114 = arith.addf %96, %113 : vector<9x8xf32>
    %115 = vector.extract_strided_slice %36 {offsets = [8, 0], sizes = [8, 32], strides = [1, 1]} : vector<32x32xf32> to vector<8x32xf32>
    %cst_45 = arith.constant dense<0.000000e+00> : vector<9x32xf32>
    %116 = tpu.matmul %114, %115, %cst_45 {dimension_numbers = #tpu.dot_dimension_numbers<[1], [0], [0], [1], [0, 0, 1, 1], [], []>} : vector<9x8xf32>, vector<8x32xf32>, vector<9x32xf32> -> vector<9x32xf32>
    %117 = arith.addf %76, %116 : vector<9x32xf32>
    %118 = vector.extract_strided_slice %31 {offsets = [0, 16], sizes = [9, 8], strides = [1, 1]} : vector<9x96xf32> to vector<9x8xf32>
    %119 = vector.extract_strided_slice %31 {offsets = [0, 48], sizes = [9, 8], strides = [1, 1]} : vector<9x96xf32> to vector<9x8xf32>
    %120 = vector.extract_strided_slice %31 {offsets = [0, 80], sizes = [9, 8], strides = [1, 1]} : vector<9x96xf32> to vector<9x8xf32>
    %121 = vector.extract_strided_slice %33 {offsets = [0, 48], sizes = [4, 8], strides = [1, 1]} : vector<4x96xf32> to vector<4x8xf32>
    %122 = vector.extract_strided_slice %33 {offsets = [0, 80], sizes = [4, 8], strides = [1, 1]} : vector<4x96xf32> to vector<4x8xf32>
    %cst_46 = arith.constant dense<0.000000e+00> : vector<9x9xf32>
    %123 = tpu.matmul %118, %119, %cst_46 {dimension_numbers = #tpu.dot_dimension_numbers<[1], [1], [0], [0], [0, 0, 1, 0], [], []>} : vector<9x8xf32>, vector<9x8xf32>, vector<9x9xf32> -> vector<9x9xf32>
    %cst_47 = arith.constant 0.353553385 : f32
    %124 = vector.broadcast %cst_47 : f32 to vector<9x9xf32>
    %125 = arith.mulf %123, %124 : vector<9x9xf32>
    %126 = arith.addf %125, %16 : vector<9x9xf32>
    %cst_48 = arith.constant dense<0xFF800000> : vector<9xf32>
    %127 = vector.multi_reduction <maximumf>, %126, %cst_48 [1] : vector<9x9xf32> to vector<9xf32>
    %128 = vector.shape_cast %127 : vector<9xf32> to vector<9x1xf32>
    %129 = vector.broadcast %128 : vector<9x1xf32> to vector<9x9xf32>
    %130 = arith.subf %126, %129 : vector<9x9xf32>
    %131 = math.exp %130 : vector<9x9xf32>
    %cst_49 = arith.constant dense<0.000000e+00> : vector<9xf32>
    %132 = vector.multi_reduction <add>, %131, %cst_49 [1] : vector<9x9xf32> to vector<9xf32>
    %133 = vector.shape_cast %132 : vector<9xf32> to vector<9x1xf32>
    %134 = tpu.reciprocal %133 {approx = true} : vector<9x1xf32> -> vector<9x1xf32>
    %135 = vector.broadcast %134 : vector<9x1xf32> to vector<9x9xf32>
    %136 = arith.mulf %131, %135 : vector<9x9xf32>
    %cst_50 = arith.constant dense<0.000000e+00> : vector<9x8xf32>
    %137 = tpu.matmul %136, %120, %cst_50 {dimension_numbers = #tpu.dot_dimension_numbers<[1], [0], [0], [1], [0, 0, 1, 1], [], []>} : vector<9x9xf32>, vector<9x8xf32>, vector<9x8xf32> -> vector<9x8xf32>
    %cst_51 = arith.constant dense<0.000000e+00> : vector<9x4xf32>
    %138 = tpu.matmul %118, %121, %cst_51 {dimension_numbers = #tpu.dot_dimension_numbers<[1], [1], [0], [0], [0, 0, 1, 0], [], []>} : vector<9x8xf32>, vector<4x8xf32>, vector<9x4xf32> -> vector<9x4xf32>
    %cst_52 = arith.constant 0.353553385 : f32
    %139 = vector.broadcast %cst_52 : f32 to vector<9x4xf32>
    %140 = arith.mulf %138, %139 : vector<9x4xf32>
    %cst_53 = arith.constant dense<0xFF800000> : vector<9xf32>
    %141 = vector.multi_reduction <maximumf>, %140, %cst_53 [1] : vector<9x4xf32> to vector<9xf32>
    %142 = vector.shape_cast %141 : vector<9xf32> to vector<9x1xf32>
    %143 = vector.broadcast %142 : vector<9x1xf32> to vector<9x4xf32>
    %144 = arith.subf %140, %143 : vector<9x4xf32>
    %145 = math.exp %144 : vector<9x4xf32>
    %cst_54 = arith.constant dense<0.000000e+00> : vector<9xf32>
    %146 = vector.multi_reduction <add>, %145, %cst_54 [1] : vector<9x4xf32> to vector<9xf32>
    %147 = vector.shape_cast %146 : vector<9xf32> to vector<9x1xf32>
    %148 = tpu.reciprocal %147 {approx = true} : vector<9x1xf32> -> vector<9x1xf32>
    %149 = vector.broadcast %148 : vector<9x1xf32> to vector<9x4xf32>
    %150 = arith.mulf %145, %149 : vector<9x4xf32>
    %cst_55 = arith.constant dense<0.000000e+00> : vector<9x8xf32>
    %151 = tpu.matmul %150, %122, %cst_55 {dimension_numbers = #tpu.dot_dimension_numbers<[1], [0], [0], [1], [0, 0, 1, 1], [], []>} : vector<9x4xf32>, vector<4x8xf32>, vector<9x8xf32> -> vector<9x8xf32>
    %152 = vector.extract_strided_slice %35 {offsets = [0, 2], sizes = [1, 1], strides = [1, 1]} : vector<1x4xf32> to vector<1x1xf32>
    %153 = vector.broadcast %152 : vector<1x1xf32> to vector<9x8xf32>
    %154 = arith.mulf %153, %151 : vector<9x8xf32>
    %155 = arith.addf %137, %154 : vector<9x8xf32>
    %156 = vector.extract_strided_slice %36 {offsets = [16, 0], sizes = [8, 32], strides = [1, 1]} : vector<32x32xf32> to vector<8x32xf32>
    %cst_56 = arith.constant dense<0.000000e+00> : vector<9x32xf32>
    %157 = tpu.matmul %155, %156, %cst_56 {dimension_numbers = #tpu.dot_dimension_numbers<[1], [0], [0], [1], [0, 0, 1, 1], [], []>} : vector<9x8xf32>, vector<8x32xf32>, vector<9x32xf32> -> vector<9x32xf32>
    %158 = arith.addf %117, %157 : vector<9x32xf32>
    %159 = vector.extract_strided_slice %31 {offsets = [0, 24], sizes = [9, 8], strides = [1, 1]} : vector<9x96xf32> to vector<9x8xf32>
    %160 = vector.extract_strided_slice %31 {offsets = [0, 56], sizes = [9, 8], strides = [1, 1]} : vector<9x96xf32> to vector<9x8xf32>
    %161 = vector.extract_strided_slice %31 {offsets = [0, 88], sizes = [9, 8], strides = [1, 1]} : vector<9x96xf32> to vector<9x8xf32>
    %162 = vector.extract_strided_slice %33 {offsets = [0, 56], sizes = [4, 8], strides = [1, 1]} : vector<4x96xf32> to vector<4x8xf32>
    %163 = vector.extract_strided_slice %33 {offsets = [0, 88], sizes = [4, 8], strides = [1, 1]} : vector<4x96xf32> to vector<4x8xf32>
    %cst_57 = arith.constant dense<0.000000e+00> : vector<9x9xf32>
    %164 = tpu.matmul %159, %160, %cst_57 {dimension_numbers = #tpu.dot_dimension_numbers<[1], [1], [0], [0], [0, 0, 1, 0], [], []>} : vector<9x8xf32>, vector<9x8xf32>, vector<9x9xf32> -> vector<9x9xf32>
    %cst_58 = arith.constant 0.353553385 : f32
    %165 = vector.broadcast %cst_58 : f32 to vector<9x9xf32>
    %166 = arith.mulf %164, %165 : vector<9x9xf32>
    %167 = arith.addf %166, %16 : vector<9x9xf32>
    %cst_59 = arith.constant dense<0xFF800000> : vector<9xf32>
    %168 = vector.multi_reduction <maximumf>, %167, %cst_59 [1] : vector<9x9xf32> to vector<9xf32>
    %169 = vector.shape_cast %168 : vector<9xf32> to vector<9x1xf32>
    %170 = vector.broadcast %169 : vector<9x1xf32> to vector<9x9xf32>
    %171 = arith.subf %167, %170 : vector<9x9xf32>
    %172 = math.exp %171 : vector<9x9xf32>
    %cst_60 = arith.constant dense<0.000000e+00> : vector<9xf32>
    %173 = vector.multi_reduction <add>, %172, %cst_60 [1] : vector<9x9xf32> to vector<9xf32>
    %174 = vector.shape_cast %173 : vector<9xf32> to vector<9x1xf32>
    %175 = tpu.reciprocal %174 {approx = true} : vector<9x1xf32> -> vector<9x1xf32>
    %176 = vector.broadcast %175 : vector<9x1xf32> to vector<9x9xf32>
    %177 = arith.mulf %172, %176 : vector<9x9xf32>
    %cst_61 = arith.constant dense<0.000000e+00> : vector<9x8xf32>
    %178 = tpu.matmul %177, %161, %cst_61 {dimension_numbers = #tpu.dot_dimension_numbers<[1], [0], [0], [1], [0, 0, 1, 1], [], []>} : vector<9x9xf32>, vector<9x8xf32>, vector<9x8xf32> -> vector<9x8xf32>
    %cst_62 = arith.constant dense<0.000000e+00> : vector<9x4xf32>
    %179 = tpu.matmul %159, %162, %cst_62 {dimension_numbers = #tpu.dot_dimension_numbers<[1], [1], [0], [0], [0, 0, 1, 0], [], []>} : vector<9x8xf32>, vector<4x8xf32>, vector<9x4xf32> -> vector<9x4xf32>
    %cst_63 = arith.constant 0.353553385 : f32
    %180 = vector.broadcast %cst_63 : f32 to vector<9x4xf32>
    %181 = arith.mulf %179, %180 : vector<9x4xf32>
    %cst_64 = arith.constant dense<0xFF800000> : vector<9xf32>
    %182 = vector.multi_reduction <maximumf>, %181, %cst_64 [1] : vector<9x4xf32> to vector<9xf32>
    %183 = vector.shape_cast %182 : vector<9xf32> to vector<9x1xf32>
    %184 = vector.broadcast %183 : vector<9x1xf32> to vector<9x4xf32>
    %185 = arith.subf %181, %184 : vector<9x4xf32>
    %186 = math.exp %185 : vector<9x4xf32>
    %cst_65 = arith.constant dense<0.000000e+00> : vector<9xf32>
    %187 = vector.multi_reduction <add>, %186, %cst_65 [1] : vector<9x4xf32> to vector<9xf32>
    %188 = vector.shape_cast %187 : vector<9xf32> to vector<9x1xf32>
    %189 = tpu.reciprocal %188 {approx = true} : vector<9x1xf32> -> vector<9x1xf32>
    %190 = vector.broadcast %189 : vector<9x1xf32> to vector<9x4xf32>
    %191 = arith.mulf %186, %190 : vector<9x4xf32>
    %cst_66 = arith.constant dense<0.000000e+00> : vector<9x8xf32>
    %192 = tpu.matmul %191, %163, %cst_66 {dimension_numbers = #tpu.dot_dimension_numbers<[1], [0], [0], [1], [0, 0, 1, 1], [], []>} : vector<9x4xf32>, vector<4x8xf32>, vector<9x8xf32> -> vector<9x8xf32>
    %193 = vector.extract_strided_slice %35 {offsets = [0, 3], sizes = [1, 1], strides = [1, 1]} : vector<1x4xf32> to vector<1x1xf32>
    %194 = vector.broadcast %193 : vector<1x1xf32> to vector<9x8xf32>
    %195 = arith.mulf %194, %192 : vector<9x8xf32>
    %196 = arith.addf %178, %195 : vector<9x8xf32>
    %197 = vector.extract_strided_slice %36 {offsets = [24, 0], sizes = [8, 32], strides = [1, 1]} : vector<32x32xf32> to vector<8x32xf32>
    %cst_67 = arith.constant dense<0.000000e+00> : vector<9x32xf32>
    %198 = tpu.matmul %196, %197, %cst_67 {dimension_numbers = #tpu.dot_dimension_numbers<[1], [0], [0], [1], [0, 0, 1, 1], [], []>} : vector<9x8xf32>, vector<8x32xf32>, vector<9x32xf32> -> vector<9x32xf32>
    %199 = arith.addf %158, %198 : vector<9x32xf32>
    %200 = arith.addf %1, %199 : vector<9x32xf32>
    %c0_68 = arith.constant 0 : index
    %c0_69 = arith.constant 0 : index
    %201 = vector.load %arg9[%c0_68, %c0_69] : memref<1x32xf32, #tpu.memory_space<vmem>>, vector<1x32xf32>
    %202 = arith.mulf %200, %200 : vector<9x32xf32>
    %cst_70 = arith.constant dense<0.000000e+00> : vector<9xf32>
    %203 = vector.multi_reduction <add>, %202, %cst_70 [1] : vector<9x32xf32> to vector<9xf32>
    %204 = vector.shape_cast %203 : vector<9xf32> to vector<9x1xf32>
    %cst_71 = arith.constant 3.200000e+01 : f32
    %205 = vector.broadcast %cst_71 : f32 to vector<9x1xf32>
    %206 = arith.divf %204, %205 : vector<9x1xf32>
    %cst_72 = arith.constant 9.99999997E-7 : f32
    %207 = vector.broadcast %cst_72 : f32 to vector<9x1xf32>
    %208 = arith.addf %206, %207 : vector<9x1xf32>
    %209 = math.rsqrt %208 : vector<9x1xf32>
    %210 = vector.broadcast %209 : vector<9x1xf32> to vector<9x32xf32>
    %211 = arith.mulf %200, %210 : vector<9x32xf32>
    %212 = vector.broadcast %201 : vector<1x32xf32> to vector<9x32xf32>
    %213 = arith.mulf %211, %212 : vector<9x32xf32>
    %c0_73 = arith.constant 0 : index
    %c0_74 = arith.constant 0 : index
    %214 = vector.load %arg10[%c0_73, %c0_74] : memref<32x128xf32, #tpu.memory_space<vmem>>, vector<32x128xf32>
    %cst_75 = arith.constant dense<0.000000e+00> : vector<9x128xf32>
    %215 = tpu.matmul %213, %214, %cst_75 {dimension_numbers = #tpu.dot_dimension_numbers<[1], [0], [0], [1], [0, 0, 1, 1], [], []>} : vector<9x32xf32>, vector<32x128xf32>, vector<9x128xf32> -> vector<9x128xf32>
    %216 = vector.extract_strided_slice %215 {offsets = [0, 0], sizes = [9, 64], strides = [1, 1]} : vector<9x128xf32> to vector<9x64xf32>
    %217 = vector.extract_strided_slice %215 {offsets = [0, 64], sizes = [9, 64], strides = [1, 1]} : vector<9x128xf32> to vector<9x64xf32>
    %218 = arith.negf %216 : vector<9x64xf32>
    %219 = math.exp %218 : vector<9x64xf32>
    %cst_76 = arith.constant 1.000000e+00 : f32
    %220 = vector.broadcast %cst_76 : f32 to vector<9x64xf32>
    %221 = arith.addf %220, %219 : vector<9x64xf32>
    %222 = arith.divf %220, %221 : vector<9x64xf32>
    %223 = arith.mulf %216, %222 : vector<9x64xf32>
    %224 = arith.mulf %223, %217 : vector<9x64xf32>
    %c0_77 = arith.constant 0 : index
    %c0_78 = arith.constant 0 : index
    %225 = vector.load %arg11[%c0_77, %c0_78] : memref<64x32xf32, #tpu.memory_space<vmem>>, vector<64x32xf32>
    %cst_79 = arith.constant dense<0.000000e+00> : vector<9x32xf32>
    %226 = tpu.matmul %224, %225, %cst_79 {dimension_numbers = #tpu.dot_dimension_numbers<[1], [0], [0], [1], [0, 0, 1, 1], [], []>} : vector<9x64xf32>, vector<64x32xf32>, vector<9x32xf32> -> vector<9x32xf32>
    %227 = arith.addf %200, %226 : vector<9x32xf32>
    %c0_80 = arith.constant 0 : index
    %c0_81 = arith.constant 0 : index
    %228 = vector.load %arg12[%c0_80, %c0_81] : memref<1x32xf32, #tpu.memory_space<vmem>>, vector<1x32xf32>
    %229 = arith.mulf %227, %227 : vector<9x32xf32>
    %cst_82 = arith.constant dense<0.000000e+00> : vector<9xf32>
    %230 = vector.multi_reduction <add>, %229, %cst_82 [1] : vector<9x32xf32> to vector<9xf32>
    %231 = vector.shape_cast %230 : vector<9xf32> to vector<9x1xf32>
    %cst_83 = arith.constant 3.200000e+01 : f32
    %232 = vector.broadcast %cst_83 : f32 to vector<9x1xf32>
    %233 = arith.divf %231, %232 : vector<9x1xf32>
    %cst_84 = arith.constant 9.99999997E-7 : f32
    %234 = vector.broadcast %cst_84 : f32 to vector<9x1xf32>
    %235 = arith.addf %233, %234 : vector<9x1xf32>
    %236 = math.rsqrt %235 : vector<9x1xf32>
    %237 = vector.broadcast %236 : vector<9x1xf32> to vector<9x32xf32>
    %238 = arith.mulf %227, %237 : vector<9x32xf32>
    %239 = vector.broadcast %228 : vector<1x32xf32> to vector<9x32xf32>
    %240 = arith.mulf %238, %239 : vector<9x32xf32>
    %c0_85 = arith.constant 0 : index
    %c0_86 = arith.constant 0 : index
    %241 = vector.load %arg13[%c0_85, %c0_86] : memref<32x128xf32, #tpu.memory_space<vmem>>, vector<32x128xf32>
    %cst_87 = arith.constant dense<0.000000e+00> : vector<9x128xf32>
    %242 = tpu.matmul %240, %241, %cst_87 {dimension_numbers = #tpu.dot_dimension_numbers<[1], [0], [0], [1], [0, 0, 1, 1], [], []>} : vector<9x32xf32>, vector<32x128xf32>, vector<9x128xf32> -> vector<9x128xf32>
    %c0_88 = arith.constant 0 : index
    %c0_89 = arith.constant 0 : index
    %c0_90 = arith.constant 0 : index
    %243 = vector.load %arg14[%c0_88, %c0_89, %c0_90] : memref<1x9x128xf32, #tpu.memory_space<vmem>>, vector<1x9x128xf32>
    %244 = vector.shape_cast %243 : vector<1x9x128xf32> to vector<9x128xf32>
    %245 = vector.shape_cast %242 : vector<9x128xf32> to vector<1x9x128xf32>
    tpu.vector_store %arg14[%c0_88, %c0_89, %c0_90], %245 {strides = array<i32>} : memref<1x9x128xf32, #tpu.memory_space<vmem>>, vector<1x9x128xf32>,
    %246 = vector.extract_strided_slice %242 {offsets = [0, 0], sizes = [8, 128], strides = [1, 1]} : vector<9x128xf32> to vector<8x128xf32>
    %c0_91 = arith.constant 0 : index
    %c1 = arith.constant 1 : index
    %c0_92 = arith.constant 0 : index
    %247 = vector.load %arg3[%c0_91, %c1, %c0_92] : memref<1x9x1xi32, #tpu.memory_space<vmem>>, vector<1x8x1xi32>
    %248 = vector.shape_cast %247 : vector<1x8x1xi32> to vector<8x1xi32>
    %cst_93 = arith.constant dense<0xFF800000> : vector<8xf32>
    %249 = vector.multi_reduction <maximumf>, %246, %cst_93 [1] : vector<8x128xf32> to vector<8xf32>
    %250 = vector.shape_cast %249 : vector<8xf32> to vector<8x1xf32>
    %251 = vector.broadcast %250 : vector<8x1xf32> to vector<8x128xf32>
    %252 = arith.subf %246, %251 : vector<8x128xf32>
    %253 = math.exp %252 : vector<8x128xf32>
    %cst_94 = arith.constant dense<0.000000e+00> : vector<8xf32>
    %254 = vector.multi_reduction <add>, %253, %cst_94 [1] : vector<8x128xf32> to vector<8xf32>
    %255 = vector.shape_cast %254 : vector<8xf32> to vector<8x1xf32>
    %256 = math.log %255 : vector<8x1xf32>
    %257 = arith.addf %256, %250 : vector<8x1xf32>
    %258 = tpu.iota {dimensions = array<i32: 1>} : vector<8x128xi32>
    %259 = vector.broadcast %248 : vector<8x1xi32> to vector<8x128xi32>
    %260 = arith.cmpi eq, %258, %259 : vector<8x128xi32>
    %cst_95 = arith.constant 0.000000e+00 : f32
    %261 = vector.broadcast %cst_95 : f32 to vector<8x128xf32>
    %262 = arith.select %260, %246, %261 : vector<8x128xi1>, vector<8x128xf32>
    %cst_96 = arith.constant dense<0.000000e+00> : vector<8xf32>
    %263 = vector.multi_reduction <add>, %262, %cst_96 [1] : vector<8x128xf32> to vector<8xf32>
    %264 = vector.shape_cast %263 : vector<8xf32> to vector<8x1xf32>
    %c-100_i32 = arith.constant -100 : i32
    %265 = vector.broadcast %c-100_i32 : i32 to vector<8x1xi32>
    %266 = arith.cmpi ne, %248, %265 : vector<8x1xi32>
    %267 = arith.extui %266 : vector<8x1xi1> to vector<8x1xi32>
    %268 = arith.sitofp %267 : vector<8x1xi32> to vector<8x1xf32>
    %269 = arith.subf %257, %264 : vector<8x1xf32>
    %270 = arith.mulf %269, %268 : vector<8x1xf32>
    %271 = vector.shape_cast %270 : vector<8x1xf32> to vector<1x8x1xf32>
    %cst_97 = arith.constant dense<0.000000e+00> : vector<1xf32>
    %272 = vector.multi_reduction <add>, %271, %cst_97 [1, 2] : vector<1x8x1xf32> to vector<1xf32>
    %273 = vector.shape_cast %272 : vector<1xf32> to vector<1x1x1xf32>
    %274 = vector.extract %273[0, 0, 0] : f32 from vector<1x1x1xf32>
    %275 = vector.broadcast %274 : f32 to vector<1x1xf32>
    %c0_98 = arith.constant 0 : index
    %c0_99 = arith.constant 0 : index
    %c0_100 = arith.constant 0 : index
    %276 = vector.load %arg15[%c0_98, %c0_99, %c0_100] : memref<1x1x1xf32, #tpu.memory_space<vmem>>, vector<1x1x1xf32>
    %277 = vector.shape_cast %276 : vector<1x1x1xf32> to vector<1x1xf32>
    %278 = vector.shape_cast %275 : vector<1x1xf32> to vector<1x1x1xf32>
    tpu.vector_store %arg15[%c0_98, %c0_99, %c0_100], %278 {strides = array<i32>} : memref<1x1x1xf32, #tpu.memory_space<vmem>>, vector<1x1x1xf32>,
    %279 = vector.shape_cast %268 : vector<8x1xf32> to vector<1x8x1xf32>
    %cst_101 = arith.constant dense<0.000000e+00> : vector<1xf32>
    %280 = vector.multi_reduction <add>, %279, %cst_101 [1, 2] : vector<1x8x1xf32> to vector<1xf32>
    %281 = vector.shape_cast %280 : vector<1xf32> to vector<1x1x1xf32>
    %282 = vector.extract %281[0, 0, 0] : f32 from vector<1x1x1xf32>
    %283 = vector.broadcast %282 : f32 to vector<1x1xf32>
    %c0_102 = arith.constant 0 : index
    %c0_103 = arith.constant 0 : index
    %c0_104 = arith.constant 0 : index
    %284 = vector.load %arg16[%c0_102, %c0_103, %c0_104] : memref<1x1x1xf32, #tpu.memory_space<vmem>>, vector<1x1x1xf32>
    %285 = vector.shape_cast %284 : vector<1x1x1xf32> to vector<1x1xf32>
    %286 = vector.shape_cast %283 : vector<1x1xf32> to vector<1x1x1xf32>
    tpu.vector_store %arg16[%c0_102, %c0_103, %c0_104], %286 {strides = array<i32>} : memref<1x1x1xf32, #tpu.memory_space<vmem>>, vector<1x1x1xf32>,
    return
  }
  func.func @transform_0(%arg0: i32) -> (i32, i32, i32) {
    %c0_i32 = arith.constant 0 : i32
    %c0_i32_0 = arith.constant 0 : i32
    %c0_i32_1 = arith.constant 0 : i32
    return %arg0, %c0_i32, %c0_i32_0 : i32, i32, i32
  }
  func.func @transform_1(%arg0: i32) -> (i32, i32, i32) {
    %c0_i32 = arith.constant 0 : i32
    %c0_i32_0 = arith.constant 0 : i32
    %c0_i32_1 = arith.constant 0 : i32
    return %arg0, %c0_i32, %c0_i32_0 : i32, i32, i32
  }
  func.func @transform_2(%arg0: i32) -> (i32, i32, i32) {
    %c0_i32 = arith.constant 0 : i32
    %c0_i32_0 = arith.constant 0 : i32
    %c0_i32_1 = arith.constant 0 : i32
    return %arg0, %c0_i32, %c0_i32_0 : i32, i32, i32
  }
  func.func @transform_3(%arg0: i32) -> (i32, i32) {
    %c0_i32 = arith.constant 0 : i32
    %c0_i32_0 = arith.constant 0 : i32
    %c0_i32_1 = arith.constant 0 : i32
    return %c0_i32, %c0_i32_0 : i32, i32
  }
  func.func @transform_4(%arg0: i32) -> (i32, i32) {
    %c0_i32 = arith.constant 0 : i32
    %c0_i32_0 = arith.constant 0 : i32
    %c0_i32_1 = arith.constant 0 : i32
    return %c0_i32, %c0_i32_0 : i32, i32
  }
  func.func @transform_5(%arg0: i32) -> (i32, i32) {
    %c0_i32 = arith.constant 0 : i32
    %c0_i32_0 = arith.constant 0 : i32
    %c0_i32_1 = arith.constant 0 : i32
    return %c0_i32, %c0_i32_0 : i32, i32
  }
  func.func @transform_6(%arg0: i32) -> (i32, i32) {
    %c0_i32 = arith.constant 0 : i32
    %c0_i32_0 = arith.constant 0 : i32
    %c0_i32_1 = arith.constant 0 : i32
    return %c0_i32, %c0_i32_0 : i32, i32
  }
  func.func @transform_7(%arg0: i32) -> (i32, i32) {
    %c0_i32 = arith.constant 0 : i32
    %c0_i32_0 = arith.constant 0 : i32
    %c0_i32_1 = arith.constant 0 : i32
    return %c0_i32, %c0_i32_0 : i32, i32
  }
  func.func @transform_8(%arg0: i32) -> (i32, i32) {
    %c0_i32 = arith.constant 0 : i32
    %c0_i32_0 = arith.constant 0 : i32
    %c0_i32_1 = arith.constant 0 : i32
    return %c0_i32, %c0_i32_0 : i32, i32
  }
  func.func @transform_9(%arg0: i32) -> (i32, i32) {
    %c0_i32 = arith.constant 0 : i32
    %c0_i32_0 = arith.constant 0 : i32
    %c0_i32_1 = arith.constant 0 : i32
    return %c0_i32, %c0_i32_0 : i32, i32
  }
  func.func @transform_10(%arg0: i32) -> (i32, i32) {
    %c0_i32 = arith.constant 0 : i32
    %c0_i32_0 = arith.constant 0 : i32
    %c0_i32_1 = arith.constant 0 : i32
    return %c0_i32, %c0_i32_0 : i32, i32
  }
  func.func @transform_11(%arg0: i32) -> (i32, i32) {
    %c0_i32 = arith.constant 0 : i32
    %c0_i32_0 = arith.constant 0 : i32
    %c0_i32_1 = arith.constant 0 : i32
    return %c0_i32, %c0_i32_0 : i32, i32
  }
  func.func @transform_12(%arg0: i32) -> (i32, i32) {
    %c0_i32 = arith.constant 0 : i32
    %c0_i32_0 = arith.constant 0 : i32
    %c0_i32_1 = arith.constant 0 : i32
    return %c0_i32, %c0_i32_0 : i32, i32
  }
  func.func @transform_13(%arg0: i32) -> (i32, i32, i32) {
    %c0_i32 = arith.constant 0 : i32
    %c0_i32_0 = arith.constant 0 : i32
    %c0_i32_1 = arith.constant 0 : i32
    return %arg0, %c0_i32, %c0_i32_0 : i32, i32, i32
  }
  func.func @transform_14(%arg0: i32) -> (i32, i32, i32) {
    %c0_i32 = arith.constant 0 : i32
    %c0_i32_0 = arith.constant 0 : i32
    %c0_i32_1 = arith.constant 0 : i32
    return %arg0, %c0_i32, %c0_i32_0 : i32, i32, i32
  }
  func.func @transform_15(%arg0: i32) -> (i32, i32, i32) {
    %c0_i32 = arith.constant 0 : i32
    %c0_i32_0 = arith.constant 0 : i32
    %c0_i32_1 = arith.constant 0 : i32
    return %arg0, %c0_i32, %c0_i32_0 : i32, i32, i32
  }
}

</mosaic_0001>

<bundles_post_ra>
// kernel: _lambda_.2
= control target key start
LH: loop header
LB: loop body
LE: loop exit
PB: predicated region body
PF: predicated region fallthrough
CT: control target
= control target key end

     0   :  { %s2992_s0 = inlined_call_operand.vmem [shape: f32[2,5,192], index: 0, kind: input, shape index: {}]   ;;  %s2993_s1 = inlined_call_operand.vmem [shape: f32[192,32], index: 1, kind: input, shape index: {}]   ;;  %s2994_s2 = inlined_call_operand.vmem [shape: f32[5,32], index: 2, kind: input, shape index: {}]   ;;  %s2995_s3 = inlined_call_operand.vmem [shape: f32[1,32], index: 3, kind: input, shape index: {}]   ;;  %s2996_s4 = inlined_call_operand.vmem [shape: f32[1,32], index: 4, kind: input, shape index: {}]   ;;  %s2997_s5 = inlined_call_operand.vmem [shape: f32[1,32], index: 5, kind: input, shape index: {}]   ;;  %s2998_s6 = inlined_call_operand.vmem [shape: f32[1,32], index: 6, kind: input, shape index: {}]   ;;  %s2999_s7 = inlined_call_operand.vmem [shape: f32[32,96], index: 7, kind: input, shape index: {}]   ;;  %s3000_s8 = inlined_call_operand.vmem [shape: f32[1,96], index: 8, kind: input, shape index: {}]   ;;  %s3001_s9 = inlined_call_operand.vmem [shape: f32[32,32], index: 9, kind: input, shape index: {}]   ;;  %s3002_s10 = inlined_call_operand.vmem [shape: f32[1,32], index: 10, kind: input, shape index: {}]   ;;  %s3003_s11 = inlined_call_operand.vmem [shape: f32[1,32], index: 11, kind: input, shape index: {}]   ;;  %s3004_s12 = inlined_call_operand.vmem [shape: f32[1,32], index: 12, kind: input, shape index: {}]   ;;  %s3005_s13 = inlined_call_operand.vmem [shape: f32[32,64], index: 13, kind: input, shape index: {}]   ;;  %s3006_s14 = inlined_call_operand.vmem [shape: f32[1,64], index: 14, kind: input, shape index: {}]   ;;  %s3007_s15 = inlined_call_operand.vmem [shape: f32[64,32], index: 15, kind: input, shape index: {}]   ;;  %s3008_s16 = inlined_call_operand.vmem [shape: f32[1,32], index: 16, kind: input, shape index: {}]   ;;  %s3009_s17 = inlined_call_operand.vmem [shape: f32[1,32], index: 17, kind: input, shape index: {}]   ;;  %s3010_s18 = inlined_call_operand.vmem [shape: f32[1,32], index: 18, kind: input, shape index: {}]   ;;  %s3011_s19 = inlined_call_operand.vmem [shape: f32[32,32], index: 19, kind: input, shape index: {}]   ;;  %s3012_s20 = inlined_call_operand.vmem [shape: f32[2,1,32], index: 20, kind: output, shape index: {}]  }
   0x1   :  { %3014 = sst [smem:[#allocation2_spill]] %s2992_s0 }
   0x2   :  { %3015 = sst [smem:[#allocation3_spill]] %s2993_s1  ;;  %s2652_s1 = smov 0  }
   0x3   :  { %3016 = sst [smem:[#allocation4_spill]] %s2994_s2 }
   0x4   :  { %3017 = sst [smem:[#allocation5_spill]] %s2995_s3 }
   0x5   :  { %3018 = sst [smem:[#allocation6_spill]] %s2996_s4 }
   0x6 LB: > { %s2203_s22 = sadd.s32 4294967295, %s2531_s1   ;;  %p2207_p0 = scmp.ge.s32.totalorder %s2531_s1, 1  ;;  %s2531_s1 = sphi %s2652_s1, %s30_s1  }
   0x7   : > { %p562_p1 = scmp.lt.s32.totalorder %s2531_s1, 3 }
   0x9   : > { %p563_p2 = pnand %p2207_p0, %p562_p1 }
   0xa   : > { %s3019_s2 = sld [smem:[#allocation3_spill]] (!%p563_p2)  ;;  %p618_p3 = scmp.lt.s32.totalorder (!%p563_p2), %s2203_s22, 1  ;;  %v2533_v3 = vmov (!%p563_p2), 0.0|0.0   ;;  %vm653_vm0 = vcmask (!%p563_p2), 523264   ;;  %vm729_vm1 = vcmask (!%p563_p2), 258048   ;;  %vm2534_vm2 = vmmov (!%p563_p2), 0  }
   0xb   : > { %566 = sbr.rel (%p563_p2) target bundleno = 5522 (0x1592), region = 100  ;;  %2409 = vmatprep.subr.bf16.mxu0 (!%p563_p2), %v2533_v3  ;;  %2445 = vmatprep.subr.bf16.mxu1 (!%p563_p2), %v2533_v3  ;;  %s3020_s3 = sld [smem:[#allocation2_spill]] (!%p563_p2)  ;;  %vm798_vm3 = vcmask (!%p563_p2), 261120   ;;  %vm879_vm4 = vcmask (!%p563_p2), 64512   ;;  %vm955_vm5 = vcmask (!%p563_p2), 36864   ;;  %vm973_vm6 = vcmask (!%p563_p2), 1044480  }
   0xc   : > { %s3021_s0 = sld [smem:[#allocation4_spill]] (!%p563_p2)  ;;  %s2536_s4 = smov (!%p563_p2), 96   ;;  %vm969_vm7 = vcmask (!%p563_p2), 39936   ;;  %vm2062_vm8 = vcmask (!%p563_p2), 253952  }
   0xd   : > { %s2537_s29 = smov (!%p563_p2), 88   ;;  %s2538_s30 = smov (!%p563_p2), 64  }
   0xe   : > { %s2541_s21 = smov (!%p563_p2), 112   ;;  %s2543_s28 = smov (!%p563_p2), 72  }
  0x10   : > { %v628_v0 = vld [vmem:[%s3019_s2] sm:$0xff] (!%p563_p2)  ;;  %v629_v1 = vld [vmem:[%s3019_s2 + $0x8] sm:$0xff] (!%p563_p2)  ;;  %v630_v2 = vld [vmem:[%s3019_s2 + $0x10] sm:$0xff] (!%p563_p2) }
  0x11   : > { %v2410_v4 = vpack.c.bf16 (!%p563_p2), %v629_v1, %v628_v0  ;;  %v631_v5 = vld [vmem:[%s3019_s2 + $0x18] sm:$0xff] (!%p563_p2)  ;;  %v632_v7 = vld [vmem:[%s3019_s2 + $0x20] sm:$0xff] (!%p563_p2)  ;;  %v633_v8 = vld [vmem:[%s3019_s2 + $0x28] sm:$0xff] (!%p563_p2) }
  0x12   : > { %s3025_s22 = smov (!%p618_p3, %s2203_s22), 1  ;;  %v2413_v6 = vpack.c.bf16 %v631_v5, %v630_v2  ;;  %v2416_v9 = vpack.c.bf16 %v633_v8, %v632_v7  ;;  %v634_v10 = vld [vmem:[%s3019_s2 + $0x30] sm:$0xff]  ;;  %v635_v11 = vld [vmem:[%s3019_s2 + $0x38] sm:$0xff]  ;;  %v636_v14 = vld [vmem:[%s3019_s2 + $0x40] sm:$0xff] }
  0x13   : > { %2411 = vmatpush1.bf16.msra.mxu0 %v2410_v4  ;;  %s2248_s23 = sshll.u32 %s3025_s22, 4  ;;  %v2419_v13 = vpack.c.bf16 %v635_v11, %v634_v10  ;;  %v637_v15 = vld [vmem:[%s3019_s2 + $0x48] sm:$0xff]  ;;  %v638_v17 = vld [vmem:[%s3019_s2 + $0x50] sm:$0xff]  ;;  %v639_v18 = vld [vmem:[%s3019_s2 + $0x58] sm:$0xff]  ;;  %s625_s24 = scalar_lea.vmem %s3012_s20, %s3025_s22 }
  0x14   : > { %2412 = vmatprep.subr.bf16.mxu0 %v2533_v3  ;;  %s2687_s26 = scalar_lea.vmem %s3020_s3, %s2248_s23  ;;  %v2422_v16 = vpack.c.bf16 %v637_v15, %v636_v14  ;;  %v2425_v19 = vpack.c.bf16 %v639_v18, %v638_v17  ;;  %v640_v20 = vld [vmem:[%s3019_s2 + $0x60] sm:$0xff]  ;;  %v641_v21 = vld [vmem:[%s3019_s2 + $0x68] sm:$0xff]  ;;  %v642_v23 = vld [vmem:[%s3019_s2 + $0x70] sm:$0xff]  ;;  %s3022_s23 = sld [smem:[#allocation5_spill]] }
  0x15   : > { %v627_v12 = vld [vmem:[%s2687_s26 + $0x8] sm:$0x1f]  ;;  %v2428_v22 = vpack.c.bf16 %v641_v21, %v640_v20  ;;  %v643_v24 = vld [vmem:[%s3019_s2 + $0x78] sm:$0xff]  ;;  %v644_v26 = vld [vmem:[%s3019_s2 + $0x80] sm:$0xff]  ;;  %s3023_s3 = sld [smem:[#allocation6_spill]] }
  0x16   : > { %2210 = vmatprep.mubr.msk.f32.mxu0 %vm653_vm0, %v627_v12  ;;  %v2431_v25 = vpack.c.bf16 %v643_v24, %v642_v23  ;;  %v645_v27 = vld [vmem:[%s3019_s2 + $0x88] sm:$0xff]  ;;  %v646_v29 = vld [vmem:[%s3019_s2 + $0x90] sm:$0xff]  ;;  %v647_v30 = vld [vmem:[%s3019_s2 + $0x98] sm:$0xff] }
  0x17   : > { %2414 = vmatpush1.bf16.msra.mxu0 %v2413_v6  ;;  %v2434_v28 = vpack.c.bf16 %v645_v27, %v644_v26  ;;  %v2437_v31 = vpack.c.bf16 %v647_v30, %v646_v29  ;;  %v648_v32 = vld [vmem:[%s3019_s2 + $0xa0] sm:$0xff]  ;;  %v649_v33 = vld [vmem:[%s3019_s2 + $0xa8] sm:$0xff]  ;;  %v650_v35 = vld [vmem:[%s3019_s2 + $0xb0] sm:$0xff]  ;;  %v2535_v6 = vmov 0.0  }
  0x18   : > { %2415 = vmatprep.subr.bf16.mxu0 %v2533_v3  ;;  %v2440_v34 = vpack.c.bf16 %v649_v33, %v648_v32  ;;  %v651_v36 = vld [vmem:[%s3019_s2 + $0xb8] sm:$0xff]  ;;  %v626_v38 = vld [vmem:[%s2687_s26] sm:$0x1f]  ;;  %v788_v1 = vld [vmem:[%s2999_s7 + $0x8] sm:$0xff]  ;;  %2305 = vmatprep.mubr.msk.f32.mxu1 %vm2534_vm2, %v2535_v6  ;;  %s2540_s26 = smov 56  }
  0x19   : > { %v2443_v37 = vpack.c.bf16 %v651_v36, %v650_v35  ;;  %v652_v39 = vld [vmem:[%s3021_s0] sm:$0x1f]  ;;  %v789_v2 = vld [vmem:[%s2999_s7 + $0x10] sm:$0xff]  ;;  %v790_v5 = vld [vmem:[%s2999_s7 + $0x18] sm:$0xff]  ;;  %s2539_s0 = smov 120  }
  0x1a   : > { %v2211_v53 = vld [vmem:[%s3022_s23] ss:$0 sm:$0xff]  ;;  %v2449_v7 = vpack.c.bf16 %v790_v5, %v789_v2  ;;  %s2542_s23 = smov 80  }
  0x1b   : > { %2417 = vmatpush1.bf16.msra.mxu0 %v2416_v9  ;;  %v2212_v55 = vld [vmem:[%s3023_s3] ss:$0 sm:$0xff] }
  0x1c   : > { %2418 = vmatprep.subr.bf16.mxu0 %v2533_v3  ;;  %v787_v0 = vld [vmem:[%s2999_s7] sm:$0xff] }
  0x1d   : > { %v2446_v4 = vpack.c.bf16 %v788_v1, %v787_v0  ;;  %v2213_v12 = vld [vmem:[%s2997_s5] ss:$0 sm:$0xff] }
  0x1e   : > { %v2214_v14 = vld [vmem:[%s2998_s6] ss:$0 sm:$0xff] }
  0x1f   : > { %2420 = vmatpush1.bf16.msra.mxu0 %v2419_v13  ;;  %2447 = vmatpush3.bf16.msra.mxu1 %v2446_v4  ;;  %v2215_v17 = vld [vmem:[%s3000_s8] ss:$0 sm:$0xff] }
  0x20   : > { %2421 = vmatprep.subr.bf16.mxu0 %v2533_v3  ;;  %2448 = vmatprep.subr.bf16.mxu1 %v2533_v3 }
  0x23   : > { %2423 = vmatpush1.bf16.msra.mxu0 %v2422_v16  ;;  %2450 = vmatpush3.bf16.msra.mxu1 %v2449_v7 }
  0x24   : > { %2424 = vmatprep.subr.bf16.mxu0 %v2533_v3  ;;  %2308 = vmatprep.subr.mxu1 %v2535_v6 }
  0x27   : > { %2426 = vmatpush1.bf16.msra.mxu0 %v2425_v19 }
  0x28   : > { %2427 = vmatprep.subr.bf16.mxu0 %v2533_v3 }
  0x2b   : > { %2429 = vmatpush1.bf16.msra.mxu0 %v2428_v22 }
  0x2c   : > { %2430 = vmatprep.subr.bf16.mxu0 %v2533_v3 }
  0x2f   : > { %2432 = vmatpush1.bf16.msra.mxu0 %v2431_v25 }
  0x30   : > { %2433 = vmatprep.subr.bf16.mxu0 %v2533_v3 }
  0x33   : > { %2435 = vmatpush1.bf16.msra.mxu0 %v2434_v28 }
  0x34   : > { %2436 = vmatprep.subr.bf16.mxu0 %v2533_v3 }
  0x37   : > { %2438 = vmatpush1.bf16.msra.mxu0 %v2437_v31 }
  0x38   : > { %2439 = vmatprep.subr.bf16.mxu0 %v2533_v3 }
  0x3b   : > { %2441 = vmatpush1.bf16.msra.mxu0 %v2440_v34 }
  0x3c   : > { %2442 = vmatprep.subr.bf16.mxu0 %v2533_v3 }
  0x3f   : > { %2444 = vmatpush1.bf16.msra.mxu0 %v2443_v37 }
  0x40   : > { %2358 = vmatprep.subr.mxu0 %v2535_v6 }
  0x42   : > { %722 = vmatmul.mubr.f32.vlgmr.msra.gmra.mrb[0].mxu0 %v626_v38 }
  0x43   : > { %2360 = vmatprep.mubr.msk.f32.mxu0 %vm2534_vm2, %v2535_v6 }
 0x115   : > { %v723_v40 = vpop.f32.mrb[0].mxu0 }
 0x116   : > { %v724_v41 = vadd.f32 %v723_v40, %v652_v39  ;;  %v725_v42 = vpop.f32.mrb[1].mxu0 }
 0x118   : > { %v730_v43 = vsel %vm729_vm1, %v724_v41, 0.0 }
 0x119   : > { %731 = vadd.xlane.f32.xlu0 %v730_v43 }
 0x1a6   : > { %v732_v44 = vpop.xlane.xlu0 %731 }
 0x1a7   : > { %v734_v45 = vmul.f32 0.03125, %v732_v44 }
 0x1a9   : > { %v735_v46 = vsub.f32 %v724_v41, %v734_v45 }
 0x1ab   : > { %v736_v47 = vmul.f32 %v735_v46, %v735_v46 }
 0x1ad   : > { %v737_v48 = vsel %vm729_vm1, %v736_v47, 0.0 }
 0x1ae   : > { %738 = vadd.xlane.f32.xlu0 %v737_v48 }
 0x23b   : > { %v739_v49 = vpop.xlane.xlu0 %738 }
 0x23c   : > { %v740_v50 = vmul.f32 0.03125, %v739_v49 }
 0x23e   : > { %v741_v51 = vadd.f32 1e-05, %v740_v50 }
 0x240   : > { %2497 = vrsqrt.f32 %v741_v51 }
 0x24a   : > { %v2498_v52 = vpop.eup %2497 }
 0x24b   : > { %v743_v54 = vmul.f32 %v2498_v52, %v735_v46  ;;  %v873_v52 = vld [vmem:[%s3001_s9 + $0x8] sm:$0xff] }
 0x24d   : > { %v750_v56 = vmul.f32 %v2211_v53, %v743_v54  ;;  %v872_v53 = vld [vmem:[%s3001_s9] sm:$0xff] }
 0x24f   : > { %v2767_v57 = vadd.f32 %v2212_v55, %v750_v56 }
 0x251   : > { %v760_v58 = vsel %vm729_vm1, %v2767_v57, 0.0 }
 0x252   : > { %761 = vadd.xlane.f32.xlu1 %v760_v58 }
 0x2df   : > { %v762_v59 = vpop.xlane.xlu1 %761 }
 0x2e0   : > { %v763_v60 = vmul.f32 0.03125, %v762_v59 }
 0x2e2   : > { %v764_v61 = vsub.f32 %v2767_v57, %v763_v60 }
 0x2e4   : > { %v765_v62 = vmul.f32 %v764_v61, %v764_v61 }
 0x2e6   : > { %v766_v63 = vsel %vm729_vm1, %v765_v62, 0.0 }
 0x2e7   : > { %767 = vadd.xlane.f32.xlu1 %v766_v63 }
 0x374   : > { %v768_v8 = vpop.xlane.xlu1 %767 }
 0x375   : > { %v769_v9 = vmul.f32 0.03125, %v768_v8 }
 0x377   : > { %v770_v10 = vadd.f32 1e-05, %v769_v9 }
 0x379   : > { %2499 = vrsqrt.f32 %v770_v10 }
 0x383   : > { %v2500_v11 = vpop.eup %2499 }
 0x384   : > { %v772_v13 = vmul.f32 %v2500_v11, %v764_v61 }
 0x386   : > { %v779_v15 = vmul.f32 %v2213_v12, %v772_v13 }
 0x388   : > { %v786_v16 = vadd.f32 %v2214_v14, %v779_v15  ;;  %v874_v15 = vld [vmem:[%s3001_s9 + $0x10] sm:$0xff] }
 0x38a   : > { %2306 = vmatmul.mubr.msk.f32.vlgmr.msra.gmra.mrb[0].mxu1 %vm798_vm3, %v786_v16 }
 0x38b   : > { %2310 = vmatprep.mubr.msk.f32.mxu1 %vm2534_vm2, %v2535_v6 }
 0x45d   : > { %v868_v18 = vpop.f32.mrb[0].mxu1 }
 0x45e   : > { %v2804_v19 = vadd.f32 %v2215_v17, %v868_v18  ;;  %v2307_v20 = vpop.f32.mrb[1].mxu1 }
 0x460   : > { %877 = vrot.lane.b32.xlu0 %v2804_v19, %s2536_s4  ;;  %s2544_s4 = smov 104  }
 0x464   : > { %1048 = vrot.lane.b32.xlu0 %v2804_v19, %s2537_s29  ;;  %s2545_s29 = smov 48  }
 0x4d2   : > { %v878_v21 = vpop.permute.xlu0 %877 }
 0x4d3   : > { %2309 = vmatpush3.xpose.msk.msra.mxu1 %vm879_vm4, %v878_v21 }
 0x4d4   : > { %2313 = vmatprep.subr.mxu1 %v2535_v6 }
 0x4d6   : > { %2311 = vmatmul.mubr.msk.f32.vlgmr.msra.gmra.mrb[2].mxu1 %vm879_vm4, %v2804_v19  ;;  %v1049_v35 = vpop.permute.xlu0 %1048 }
 0x4d7   : > { %2315 = vmatprep.mubr.msk.f32.mxu1 %vm2534_vm2, %v2535_v6 }
 0x5a9   : > { %v950_v22 = vpop.f32.mrb[2].mxu1 }
 0x5aa   : > { %v954_v23 = vmul.f32 0.35355338, %v950_v22  ;;  %v2312_v24 = vpop.f32.mrb[3].mxu1 }
 0x5ac   : > { %v956_v25 = vsel %vm955_vm5, %v954_v23, -inf }
 0x5ad   : > { %957 = vmax.xlane.f32.xlu1 %v956_v25 }
 0x5be   : > { %967 = vrot.lane.b32.xlu1 %v2804_v19, %s2538_s30 }
 0x63a   : > { %v958_v26 = vpop.xlane.xlu1 %957 }
 0x63b   : > { %v959_v27 = vsub.f32 %v954_v23, %v958_v26 }
 0x63d   : > { %v960_v28 = vmul.f32 1.442695, %v959_v27 }
 0x63e   : > { %v968_v29 = vpop.permute.xlu1 %967 }
 0x63f   : > { %2501 = vpow2.f32 %v960_v28  ;;  %2314 = vmatpush3.msk.msra.mxu1 %vm973_vm6, %v968_v29 }
 0x640   : > { %2318 = vmatprep.subr.mxu1 %v2535_v6 }
 0x649   : > { %v2502_v30 = vpop.eup %2501 }
 0x64a   : > { %v962_v31 = vsel %vm955_vm5, %v2502_v30, 0.0 }
 0x64b   : > { %963 = vadd.xlane.f32.xlu1 %v962_v31 }
 0x65c   : > { %1046 = vrot.lane.b32.xlu1 %v2804_v19, %s2539_s0 }
 0x6d8   : > { %v964_v32 = vpop.xlane.xlu1 %963 }
 0x6d9   : > { %2503 = vrcp.f32 %v964_v32 }
 0x6dc   : > { %v1047_v36 = vpop.permute.xlu1 %1046 }
 0x6e3   : > { %v2504_v33 = vpop.eup %2503 }
 0x6e4   : > { %v966_v34 = vmul.f32 %v2504_v33, %v2502_v30 }
 0x6e6   : > { %2316 = vmatmul.mubr.msk.f32.vlgmr.msra.gmra.mrb[4].mxu1 %vm969_vm7, %v966_v34  ;;  %v875_v34 = vld [vmem:[%s3001_s9 + $0x18] sm:$0xff] }
 0x6e7   : > { %2319 = vmatpush3.xpose.msk.msra.mxu1 %vm879_vm4, %v1049_v35  ;;  %2320 = vmatprep.mubr.msk.f32.mxu1 %vm2534_vm2, %v2535_v6 }
 0x6e8   : > { %2323 = vmatprep.subr.mxu1 %v2535_v6 }
 0x6ea   : > { %2321 = vmatmul.mubr.msk.f32.vlgmr.msra.gmra.mrb[6].mxu1 %vm879_vm4, %v1047_v36 }
 0x6eb   : > { %2325 = vmatprep.mubr.msk.f32.mxu1 %vm2534_vm2, %v2535_v6 }
 0x7b9   : > { %v1042_v37 = vpop.f32.mrb[4].mxu1 }
 0x7ba   : > { %v2317_v38 = vpop.f32.mrb[5].mxu1 }
 0x7bd   : > { %v1120_v39 = vpop.f32.mrb[6].mxu1 }
 0x7be   : > { %v1124_v40 = vmul.f32 0.35355338, %v1120_v39  ;;  %v2322_v41 = vpop.f32.mrb[7].mxu1 }
 0x7c0   : > { %v1125_v42 = vsel %vm955_vm5, %v1124_v40, -inf }
 0x7c1   : > { %1126 = vmax.xlane.f32.xlu0 %v1125_v42  ;;  %v2237_v42 = vld [vmem:[%s3002_s10] ss:$0 sm:$0xff] }
 0x7d7   : > { %1136 = vrot.lane.b32.xlu0 %v2804_v19, %s2540_s26  ;;  %s2546_s26 = smov 40  }
 0x7db   : > { %1359 = vrot.lane.b32.xlu0 %v2804_v19, %s2541_s21 }
 0x84e   : > { %v1127_v43 = vpop.xlane.xlu0 %1126 }
 0x84f   : > { %v1128_v44 = vsub.f32 %v1124_v40, %v1127_v43 }
 0x851   : > { %v1129_v45 = vmul.f32 1.442695, %v1128_v44 }
 0x852   : > { %v1137_v46 = vpop.permute.xlu0 %1136 }
 0x853   : > { %2505 = vpow2.f32 %v1129_v45  ;;  %2324 = vmatpush3.msk.msra.mxu1 %vm973_vm6, %v1137_v46 }
 0x854   : > { %2328 = vmatprep.subr.mxu1 %v2535_v6 }
 0x856   : > { %v1360_v58 = vpop.permute.xlu0 %1359 }
 0x85d   : > { %v2506_v47 = vpop.eup %2505 }
 0x85e   : > { %v1131_v48 = vsel %vm955_vm5, %v2506_v47, 0.0 }
 0x85f   : > { %1132 = vadd.xlane.f32.xlu1 %v1131_v48 }
 0x870   : > { %1361 = vrot.lane.b32.xlu1 %v2804_v19, %s2542_s23 }
 0x8ec   : > { %v1133_v49 = vpop.xlane.xlu1 %1132 }
 0x8ed   : > { %2507 = vrcp.f32 %v1133_v49 }
 0x8f0   : > { %v1362_v56 = vpop.permute.xlu1 %1361 }
 0x8f7   : > { %v2508_v50 = vpop.eup %2507 }
 0x8f8   : > { %v1135_v51 = vmul.f32 %v2508_v50, %v2506_v47 }
 0x8fa   : > { %2326 = vmatmul.mubr.msk.f32.vlgmr.msra.gmra.mrb[8].mxu1 %vm969_vm7, %v1135_v51  ;;  %v1879_v51 = vld [vmem:[%s3005_s13] sm:$0xff] }
 0x8fb   : > { %2329 = vmatpush3.msra.mxu1 %v873_v52  ;;  %2330 = vmatprep.mubr.msk.f32.mxu1 %vm2534_vm2, %v2535_v6 }
 0x8fc   : > { %2333 = vmatprep.subr.mxu1 %v2535_v6 }
 0x9cd   : > { %v1209_v54 = vpop.f32.mrb[8].mxu1 }
 0x9ce   : > { %v2327_v55 = vpop.f32.mrb[9].mxu1  ;;  %2331 = vmatmul.mubr.msk.f32.vlgmr.msra.gmra.mrb[10].mxu1 %vm879_vm4, %v1209_v54  ;;  %v1882_v54 = vld [vmem:[%s3005_s13 + $0x18] sm:$0xff] }
 0x9cf   : > { %2334 = vmatpush3.msra.mxu1 %v872_v53  ;;  %2335 = vmatprep.mubr.msk.f32.mxu1 %vm2534_vm2, %v2535_v6  ;;  %v1881_v53 = vld [vmem:[%s3005_s13 + $0x10] sm:$0xff] }
 0x9d0   : > { %2338 = vmatprep.subr.mxu1 %v2535_v6  ;;  %v2455_v55 = vpack.c.bf16 %v1882_v54, %v1881_v53 }
 0x9d2   : > { %2336 = vmatmul.mubr.msk.f32.vlgmr.msra.gmra.mrb[12].mxu1 %vm879_vm4, %v1042_v37 }
 0x9d3   : > { %2340 = vmatprep.mubr.msk.f32.mxu1 %vm2534_vm2, %v2535_v6 }
 0x9d6   : > { %2339 = vmatpush3.xpose.msk.msra.mxu1 %vm879_vm4, %v1362_v56 }
 0x9d7   : > { %2343 = vmatprep.subr.mxu1 %v2535_v6 }
 0x9d9   : > { %2341 = vmatmul.mubr.msk.f32.vlgmr.msra.gmra.mrb[14].mxu1 %vm879_vm4, %v1360_v58 }
 0x9da   : > { %2345 = vmatprep.mubr.msk.f32.mxu1 %vm2534_vm2, %v2535_v6 }
 0xaa1   : > { %v1282_v59 = vpop.f32.mrb[10].mxu1 }
 0xaa2   : > { %v2332_v60 = vpop.f32.mrb[11].mxu1 }
 0xaa5   : > { %v1355_v61 = vpop.f32.mrb[12].mxu1 }
 0xaa6   : > { %v1356_v62 = vadd.f32 %v1355_v61, %v1282_v59  ;;  %v2337_v63 = vpop.f32.mrb[13].mxu1  ;;  %v2238_v61 = vld [vmem:[%s3003_s11] ss:$0 sm:$0xff] }
 0xaa7   : > { %v2239_v63 = vld [vmem:[%s3004_s12] ss:$0 sm:$0xff] }
 0xaac   : > { %v1433_v0 = vpop.f32.mrb[14].mxu1 }
 0xaad   : > { %v1437_v1 = vmul.f32 0.35355338, %v1433_v0  ;;  %v2342_v2 = vpop.f32.mrb[15].mxu1 }
 0xaae   : > { %v1971_v2 = vld [vmem:[%s3007_s15] sm:$0xff] }
 0xaaf   : > { %v1438_v4 = vsel %vm955_vm5, %v1437_v1, -inf }
 0xab0   : > { %1439 = vmax.xlane.f32.xlu1 %v1438_v4  ;;  %v1972_v4 = vld [vmem:[%s3007_s15 + $0x8] sm:$0xff] }
 0xac1   : > { %1602 = vrot.lane.b32.xlu1 %v2804_v19, %s2543_s28 }
 0xac5   : > { %1600 = vrot.lane.b32.xlu1 %v2804_v19, %s2544_s4 }
 0xb3d   : > { %v1440_v5 = vpop.xlane.xlu1 %1439 }
 0xb3e   : > { %v1441_v7 = vsub.f32 %v1437_v1, %v1440_v5  ;;  %v2458_v5 = vpack.c.bf16 %v1972_v4, %v1971_v2 }
 0xb40   : > { %v1442_v8 = vmul.f32 1.442695, %v1441_v7  ;;  %v1973_v7 = vld [vmem:[%s3007_s15 + $0x10] sm:$0xff] }
 0xb41   : > { %v1603_v16 = vpop.permute.xlu1 %1602 }
 0xb42   : > { %2509 = vpow2.f32 %v1442_v8 }
 0xb45   : > { %v1601_v20 = vpop.permute.xlu1 %1600 }
 0xb4c   : > { %v2510_v9 = vpop.eup %2509 }
 0xb4d   : > { %v1444_v10 = vsel %vm955_vm5, %v2510_v9, 0.0 }
 0xb4e   : > { %1445 = vadd.xlane.f32.xlu0 %v1444_v10  ;;  %v1976_v10 = vld [vmem:[%s3007_s15 + $0x28] sm:$0xff] }
 0xb64   : > { %1449 = vrot.lane.b32.xlu0 %v2804_v19, %s2545_s29 }
 0xbdb   : > { %v1446_v11 = vpop.xlane.xlu0 %1445 }
 0xbdc   : > { %2511 = vrcp.f32 %v1446_v11 }
 0xbdf   : > { %v1450_v12 = vpop.permute.xlu0 %1449 }
 0xbe0   : > { %2344 = vmatpush3.msk.msra.mxu1 %vm973_vm6, %v1450_v12  ;;  %v1977_v12 = vld [vmem:[%s3007_s15 + $0x30] sm:$0xff] }
 0xbe1   : > { %2348 = vmatprep.subr.mxu1 %v2535_v6 }
 0xbe6   : > { %v2512_v13 = vpop.eup %2511 }
 0xbe7   : > { %v1448_v14 = vmul.f32 %v2512_v13, %v2510_v9  ;;  %v1975_v9 = vld [vmem:[%s3007_s15 + $0x20] sm:$0xff]  ;;  %v1978_v13 = vld [vmem:[%s3007_s15 + $0x38] sm:$0xff] }
 0xbe8   : > { %v2464_v11 = vpack.c.bf16 %v1976_v10, %v1975_v9 }
 0xbe9   : > { %2346 = vmatmul.mubr.msk.f32.vlgmr.msra.gmra.mrb[16].mxu1 %vm969_vm7, %v1448_v14  ;;  %v2467_v14 = vpack.c.bf16 %v1978_v13, %v1977_v12 }
 0xbea   : > { %2349 = vmatpush3.msra.mxu1 %v874_v15  ;;  %2350 = vmatprep.mubr.msk.f32.mxu1 %vm2534_vm2, %v2535_v6  ;;  %v2240_v15 = vld [vmem:[%s3006_s14] ss:$0 sm:$0xff] }
 0xbeb   : > { %2353 = vmatprep.subr.mxu1 %v2535_v6 }
 0xcbc   : > { %v1522_v17 = vpop.f32.mrb[16].mxu1 }
 0xcbd   : > { %v2347_v18 = vpop.f32.mrb[17].mxu1  ;;  %2351 = vmatmul.mubr.msk.f32.vlgmr.msra.gmra.mrb[18].mxu1 %vm879_vm4, %v1522_v17 }
 0xcbe   : > { %2354 = vmatpush3.xpose.msk.msra.mxu1 %vm879_vm4, %v1603_v16  ;;  %2355 = vmatprep.mubr.msk.f32.mxu1 %vm2534_vm2, %v2535_v6 }
 0xcbf   : > { %2363 = vmatprep.subr.mxu1 %v2535_v6 }
 0xcc1   : > { %2356 = vmatmul.mubr.msk.f32.vlgmr.msra.gmra.mrb[20].mxu1 %vm879_vm4, %v1601_v20 }
 0xcc2   : > { %2365 = vmatprep.mubr.msk.f32.mxu1 %vm2534_vm2, %v2535_v6  ;;  %2364 = vmatpush3.msra.mxu1 %v875_v34 }
 0xcc3   : > { %2457 = vmatprep.subr.bf16.mxu1 %v2533_v3 }
 0xd90   : > { %v1595_v21 = vpop.f32.mrb[18].mxu1 }
 0xd91   : > { %v1599_v22 = vadd.f32 %v1595_v21, %v1356_v62  ;;  %v2352_v23 = vpop.f32.mrb[19].mxu1 }
 0xd94   : > { %v1674_v24 = vpop.f32.mrb[20].mxu1 }
 0xd95   : > { %v1678_v25 = vmul.f32 0.35355338, %v1674_v24  ;;  %v2357_v26 = vpop.f32.mrb[21].mxu1 }
 0xd96   : > { %v2243_v26 = vld [vmem:[%s3008_s16] ss:$0 sm:$0xff] }
 0xd97   : > { %v1679_v27 = vsel %vm955_vm5, %v1678_v25, -inf }
 0xd98   : > { %1680 = vmax.xlane.f32.xlu0 %v1679_v27 }
 0xdae   : > { %1690 = vrot.lane.b32.xlu0 %v2804_v19, %s2546_s26 }
 0xe25   : > { %v1681_v28 = vpop.xlane.xlu0 %1680 }
 0xe26   : > { %v1682_v29 = vsub.f32 %v1678_v25, %v1681_v28 }
 0xe28   : > { %v1683_v30 = vmul.f32 1.442695, %v1682_v29 }
 0xe29   : > { %v1691_v31 = vpop.permute.xlu0 %1690 }
 0xe2a   : > { %2513 = vpow2.f32 %v1683_v30  ;;  %2359 = vmatpush3.msk.msra.mxu0 %vm973_vm6, %v1691_v31 }
 0xe2b   : > { %2451 = vmatprep.subr.bf16.mxu0 %v2533_v3 }
 0xe34   : > { %v2514_v32 = vpop.eup %2513 }
 0xe35   : > { %v1685_v33 = vsel %vm955_vm5, %v2514_v32, 0.0 }
 0xe36   : > { %1686 = vadd.xlane.f32.xlu1 %v1685_v33 }
 0xec3   : > { %v1687_v19 = vpop.xlane.xlu1 %1686 }
 0xec4   : > { %2515 = vrcp.f32 %v1687_v19 }
 0xece   : > { %v2516_v35 = vpop.eup %2515 }
 0xecf   : > { %v1689_v36 = vmul.f32 %v2516_v35, %v2514_v32 }
 0xed1   : > { %2361 = vmatmul.mubr.msk.f32.vlgmr.msra.gmra.mrb[2].mxu0 %vm969_vm7, %v1689_v36  ;;  %v2078_v36 = vld [vmem:[%s3011_s19] sm:$0xff] }
 0xed2   : > { %2376 = vmatprep.mubr.msk.f32.mxu0 %vm2534_vm2, %v2535_v6 }
 0xfa4   : > { %v1763_v37 = vpop.f32.mrb[2].mxu0 }
 0xfa5   : > { %v2362_v38 = vpop.f32.mrb[3].mxu0  ;;  %2366 = vmatmul.mubr.msk.f32.vlgmr.msra.gmra.mrb[22].mxu1 %vm879_vm4, %v1763_v37  ;;  %v2079_v37 = vld [vmem:[%s3011_s19 + $0x8] sm:$0xff] }
 0xfa6   : > { %2395 = vmatprep.mubr.msk.f32.mxu1 %vm2534_vm2, %v2535_v6  ;;  %2459 = vmatpush3.bf16.msra.mxu1 %v2458_v5  ;;  %v2470_v38 = vpack.c.bf16 %v2079_v37, %v2078_v36 }
 0xfa7   : > { %2460 = vmatprep.subr.bf16.mxu1 %v2533_v3 }
0x1078   : > { %v1836_v39 = vpop.f32.mrb[22].mxu1 }
0x1079   : > { %v1840_v40 = vadd.f32 %v1836_v39, %v1599_v22  ;;  %v2367_v41 = vpop.f32.mrb[23].mxu1  ;;  %v2080_v39 = vld [vmem:[%s3011_s19 + $0x10] sm:$0xff] }
0x107b   : > { %v1841_v43 = vadd.f32 %v1840_v40, %v2767_v57  ;;  %v1880_v57 = vld [vmem:[%s3005_s13 + $0x8] sm:$0xff]  ;;  %v2081_v40 = vld [vmem:[%s3011_s19 + $0x18] sm:$0xff] }
0x107c   : > { %v2452_v52 = vpack.c.bf16 %v1880_v57, %v1879_v51  ;;  %v2473_v41 = vpack.c.bf16 %v2081_v40, %v2080_v39 }
0x107d   : > { %v2898_v44 = vadd.f32 %v2237_v42, %v1841_v43 }
0x107e   : > { %2453 = vmatpush3.bf16.msra.mxu0 %v2452_v52 }
0x107f   : > { %v1852_v45 = vsel %vm729_vm1, %v2898_v44, 0.0  ;;  %2454 = vmatprep.subr.bf16.mxu0 %v2533_v3 }
0x1080   : > { %1853 = vadd.xlane.f32.xlu1 %v1852_v45 }
0x1082   : > { %2456 = vmatpush3.bf16.msra.mxu0 %v2455_v55 }
0x1083   : > { %2469 = vmatprep.subr.bf16.mxu0 %v2533_v3 }
0x110d   : > { %v1854_v46 = vpop.xlane.xlu1 %1853 }
0x110e   : > { %v1855_v47 = vmul.f32 0.03125, %v1854_v46 }
0x1110   : > { %v1856_v48 = vsub.f32 %v2898_v44, %v1855_v47  ;;  %v2061_v47 = vld [vmem:[%s3010_s18] sm:$0x1] }
0x1112   : > { %v1857_v49 = vmul.f32 %v1856_v48, %v1856_v48 }
0x1114   : > { %v1858_v50 = vsel %vm729_vm1, %v1857_v49, 0.0 }
0x1115   : > { %1859 = vadd.xlane.f32.xlu1 %v1858_v50 }
0x11a2   : > { %v1860_v56 = vpop.xlane.xlu1 %1859 }
0x11a3   : > { %v1861_v58 = vmul.f32 0.03125, %v1860_v56 }
0x11a5   : > { %v1862_v59 = vadd.f32 1e-05, %v1861_v58 }
0x11a7   : > { %2517 = vrsqrt.f32 %v1862_v59 }
0x11b1   : > { %v2518_v60 = vpop.eup %2517 }
0x11b2   : > { %v1864_v62 = vmul.f32 %v2518_v60, %v1856_v48 }
0x11b4   : > { %v1871_v0 = vmul.f32 %v2238_v61, %v1864_v62 }
0x11b6   : > { %v1878_v1 = vadd.f32 %v2239_v63, %v1871_v0 }
0x11b8   : > { %2377 = vmatmul.mubr.msk.f32.vlgmr.msra.gmra.mrb[4].mxu0 %vm798_vm3, %v1878_v1 }
0x11b9   : > { %2406 = vmatprep.mubr.msk.f32.mxu0 %vm2534_vm2, %v2535_v6  ;;  %v1974_v6 = vld [vmem:[%s3007_s15 + $0x18] sm:$0xff]  ;;  %2471 = vmatpush3.bf16.msra.mxu0 %v2470_v38 }
0x11ba   : > { %v2461_v8 = vpack.c.bf16 %v1974_v6, %v1973_v7  ;;  %2472 = vmatprep.subr.bf16.mxu0 %v2533_v3 }
0x11bc   : > { %2462 = vmatpush3.bf16.msra.mxu1 %v2461_v8 }
0x11bd   : > { %2463 = vmatprep.subr.bf16.mxu1 %v2533_v3  ;;  %2474 = vmatpush3.bf16.msra.mxu0 %v2473_v41 }
0x11c0   : > { %2465 = vmatpush3.bf16.msra.mxu1 %v2464_v11 }
0x11c1   : > { %2466 = vmatprep.subr.bf16.mxu1 %v2533_v3  ;;  %v2060_v3 = vld [vmem:[%s3009_s17] sm:$0x1] }
0x11c4   : > { %2468 = vmatpush3.bf16.msra.mxu1 %v2467_v14 }
0x128b   : > { %v1959_v16 = vpop.f32.mrb[4].mxu0 }
0x128c   : > { %v1960_v17 = vadd.f32 %v2240_v15, %v1959_v16  ;;  %v2378_v18 = vpop.f32.mrb[5].mxu0 }
0x128e   : > { %v2242_v20 = vmul.f32 -1.702, %v1960_v17 }
0x1290   : > { %v1965_v21 = vmul.f32 1.442695, %v2242_v20 }
0x1292   : > { %2519 = vpow2.f32 %v1965_v21 }
0x129c   : > { %v2520_v22 = vpop.eup %2519 }
0x129d   : > { %v1967_v23 = vadd.f32 1.0, %v2520_v22 }
0x129f   : > { %2521 = vrcp.f32 %v1967_v23 }
0x12a9   : > { %v2522_v24 = vpop.eup %2521 }
0x12aa   : > { %v1970_v25 = vmul.f32 %v2522_v24, %v1960_v17 }
0x12ac   : > { %2396 = vmatmul.mubr.msk.f32.vlgmr.msra.gmra.mrb[24].mxu1 %vm653_vm0, %v1970_v25 }
0x137f   : > { %v2055_v27 = vpop.f32.mrb[24].mxu1 }
0x1380   : > { %v2056_v28 = vadd.f32 %v2243_v26, %v2055_v27  ;;  %v2397_v29 = vpop.f32.mrb[25].mxu1 }
0x1382   : > { %v2059_v30 = vadd.f32 %v2056_v28, %v2898_v44 }
0x1384   : > { %v2063_v31 = vsel %vm2062_vm8, %v2059_v30, 0.0 }
0x1385   : > { %2064 = vadd.xlane.f32.xlu1 %v2063_v31 }
0x1412   : > { %v2065_v32 = vpop.xlane.xlu1 %2064 }
0x1413   : > { %v2066_v33 = vmul.f32 0.03125, %v2065_v32 }
0x1415   : > { %v2067_v34 = vsub.f32 %v2059_v30, %v2066_v33 }
0x1417   : > { %v2068_v19 = vmul.f32 %v2067_v34, %v2067_v34 }
0x1419   : > { %v2069_v35 = vsel %vm2062_vm8, %v2068_v19, 0.0 }
0x141a   : > { %2070 = vadd.xlane.f32.xlu1 %v2069_v35 }
0x14a7   : > { %v2071_v42 = vpop.xlane.xlu1 %2070 }
0x14a8   : > { %v2072_v43 = vmul.f32 0.03125, %v2071_v42 }
0x14aa   : > { %v2073_v44 = vadd.f32 1e-05, %v2072_v43 }
0x14ac   : > { %2523 = vrsqrt.f32 %v2073_v44 }
0x14b6   : > { %v2524_v45 = vpop.eup %2523 }
0x14b7   : > { %v2075_v46 = vmul.f32 %v2524_v45, %v2067_v34 }
0x14b9   : > { %v2076_v48 = vmul.f32 %v2075_v46, %v2060_v3 }
0x14bb   : > { %v2077_v49 = vadd.f32 %v2076_v48, %v2061_v47 }
0x14bd   : > { %2407 = vmatmul.mubr.msk.f32.vlgmr.msra.gmra.mrb[6].mxu0 %vm798_vm3, %v2077_v49 }
0x1590   : > { %v2151_v50 = vpop.f32.mrb[6].mxu0 }
0x1591   : > { %2155 = vst.msk [vmem:[%s625_s24] sm:$0x1] %vm2062_vm8, %v2151_v50  ;;  %v2408_v51 = vpop.f32.mrb[7].mxu0 }
0x1592 PF: > { %s30_s1 = sadd.s32 1, %s2531_s1  }
0x1593   : > { %p27_p4 = scmp.ge.s32.totalorder %s30_s1, 4  }
0x1595   :  { %29 = sbr.rel (!%p27_p4) target bundleno = 6 (0x6), region = 130 }

// kernel: _lambda_.3
= control target key start
LH: loop header
LB: loop body
LE: loop exit
PB: predicated region body
PF: predicated region fallthrough
CT: control target
= control target key end

     0   :  { %s3960_s18 = smov 0   ;;  %s4341_s0 = inlined_call_operand.vmem [shape: f32[2,9,32], index: 0, kind: input, shape index: {}]   ;;  %s4342_s1 = inlined_call_operand.vmem [shape: f32[2,1,9], index: 1, kind: input, shape index: {}]   ;;  %s4343_s2 = inlined_call_operand.vmem [shape: s32[2,9,1], index: 2, kind: input, shape index: {}]   ;;  %s4344_s3 = inlined_call_operand.vmem [shape: f32[1,32], index: 3, kind: input, shape index: {}]   ;;  %s4345_s4 = inlined_call_operand.vmem [shape: f32[32,96], index: 4, kind: input, shape index: {}]   ;;  %s4346_s5 = inlined_call_operand.vmem [shape: f32[32,32], index: 5, kind: input, shape index: {}]   ;;  %s4347_s6 = inlined_call_operand.vmem [shape: f32[4,32], index: 6, kind: input, shape index: {}]   ;;  %s4348_s7 = inlined_call_operand.vmem [shape: f32[1,4], index: 7, kind: input, shape index: {}]   ;;  %s4349_s8 = inlined_call_operand.vmem [shape: f32[1,32], index: 8, kind: input, shape index: {}]   ;;  %s4350_s9 = inlined_call_operand.vmem [shape: f32[32,128], index: 9, kind: input, shape index: {}]   ;;  %s4351_s10 = inlined_call_operand.vmem [shape: f32[64,32], index: 10, kind: input, shape index: {}]   ;;  %s4352_s11 = inlined_call_operand.vmem [shape: f32[1,32], index: 11, kind: input, shape index: {}]   ;;  %s4353_s12 = inlined_call_operand.vmem [shape: f32[32,128], index: 12, kind: input, shape index: {}]   ;;  %s4354_s13 = inlined_call_operand.vmem [shape: f32[2,9,128], index: 13, kind: output, shape index: {0}]   ;;  %s4355_s14 = inlined_call_operand.vmem [shape: f32[2,1,1], index: 14, kind: output, shape index: {1}]   ;;  %s4356_s15 = inlined_call_operand.vmem [shape: f32[2,1,1], index: 15, kind: output, shape index: {2}]  }
   0x1 LB: > { %s3211_s19 = sadd.s32 4294967295, %s3858_s18   ;;  %p3215_p0 = scmp.ge.s32.totalorder %s3858_s18, 1  ;;  %s3858_s18 = sphi %s3960_s18, %s26_s18  }
   0x2   : > { %p460_p1 = scmp.lt.s32.totalorder %s3858_s18, 3 }
   0x4   : > { %p461_p2 = pnand %p3215_p0, %p460_p1 }
   0x5   : > { %p522_p3 = scmp.lt.s32.totalorder (!%p461_p2), %s3211_s19, 1  ;;  %v596_v0 = vld [vmem:[%s4345_s4] sm:$0xff] (!%p461_p2)  ;;  %v597_v1 = vld [vmem:[%s4345_s4 + $0x8] sm:$0xff] (!%p461_p2)  ;;  %v3860_v2 = vmov (!%p461_p2), 0.0|0.0   ;;  %v598_v4 = vld [vmem:[%s4345_s4 + $0x10] sm:$0xff] (!%p461_p2)  ;;  %vm3861_vm0 = vmmov (!%p461_p2), 0   ;;  %v548_v45 = vlaneseq (!%p461_p2) }
   0x6   : > { %464 = sbr.rel (%p461_p2) target bundleno = 5188 (0x1444), region = 72  ;;  %3590 = vmatprep.subr.bf16.mxu1 (!%p461_p2), %v3860_v2  ;;  %v3582_v3 = vpack.c.bf16 (!%p461_p2), %v597_v1, %v596_v0  ;;  %v599_v5 = vld [vmem:[%s4345_s4 + $0x18] sm:$0xff] (!%p461_p2)  ;;  %v3862_v6 = vmov (!%p461_p2), 0.0   ;;  %vm571_vm1 = vcmask (!%p461_p2), 261120   ;;  %v681_v12 = vld [vmem:[%s4347_s6] sm:$0xf] (!%p461_p2) }
   0x7   : > { %3422 = vmatprep.mubr.msk.f32.mxu1 (!%p461_p2), %vm3861_vm0, %v3862_v6  ;;  %v3586_v7 = vpack.c.bf16 (!%p461_p2), %v599_v5, %v598_v4  ;;  %vm575_vm2 = vcmask (!%p461_p2), 253952   ;;  %v3222_v22 = vld [vmem:[%s4344_s3] ss:$0 sm:$0xff] (!%p461_p2)  ;;  %s3863_s23 = smov (!%p461_p2), 96   ;;  %vm767_vm3 = vcmask (!%p461_p2), 64512   ;;  %vm965_vm5 = vcmask (!%p461_p2), 24576  }
   0x8   : > { %3592 = vmatpush3.bf16.msra.mxu1 (!%p461_p2), %v3582_v3  ;;  %3583 = vmatprep.subr.bf16.mxu0 (!%p461_p2), %v3582_v3  ;;  %vm4027_vm4 = vmpackc.low (!%p461_p2), %vm767_vm3, %vm767_vm3  ;;  %vm961_vm6 = vcmask (!%p461_p2), 31744   ;;  %s3864_s24 = smov (!%p461_p2), 64   ;;  %s3865_s25 = smov (!%p461_p2), 88   ;;  %v4049_v47 = vshrl.u32 (!%p461_p2), %v548_v45, 7  ;;  %v4051_v48 = vand.u32 (!%p461_p2), 127, %v548_v45  ;;  %vm855_vm10 = vcmask (!%p461_p2), 72704  }
   0x9   : > { %3593 = vmatprep.subr.bf16.mxu1 (!%p461_p2), %v3860_v2  ;;  %3585 = vmatpush3.bf16.msra.mxu0 (!%p461_p2), %v3582_v3  ;;  %s3866_s26 = smov (!%p461_p2), 120   ;;  %v3867_v51 = vmov (!%p461_p2), -1e+09   ;;  %vm859_vm11 = vcmask (!%p461_p2), 65536   ;;  %vm1093_vm12 = vcmask (!%p461_p2), 1040384   ;;  %vm993_vm13 = vcmask (!%p461_p2), 1043456  }
   0xa   : > { %3587 = vmatprep.subr.bf16.mxu0 (!%p461_p2), %v3586_v7  ;;  %v563_v49 = vsub.s32 (!%p461_p2), 0, %v4049_v47  ;;  %v550_v50 = vadd.s32 (!%p461_p2), 8, %v4049_v47  ;;  %vm553_vm8 = vcmp.le.s32.totalorder (!%p461_p2), %v4051_v48, %v4049_v47  ;;  %vm3868_vm14 = vmmov (!%p461_p2), 1   ;;  %s3871_s21 = smov (!%p461_p2), 56   ;;  %s3872_s22 = smov (!%p461_p2), 80  }
   0xb   : > { %v555_v54 = vsel (!%p461_p2), %vm553_vm8, 0.0, %v3867_v51  ;;  %vm4074_vm15 = vmpackc.low (!%p461_p2), %vm1093_vm12, %vm3868_vm14  ;;  %s3876_s17 = smov (!%p461_p2), 72   ;;  %s3877_s20 = smov (!%p461_p2), 104   ;;  %vm2840_vm0 = vcmask (!%p461_p2), 523264  }
   0xc   : > { %3595 = vmatpush3.bf16.msra.mxu1 (!%p461_p2), %v3586_v7  ;;  %vm554_vm9 = vcmp.le.s32.totalorder (!%p461_p2), %v4051_v48, %v550_v50 }
   0xd   : > { %s4362_s19 = smov (!%p522_p3, %s3211_s19), 1  ;;  %3589 = vmatpush3.bf16.msra.mxu0 %v3586_v7  ;;  %v556_v55 = vsel %vm554_vm9, 0.0, %v3867_v51 }
   0xe   : > { %s3984_s28 = sshll.u32 %s4362_s19, 4  ;;  %s529_s30 = scalar_lea.vmem %s4342_s1, %s4362_s19 }
   0xf   : > { %s3990_s16 = scalar_lea.vmem %s4341_s0, %s3984_s28  ;;  %3423 = vmatmul.mubr.msk.f32.vlgmr.msra.gmra.mrb[0].mxu1 %vm571_vm1, %v681_v12  ;;  %v557_v46 = vld [vmem:[%s529_s30] sm:$0x1]  ;;  %s3875_s30 = smov 48  }
  0x10   : > { %v546_v8 = vld [vmem:[%s3990_s16] sm:$0xff]  ;;  %v547_v9 = vld [vmem:[%s3990_s16 + $0x8] sm:$0x1]  ;;  %vm558_vm7 = vcmp.gt.f32.partialorder %v557_v46, 0.5  ;;  %s545_s29 = scalar_lea.vmem %s4356_s15, %s4362_s19 }
  0x11   : > { %v569_v10 = vmul.f32 %v546_v8, %v546_v8  ;;  %v570_v11 = vmul.f32 %v547_v9, %v547_v9  ;;  %v559_v52 = vsel %vm558_vm7, 0.0, %v3867_v51 }
  0x12   : > { %v564_v53 = vrot.slane %v559_v52, %v563_v49 }
  0x13   : > { %v572_v13 = vsel %vm571_vm1, %v569_v10, 0.0  ;;  %v576_v14 = vsel %vm575_vm2, %v570_v11, 0.0 }
  0x14   : > { %573 = vadd.xlane.f32.xlu0 %v572_v13  ;;  %v4060_v57 = vadd.f32 %v564_v53, %v555_v54  ;;  %v4062_v61 = vadd.f32 %v564_v53, %v556_v55 }
  0x18   : > { %577 = vadd.xlane.f32.xlu0 %v576_v14 }
  0xa1   : > { %v574_v15 = vpop.xlane.xlu0 %573 }
  0xa2   : > { %v580_v16 = vmul.f32 0.03125, %v574_v15 }
  0xa4   : > { %v582_v17 = vadd.f32 1e-06, %v580_v16 }
  0xa5   : > { %v578_v18 = vpop.xlane.xlu0 %577 }
  0xa6   : > { %3760 = vrsqrt.f32 %v582_v17  ;;  %v581_v19 = vmul.f32 0.03125, %v578_v18 }
  0xa8   : > { %v583_v20 = vadd.f32 1e-06, %v581_v19 }
  0xaa   : > { %3762 = vrsqrt.f32 %v583_v20 }
  0xb0   : > { %v3761_v21 = vpop.eup %3760 }
  0xb1   : > { %v586_v23 = vmul.f32 %v3761_v21, %v546_v8 }
  0xb3   : > { %v594_v24 = vmul.f32 %v3222_v22, %v586_v23 }
  0xb4   : > { %v3763_v25 = vpop.eup %3762 }
  0xb5   : > { %v587_v26 = vmul.f32 %v3763_v25, %v547_v9  ;;  %3411 = vmatprep.mubr.msk.f32.mxu0 %vm571_vm1, %v594_v24  ;;  %v760_v24 = vld [vmem:[%s4346_s5 + $0x18] sm:$0xff] }
  0xb7   : > { %v595_v27 = vmul.f32 %v3222_v22, %v587_v26 }
  0xb9   : > { %3412 = vmatmul.mubr.msk.f32.vlgmr.msra.gmra.mrb[0].mxu0 %vm571_vm1, %v595_v27 }
  0xe2   : > { %v4005_v28 = vpop.f32.mrb[0].mxu1 }
  0xe3   : > { %880 = vrot.lane.b32.xlu1 %v4005_v28, %s3863_s23  ;;  %v3424_v29 = vpop.f32.mrb[1].mxu1 }
 0x155   : > { %v881_v30 = vpop.permute.xlu1 %880 }
 0x156   : > { %3432 = vmatprep.subr.msk.mxu1 %vm767_vm3, %v881_v30 }
 0x157   : > { %3433 = vmatpush3.xpose.msk.msra.mxu1 %vm767_vm3, %v881_v30 }
 0x18c   : > { %v4010_v31 = vpop.f32.mrb[0].mxu0 }
 0x18d   : > { %v4012_v32 = vpop.f32.mrb[1].mxu0 }
 0x18e   : > { %3429 = vmatprep.mubr.msk.f32.mxu0 %vm767_vm3, %v4012_v32  ;;  %3434 = vmatprep.mubr.msk.f32.mxu1 %vm767_vm3, %v4012_v32  ;;  %v4020_v33 = vpack.i.bf16 %v4010_v31, %v4012_v32 }
 0x18f   : > { %3435 = vmatmul.mubr.msk.f32.vlgmr.msra.gmra.mrb[2].mxu1 %vm767_vm3, %v4010_v31 }
 0x190   : > { %3715 = vrot.lane.b32.xlu1 %v4020_v33, %s3863_s23  ;;  %s3873_s23 = smov 112  }
 0x202   : > { %v3716_v34 = vpop.permute.xlu1 %3715 }
 0x203   : > { %v3718_v35 = vunpack.i.h.bf16 %v3716_v34  ;;  %v3717_v36 = vunpack.i.l.bf16 %v3716_v34 }
 0x205   : > { %v3596_v38 = vpack.c.bf16 %v3718_v35, %v3717_v36 }
 0x207   : > { %3598 = vmatprep.subr.msk.bf16.mxu0 %vm4027_vm4, %v3596_v38 }
 0x208   : > { %3601 = vmatpush3.bf16.xpose.msk.msra.mxu0 %vm4027_vm4, %v3596_v38 }
 0x20f   : > { %3430 = vmatmul.mubr.msk.f32.vlgmr.msra.gmra.mrb[2].mxu0 %vm767_vm3, %v4010_v31 }
 0x262   : > { %v3436_v39 = vpop.f32.mrb[2].mxu1 }
 0x263   : > { %v960_v40 = vmul.f32 0.35355338, %v3436_v39  ;;  %v950_v41 = vpop.f32.mrb[3].mxu1 }
 0x264   : > { %v959_v42 = vmul.f32 0.35355338, %v950_v41 }
 0x265   : > { %v966_v43 = vsel %vm965_vm5, %v960_v40, -inf }
 0x266   : > { %967 = vmax.xlane.f32.xlu1 %v966_v43  ;;  %v962_v44 = vsel %vm961_vm6, %v959_v42, -inf }
 0x267   : > { %963 = vmax.xlane.f32.xlu0 %v962_v44 }
 0x277   : > { %3720 = vrot.lane.b32.xlu1 %v4020_v33, %s3864_s24 }
 0x27b   : > { %1288 = vrot.lane.b32.xlu1 %v4005_v28, %s3865_s25 }
 0x27f   : > { %1173 = vrot.lane.b32.xlu1 %v4010_v31, %s3866_s26 }
 0x2e2   : > { %v3431_v56 = vpop.f32.mrb[2].mxu0 }
 0x2e3   : > { %v842_v58 = vpop.f32.mrb[3].mxu0  ;;  %v852_v59 = vmul.f32 0.35355338, %v3431_v56 }
 0x2e4   : > { %v851_v60 = vmul.f32 0.35355338, %v842_v58 }
 0x2e5   : > { %v854_v0 = vadd.f32 %v852_v59, %v4062_v61 }
 0x2e6   : > { %v853_v62 = vadd.f32 %v851_v60, %v4060_v57 }
 0x2e7   : > { %v860_v1 = vsel %vm859_vm11, %v854_v0, -inf }
 0x2e8   : > { %v856_v63 = vsel %vm855_vm10, %v853_v62, -inf }
 0x2e9   : > { %857 = vmax.xlane.f32.xlu0 %v856_v63 }
 0x2ed   : > { %861 = vmax.xlane.f32.xlu0 %v860_v1 }
 0x2f3   : > { %v968_v2 = vpop.xlane.xlu1 %967 }
 0x2f4   : > { %v970_v5 = vsub.f32 %v960_v40, %v968_v2  ;;  %v964_v7 = vpop.xlane.xlu0 %963 }
 0x2f5   : > { %v969_v9 = vsub.f32 %v959_v42, %v964_v7 }
 0x2f6   : > { %v973_v8 = vmul.f32 1.442695, %v970_v5 }
 0x2f7   : > { %v3721_v3 = vpop.permute.xlu1 %3720  ;;  %v971_v10 = vmul.f32 1.442695, %v969_v9 }
 0x2f8   : > { %3764 = vpow2.f32 %v973_v8  ;;  %v3723_v17 = vunpack.i.h.bf16 %v3721_v3  ;;  %v3722_v19 = vunpack.i.l.bf16 %v3721_v3 }
 0x2f9   : > { %3766 = vpow2.f32 %v971_v10 }
 0x2fa   : > { %v3602_v25 = vpack.c.bf16 %v3723_v17, %v3722_v19 }
 0x2fb   : > { %v1289_v4 = vpop.permute.xlu1 %1288 }
 0x2fc   : > { %3456 = vmatprep.subr.msk.mxu0 %vm767_vm3, %v1289_v4 }
 0x2fd   : > { %3457 = vmatpush3.xpose.msk.msra.mxu0 %vm767_vm3, %v1289_v4 }
 0x2ff   : > { %v1174_v51 = vpop.permute.xlu1 %1173 }
 0x302   : > { %v3765_v11 = vpop.eup %3764 }
 0x303   : > { %985 = vrot.lane.b32.xlu0 %v4005_v28, %s3864_s24  ;;  %v978_v12 = vsel %vm965_vm5, %v3765_v11, 0.0  ;;  %v3767_v13 = vpop.eup %3766 }
 0x304   : > { %v975_v14 = vsel %vm961_vm6, %v3767_v13, 0.0 }
 0x322   : > { %979 = vadd.xlane.f32.xlu0 %v978_v12 }
 0x326   : > { %976 = vadd.xlane.f32.xlu0 %v975_v14  ;;  %v3870_v14 = vmov 0  }
 0x327   : > { %3759 = vset.pattern.permute.xlu0 %v3870_v14 }
 0x376   : > { %v858_v15 = vpop.xlane.xlu0 %857 }
 0x377   : > { %v863_v16 = vsub.f32 %v853_v62, %v858_v15 }
 0x379   : > { %v865_v21 = vmul.f32 1.442695, %v863_v16 }
 0x37a   : > { %v862_v18 = vpop.xlane.xlu0 %861 }
 0x37b   : > { %v864_v20 = vsub.f32 %v854_v0, %v862_v18 }
 0x37d   : > { %v867_v22 = vmul.f32 1.442695, %v864_v20 }
 0x37e   : > { %v986_v23 = vpop.permute.xlu0 %985 }
 0x37f   : > { %3768 = vpow2.f32 %v867_v22  ;;  %3437 = vmatprep.subr.msk.mxu1 %vm993_vm13, %v986_v23 }
 0x380   : > { %3438 = vmatpush3.msk.msra.mxu1 %vm993_vm13, %v986_v23  ;;  %3770 = vpow2.f32 %v865_v21 }
 0x381   : > { %3604 = vmatprep.subr.msk.bf16.mxu1 %vm4074_vm15, %v3602_v25 }
 0x389   : > { %v3769_v26 = vpop.eup %3768 }
 0x38a   : > { %v872_v27 = vsel %vm859_vm11, %v3769_v26, 0.0  ;;  %v3771_v29 = vpop.eup %3770 }
 0x38b   : > { %873 = vadd.xlane.f32.xlu0 %v872_v27  ;;  %v869_v30 = vsel %vm855_vm10, %v3771_v29, 0.0 }
 0x38f   : > { %870 = vadd.xlane.f32.xlu0 %v869_v30 }
 0x3a5   : > { %3725 = vrot.lane.b32.xlu0 %v4020_v33, %s3865_s25 }
 0x3a9   : > { %1171 = vrot.lane.b32.xlu0 %v4012_v32, %s3866_s26 }
 0x3af   : > { %v980_v34 = vpop.xlane.xlu0 %979 }
 0x3b0   : > { %3772 = vrcp.f32 %v980_v34 }
 0x3b3   : > { %v977_v35 = vpop.xlane.xlu0 %976 }
 0x3b4   : > { %3774 = vrcp.f32 %v977_v35 }
 0x3ba   : > { %v3773_v36 = vpop.eup %3772 }
 0x3bb   : > { %v984_v40 = vmul.f32 %v3773_v36, %v3765_v11 }
 0x3be   : > { %v3775_v38 = vpop.eup %3774 }
 0x3bf   : > { %v983_v39 = vmul.f32 %v3775_v38, %v3767_v13  ;;  %v3869_v13 = vmov 1  }
 0x3c0   : > { %3734 = vset.pattern.permute.xlu1 %v3869_v13 }
 0x3c1   : > { %3439 = vmatprep.mubr.msk.f32.mxu1 %vm961_vm6, %v983_v39 }
 0x3c2   : > { %3440 = vmatmul.mubr.msk.f32.vlgmr.msra.gmra.mrb[4].mxu1 %vm961_vm6, %v984_v40 }
 0x3c3   : > { %3607 = vmatpush3.bf16.msk.msra.mxu1 %vm4074_vm15, %v3602_v25 }
 0x418   : > { %v874_v41 = vpop.xlane.xlu0 %873 }
 0x419   : > { %3776 = vrcp.f32 %v874_v41  ;;  %v755_v41 = vld [vmem:[%s4348_s7] sm:$0x1] }
 0x41c   : > { %v871_v42 = vpop.xlane.xlu0 %870 }
 0x41d   : > { %3778 = vrcp.f32 %v871_v42 }
 0x420   : > { %v3726_v43 = vpop.permute.xlu0 %3725 }
 0x421   : > { %v3728_v44 = vunpack.i.h.bf16 %v3726_v43  ;;  %v3727_v45 = vunpack.i.l.bf16 %v3726_v43 }
 0x423   : > { %v3608_v46 = vpack.c.bf16 %v3728_v44, %v3727_v45  ;;  %v3777_v52 = vpop.eup %3776 }
 0x424   : > { %v1172_v50 = vpop.permute.xlu0 %1171  ;;  %v878_v55 = vmul.f32 %v3777_v52, %v3769_v26 }
 0x425   : > { %3610 = vmatprep.subr.msk.bf16.mxu1 %vm4027_vm4, %v3608_v46  ;;  %3458 = vmatprep.mubr.msk.f32.mxu0 %vm767_vm3, %v1172_v50 }
 0x426   : > { %3459 = vmatmul.mubr.msk.f32.vlgmr.msra.gmra.mrb[4].mxu0 %vm767_vm3, %v1174_v51 }
 0x427   : > { %v3779_v53 = vpop.eup %3778 }
 0x428   : > { %v877_v54 = vmul.f32 %v3779_v53, %v3771_v29 }
 0x42a   : > { %3446 = vmatprep.mubr.msk.f32.mxu1 %vm855_vm10, %v877_v54 }
 0x42b   : > { %3447 = vmatmul.mubr.msk.f32.vlgmr.msra.gmra.mrb[6].mxu1 %vm855_vm10, %v878_v55 }
 0x42c   : > { %3613 = vmatpush3.bf16.xpose.msk.msra.mxu1 %vm4027_vm4, %v3608_v46  ;;  %3453 = vmatprep.mubr.msk.f32.mxu1 %vm767_vm3, %v1172_v50 }
 0x433   : > { %3454 = vmatmul.mubr.msk.f32.vlgmr.msra.gmra.mrb[8].mxu1 %vm767_vm3, %v1174_v51 }
 0x495   : > { %v4102_v56 = vpop.f32.mrb[4].mxu1 }
 0x496   : > { %v4104_v58 = vpop.f32.mrb[5].mxu1 }
 0x4f9   : > { %v3460_v59 = vpop.f32.mrb[4].mxu0 }
 0x4fa   : > { %v1368_v60 = vmul.f32 0.35355338, %v3460_v59  ;;  %v1358_v62 = vpop.f32.mrb[5].mxu0 }
 0x4fb   : > { %v1367_v63 = vmul.f32 0.35355338, %v1358_v62 }
 0x4fc   : > { %v1372_v0 = vsel %vm965_vm5, %v1368_v60, -inf }
 0x4fd   : > { %1373 = vmax.xlane.f32.xlu1 %v1372_v0  ;;  %v1369_v1 = vsel %vm961_vm6, %v1367_v63, -inf }
 0x4fe   : > { %v4108_v2 = vpop.f32.mrb[6].mxu1  ;;  %1370 = vmax.xlane.f32.xlu0 %v1369_v1 }
 0x4ff   : > { %v4110_v3 = vpop.f32.mrb[7].mxu1 }
 0x506   : > { %v3455_v4 = vpop.f32.mrb[8].mxu1 }
 0x507   : > { %v1253_v5 = vpop.f32.mrb[9].mxu1  ;;  %v1263_v7 = vmul.f32 0.35355338, %v3455_v4 }
 0x508   : > { %v1262_v8 = vmul.f32 0.35355338, %v1253_v5 }
 0x509   : > { %v1265_v11 = vadd.f32 %v1263_v7, %v4062_v61 }
 0x50a   : > { %v1264_v9 = vadd.f32 %v1262_v8, %v4060_v57 }
 0x50b   : > { %v1269_v12 = vsel %vm859_vm11, %v1265_v11, -inf }
 0x50c   : > { %v1266_v10 = vsel %vm855_vm10, %v1264_v9, -inf }
 0x50d   : > { %1267 = vmax.xlane.f32.xlu0 %v1266_v10 }
 0x511   : > { %1270 = vmax.xlane.f32.xlu0 %v1269_v12 }
 0x58a   : > { %v1374_v15 = vpop.xlane.xlu1 %1373 }
 0x58b   : > { %v1376_v16 = vsub.f32 %v1368_v60, %v1374_v15  ;;  %v1371_v17 = vpop.xlane.xlu0 %1370 }
 0x58c   : > { %v1375_v18 = vsub.f32 %v1367_v63, %v1371_v17 }
 0x58d   : > { %v1379_v19 = vmul.f32 1.442695, %v1376_v16 }
 0x58e   : > { %v1377_v20 = vmul.f32 1.442695, %v1375_v18 }
 0x58f   : > { %3780 = vpow2.f32 %v1379_v19 }
 0x590   : > { %3782 = vpow2.f32 %v1377_v20 }
 0x599   : > { %v3781_v21 = vpop.eup %3780 }
 0x59a   : > { %v3783_v22 = vpop.eup %3782  ;;  %v1268_v23 = vpop.xlane.xlu0 %1267  ;;  %v1384_v25 = vsel %vm965_vm5, %v3781_v21, 0.0 }
 0x59b   : > { %v1272_v26 = vsub.f32 %v1264_v9, %v1268_v23  ;;  %1385 = vadd.xlane.f32.xlu1 %v1384_v25  ;;  %v1381_v27 = vsel %vm961_vm6, %v3783_v22, 0.0 }
 0x59c   : > { %1382 = vadd.xlane.f32.xlu0 %v1381_v27 }
 0x59d   : > { %v1274_v29 = vmul.f32 1.442695, %v1272_v26 }
 0x59e   : > { %v1271_v30 = vpop.xlane.xlu0 %1270 }
 0x59f   : > { %3784 = vpow2.f32 %v1274_v29  ;;  %v1273_v34 = vsub.f32 %v1265_v11, %v1271_v30 }
 0x5a1   : > { %v1276_v35 = vmul.f32 1.442695, %v1273_v34 }
 0x5a3   : > { %3786 = vpow2.f32 %v1276_v35 }
 0x5a4   : > { %3788 = vtanh.f32 %v755_v41 }
 0x5a9   : > { %v3785_v36 = vpop.eup %3784 }
 0x5aa   : > { %v1278_v38 = vsel %vm855_vm10, %v3785_v36, 0.0 }
 0x5ab   : > { %1279 = vadd.xlane.f32.xlu0 %v1278_v38 }
 0x5ad   : > { %v3787_v39 = vpop.eup %3786 }
 0x5ae   : > { %v1281_v40 = vsel %vm859_vm11, %v3787_v39, 0.0  ;;  %v3789_v42 = vpop.eup %3788 }
 0x5af   : > { %1282 = vadd.xlane.f32.xlu1 %v1281_v40  ;;  %v4127_v43 = vrot.slane %v3789_v42, %v563_v49 }
 0x5c0   : > { %1391 = vrot.lane.b32.xlu1 %v4005_v28, %s3871_s21 }
 0x5c1   : > { %3730 = vrot.lane.b32.xlu0 %v4020_v33, %s3871_s21  ;;  %s539_s21 = scalar_lea.vmem %s4354_s13, %s3984_s28 }
 0x5c4   : > { %1477 = vperm.xlu1 %3734, %v4127_v43  }
 0x5c5   : > { %3737 = vrot.lane.b32.xlu0 %v4020_v33, %s3872_s22 }
 0x5c8   : > { %3735 = vset.pattern.permute.xlu1 %v3870_v14 }
 0x5c9   : > { %1732 = vrot.lane.b32.xlu0 %v4012_v32, %s3873_s23  ;;  %1077 = vperm.xlu1 %3735, %v4127_v43  }
 0x5cd   : > { %1849 = vrot.lane.b32.xlu1 %v4005_v28, %s3872_s22 }
 0x5d1   : > { %1734 = vrot.lane.b32.xlu1 %v4010_v31, %s3873_s23  ;;  %s3878_s23 = smov 40  }
 0x628   : > { %v1386_v49 = vpop.xlane.xlu1 %1385 }
 0x629   : > { %v1383_v47 = vpop.xlane.xlu0 %1382 }
 0x62a   : > { %3790 = vrcp.f32 %v1383_v47 }
 0x62b   : > { %3792 = vrcp.f32 %v1386_v49 }
 0x634   : > { %v3791_v44 = vpop.eup %3790 }
 0x635   : > { %v1389_v45 = vmul.f32 %v3791_v44, %v3783_v22  ;;  %v3793_v54 = vpop.eup %3792 }
 0x636   : > { %v1390_v62 = vmul.f32 %v3793_v54, %v3781_v21 }
 0x637   : > { %3463 = vmatprep.mubr.msk.f32.mxu0 %vm961_vm6, %v1389_v45 }
 0x638   : > { %v1280_v46 = vpop.xlane.xlu0 %1279 }
 0x639   : > { %3794 = vrcp.f32 %v1280_v46 }
 0x63c   : > { %v1283_v50 = vpop.xlane.xlu1 %1282  ;;  %v3731_v51 = vpop.permute.xlu0 %3730 }
 0x63d   : > { %3796 = vrcp.f32 %v1283_v50  ;;  %v3733_v52 = vunpack.i.h.bf16 %v3731_v51  ;;  %v3732_v53 = vunpack.i.l.bf16 %v3731_v51 }
 0x63f   : > { %v3614_v55 = vpack.c.bf16 %v3733_v52, %v3732_v53  ;;  %v3874_v52 = vmov 2  }
 0x640   : > { %v1392_v59 = vpop.permute.xlu1 %1391  ;;  %v3738_v60 = vpop.permute.xlu0 %3737  ;;  %3746 = vset.pattern.permute.xlu1 %v3874_v52 }
 0x641   : > { %v3740_v63 = vunpack.i.h.bf16 %v3738_v60  ;;  %v3739_v0 = vunpack.i.l.bf16 %v3738_v60  ;;  %3461 = vmatprep.subr.msk.mxu0 %vm993_vm13, %v1392_v59  ;;  %3616 = vmatprep.subr.msk.bf16.mxu1 %vm4074_vm15, %v3614_v55 }
 0x642   : > { %3462 = vmatpush3.msk.msra.mxu0 %vm993_vm13, %v1392_v59  ;;  %3619 = vmatpush3.bf16.msk.msra.mxu1 %vm4074_vm15, %v3614_v55 }
 0x643   : > { %v3795_v1 = vpop.eup %3794  ;;  %v3620_v4 = vpack.c.bf16 %v3740_v63, %v3739_v0  ;;  %3464 = vmatmul.mubr.msk.f32.vlgmr.msra.gmra.mrb[6].mxu0 %vm961_vm6, %v1390_v62 }
 0x644   : > { %v1478_v5 = vpop.permute.xlu1 %1477  ;;  %v1286_v7 = vmul.f32 %v3795_v1, %v3785_v36  ;;  %v1733_v13 = vpop.permute.xlu0 %1732 }
 0x645   : > { %3622 = vmatprep.subr.msk.bf16.mxu1 %vm4027_vm4, %v3620_v4 }
 0x646   : > { %3470 = vmatprep.mubr.msk.f32.mxu1 %vm855_vm10, %v1286_v7 }
 0x647   : > { %v3797_v8 = vpop.eup %3796 }
 0x648   : > { %v1287_v9 = vmul.f32 %v3797_v8, %v3787_v39  ;;  %v1078_v10 = vpop.permute.xlu1 %1077 }
 0x649   : > { %v1080_v11 = vmul.f32 %v1078_v10, %v4104_v58  ;;  %v1081_v12 = vmul.f32 %v4102_v56, %v1078_v10  ;;  %v758_v56 = vld [vmem:[%s4346_s5 + $0x8] sm:$0xff]  ;;  %v757_v58 = vld [vmem:[%s4346_s5] sm:$0xff] }
 0x64a   : > { %3471 = vmatmul.mubr.msk.f32.vlgmr.msra.gmra.mrb[10].mxu1 %vm855_vm10, %v1287_v9  ;;  %3473 = vmatprep.subr.mxu0 %v758_v56 }
 0x64b   : > { %v1163_v15 = vadd.f32 %v4110_v3, %v1080_v11  ;;  %v1168_v16 = vadd.f32 %v4108_v2, %v1081_v12  ;;  %3625 = vmatpush3.bf16.xpose.msk.msra.mxu1 %vm4027_vm4, %v3620_v4  ;;  %3487 = vmatprep.mubr.msk.f32.mxu1 %vm767_vm3, %v1733_v13 }
 0x64c   : > { %v1850_v17 = vpop.permute.xlu1 %1849  ;;  %3474 = vmatpush3.msra.mxu0 %v758_v56 }
 0x64d   : > { %3478 = vmatprep.subr.mxu0 %v757_v58 }
 0x650   : > { %v1735_v18 = vpop.permute.xlu1 %1734 }
 0x652   : > { %3488 = vmatmul.mubr.msk.f32.vlgmr.msra.gmra.mrb[12].mxu1 %vm767_vm3, %v1735_v18 }
 0x716   : > { %v3465_v2 = vpop.f32.mrb[6].mxu0 }
 0x717   : > { %v1467_v3 = vpop.f32.mrb[7].mxu0  ;;  %v1481_v19 = vmul.f32 %v3465_v2, %v1478_v5 }
 0x718   : > { %v1480_v20 = vmul.f32 %v1478_v5, %v1467_v3  ;;  %v759_v3 = vld [vmem:[%s4346_s5 + $0x10] sm:$0xff] }
 0x71d   : > { %v3472_v21 = vpop.f32.mrb[10].mxu1 }
 0x71e   : > { %v1567_v22 = vadd.f32 %v3472_v21, %v1481_v19  ;;  %v1561_v23 = vpop.f32.mrb[11].mxu1 }
 0x71f   : > { %v1562_v25 = vadd.f32 %v1561_v23, %v1480_v20 }
 0x721   : > { %3475 = vmatprep.mubr.msk.f32.mxu0 %vm767_vm3, %v1562_v25 }
 0x722   : > { %3476 = vmatmul.mubr.msk.f32.vlgmr.msra.gmra.mrb[8].mxu0 %vm767_vm3, %v1567_v22 }
 0x723   : > { %3479 = vmatpush3.msra.mxu0 %v757_v58  ;;  %3480 = vmatprep.mubr.msk.f32.mxu0 %vm767_vm3, %v1163_v15 }
 0x724   : > { %3490 = vmatprep.subr.msk.mxu0 %vm767_vm3, %v1850_v17 }
 0x725   : > { %v3489_v26 = vpop.f32.mrb[12].mxu1 }
 0x726   : > { %v1814_v27 = vpop.f32.mrb[13].mxu1  ;;  %v1824_v39 = vmul.f32 0.35355338, %v3489_v26 }
 0x727   : > { %v1823_v29 = vmul.f32 0.35355338, %v1814_v27 }
 0x728   : > { %v1826_v45 = vadd.f32 %v1824_v39, %v4062_v61 }
 0x729   : > { %v1825_v30 = vadd.f32 %v1823_v29, %v4060_v57 }
 0x72a   : > { %3481 = vmatmul.mubr.msk.f32.vlgmr.msra.gmra.mrb[8].mxu0 %vm767_vm3, %v1168_v16  ;;  %v1830_v46 = vsel %vm859_vm11, %v1826_v45, -inf }
 0x72b   : > { %3491 = vmatpush3.xpose.msk.msra.mxu0 %vm767_vm3, %v1850_v17  ;;  %3492 = vmatprep.mubr.msk.f32.mxu0 %vm767_vm3, %v1733_v13  ;;  %v1827_v34 = vsel %vm855_vm10, %v1825_v30, -inf }
 0x72c   : > { %1828 = vmax.xlane.f32.xlu0 %v1827_v34 }
 0x72e   : > { %3493 = vmatmul.mubr.msk.f32.vlgmr.msra.gmra.mrb[10].mxu0 %vm767_vm3, %v1735_v18 }
 0x7b9   : > { %v1829_v35 = vpop.xlane.xlu0 %1828 }
 0x7ba   : > { %v1833_v36 = vsub.f32 %v1825_v30, %v1829_v35 }
 0x7bc   : > { %v1835_v38 = vmul.f32 1.442695, %v1833_v36 }
 0x7be   : > { %3798 = vpow2.f32 %v1835_v38 }
 0x7c8   : > { %v3799_v50 = vpop.eup %3798 }
 0x7c9   : > { %v1839_v51 = vsel %vm855_vm10, %v3799_v50, 0.0 }
 0x801   : > { %v3494_v40 = vpop.f32.mrb[10].mxu0 }
 0x802   : > { %v1929_v41 = vmul.f32 0.35355338, %v3494_v40  ;;  %v1919_v42 = vpop.f32.mrb[11].mxu0 }
 0x803   : > { %v1928_v47 = vmul.f32 0.35355338, %v1919_v42 }
 0x804   : > { %v1933_v49 = vsel %vm965_vm5, %v1929_v41, -inf }
 0x805   : > { %1934 = vmax.xlane.f32.xlu1 %v1933_v49  ;;  %v1930_v44 = vsel %vm961_vm6, %v1928_v47, -inf }
 0x806   : > { %1931 = vmax.xlane.f32.xlu0 %v1930_v44 }
 0x80a   : > { %1831 = vmax.xlane.f32.xlu0 %v1830_v46 }
 0x80e   : > { %1840 = vadd.xlane.f32.xlu0 %v1839_v51 }
 0x892   : > { %v1935_v53 = vpop.xlane.xlu1 %1934 }
 0x893   : > { %v1932_v54 = vpop.xlane.xlu0 %1931  ;;  %v1937_v59 = vsub.f32 %v1929_v41, %v1935_v53 }
 0x894   : > { %v1936_v55 = vsub.f32 %v1928_v47, %v1932_v54 }
 0x895   : > { %v1940_v0 = vmul.f32 1.442695, %v1937_v59 }
 0x896   : > { %v1938_v60 = vmul.f32 1.442695, %v1936_v55 }
 0x897   : > { %v1832_v62 = vpop.xlane.xlu0 %1831 }
 0x898   : > { %3800 = vpow2.f32 %v1938_v60  ;;  %v1834_v63 = vsub.f32 %v1826_v45, %v1832_v62 }
 0x89a   : > { %v1837_v1 = vmul.f32 1.442695, %v1834_v63 }
 0x89b   : > { %v1841_v4 = vpop.xlane.xlu0 %1840 }
 0x89c   : > { %3802 = vpow2.f32 %v1837_v1 }
 0x89d   : > { %3804 = vrcp.f32 %v1841_v4 }
 0x89e   : > { %3806 = vpow2.f32 %v1940_v0 }
 0x8a2   : > { %v3801_v5 = vpop.eup %3800 }
 0x8a3   : > { %v1942_v7 = vsel %vm961_vm6, %v3801_v5, 0.0 }
 0x8a4   : > { %1943 = vadd.xlane.f32.xlu0 %v1942_v7 }
 0x8a6   : > { %v3803_v8 = vpop.eup %3802 }
 0x8a7   : > { %v3805_v9 = vpop.eup %3804  ;;  %v1842_v10 = vsel %vm859_vm11, %v3803_v8, 0.0 }
 0x8a8   : > { %v3807_v11 = vpop.eup %3806  ;;  %1843 = vadd.xlane.f32.xlu1 %v1842_v10  ;;  %v1847_v12 = vmul.f32 %v3805_v9, %v3799_v50 }
 0x8a9   : > { %v1945_v13 = vsel %vm965_vm5, %v3807_v11, 0.0 }
 0x8aa   : > { %3504 = vmatprep.mubr.msk.f32.mxu0 %vm855_vm10, %v1847_v12 }
 0x8ac   : > { %1946 = vadd.xlane.f32.xlu1 %v1945_v13 }
 0x8ba   : > { %3742 = vrot.lane.b32.xlu0 %v4020_v33, %s3875_s30 }
 0x8bd   : > { %1952 = vrot.lane.b32.xlu1 %v4005_v28, %s3875_s30 }
 0x8be   : > { %2331 = vrot.lane.b32.xlu0 %v4005_v28, %s3876_s17 }
 0x8c1   : > { %2038 = vperm.xlu1 %3746, %v4127_v43  }
 0x8c2   : > { %2216 = vrot.lane.b32.xlu0 %v4010_v31, %s3877_s20 }
 0x8c5   : > { %3748 = vrot.lane.b32.xlu1 %v4020_v33, %s3876_s17 }
 0x8c9   : > { %2214 = vrot.lane.b32.xlu1 %v4012_v32, %s3877_s20  ;;  %s534_s20 = scalar_lea.vmem %s4343_s2, %s3984_s28 }
 0x931   : > { %v1944_v15 = vpop.xlane.xlu0 %1943 }
 0x932   : > { %3808 = vrcp.f32 %v1944_v15 }
 0x935   : > { %v1844_v16 = vpop.xlane.xlu1 %1843  ;;  %v3743_v17 = vpop.permute.xlu0 %3742 }
 0x936   : > { %3810 = vrcp.f32 %v1844_v16  ;;  %v3745_v18 = vunpack.i.h.bf16 %v3743_v17  ;;  %v3744_v56 = vunpack.i.l.bf16 %v3743_v17 }
 0x938   : > { %v3626_v58 = vpack.c.bf16 %v3745_v18, %v3744_v56 }
 0x939   : > { %v1947_v2 = vpop.xlane.xlu1 %1946  ;;  %v2332_v25 = vpop.permute.xlu0 %2331 }
 0x93a   : > { %3812 = vrcp.f32 %v1947_v2  ;;  %3628 = vmatprep.subr.msk.bf16.mxu0 %vm4074_vm15, %v3626_v58 }
 0x93b   : > { %3631 = vmatpush3.bf16.msk.msra.mxu0 %vm4074_vm15, %v3626_v58 }
 0x93c   : > { %v3809_v31 = vpop.eup %3808  ;;  %3507 = vmatprep.subr.mxu0 %v759_v3 }
 0x93d   : > { %v1953_v32 = vpop.permute.xlu1 %1952  ;;  %v1950_v19 = vmul.f32 %v3809_v31, %v3801_v5  ;;  %v2217_v36 = vpop.permute.xlu0 %2216  ;;  %v3879_v31 = vmov 3  }
 0x93e   : > { %3495 = vmatprep.subr.msk.mxu1 %vm993_vm13, %v1953_v32  ;;  %3757 = vset.pattern.permute.xlu1 %v3879_v31 }
 0x93f   : > { %3496 = vmatpush3.msk.msra.mxu1 %vm993_vm13, %v1953_v32  ;;  %3497 = vmatprep.mubr.msk.f32.mxu1 %vm961_vm6, %v1950_v19 }
 0x940   : > { %v3811_v20 = vpop.eup %3810 }
 0x941   : > { %v1848_v21 = vmul.f32 %v3811_v20, %v3803_v8  ;;  %v2039_v22 = vpop.permute.xlu1 %2038 }
 0x943   : > { %3505 = vmatmul.mubr.msk.f32.vlgmr.msra.gmra.mrb[12].mxu0 %vm855_vm10, %v1848_v21 }
 0x944   : > { %v3813_v23 = vpop.eup %3812  ;;  %3508 = vmatpush3.msra.mxu0 %v759_v3 }
 0x945   : > { %v1951_v26 = vmul.f32 %v3813_v23, %v3807_v11  ;;  %3519 = vmatprep.subr.msk.mxu0 %vm767_vm3, %v2332_v25  ;;  %v3749_v27 = vpop.permute.xlu1 %3748 }
 0x946   : > { %v3751_v29 = vunpack.i.h.bf16 %v3749_v27  ;;  %v3750_v30 = vunpack.i.l.bf16 %v3749_v27 }
 0x947   : > { %3498 = vmatmul.mubr.msk.f32.vlgmr.msra.gmra.mrb[14].mxu1 %vm961_vm6, %v1951_v26 }
 0x948   : > { %v3632_v34 = vpack.c.bf16 %v3751_v29, %v3750_v30 }
 0x949   : > { %v2215_v35 = vpop.permute.xlu1 %2214 }
 0x94a   : > { %3634 = vmatprep.subr.msk.bf16.mxu1 %vm4027_vm4, %v3632_v34  ;;  %3516 = vmatprep.mubr.msk.f32.mxu1 %vm767_vm3, %v2215_v35 }
 0x94b   : > { %3637 = vmatpush3.bf16.xpose.msk.msra.mxu1 %vm4027_vm4, %v3632_v34  ;;  %vm3071_vm4 = vcmask 0  }
 0x952   : > { %3517 = vmatmul.mubr.msk.f32.vlgmr.msra.gmra.mrb[16].mxu1 %vm767_vm3, %v2217_v36 }
 0xa16   : > { %v3506_v38 = vpop.f32.mrb[12].mxu0 }
 0xa17   : > { %v2122_v39 = vpop.f32.mrb[13].mxu0 }
 0xa1a   : > { %v3499_v40 = vpop.f32.mrb[14].mxu1 }
 0xa1b   : > { %v2042_v41 = vmul.f32 %v3499_v40, %v2039_v22  ;;  %v2028_v42 = vpop.f32.mrb[15].mxu1 }
 0xa1c   : > { %v2041_v47 = vmul.f32 %v2039_v22, %v2028_v42 }
 0xa1d   : > { %v2128_v49 = vadd.f32 %v3506_v38, %v2042_v41 }
 0xa1e   : > { %v2123_v44 = vadd.f32 %v2122_v39, %v2041_v47 }
 0xa20   : > { %3509 = vmatprep.mubr.msk.f32.mxu0 %vm767_vm3, %v2123_v44 }
 0xa21   : > { %3510 = vmatmul.mubr.msk.f32.vlgmr.msra.gmra.mrb[8].mxu0 %vm767_vm3, %v2128_v49 }
 0xa22   : > { %3520 = vmatpush3.xpose.msk.msra.mxu0 %vm767_vm3, %v2332_v25  ;;  %3521 = vmatprep.mubr.msk.f32.mxu0 %vm767_vm3, %v2215_v35 }
 0xa25   : > { %v3518_v37 = vpop.f32.mrb[16].mxu1  ;;  %3522 = vmatmul.mubr.msk.f32.vlgmr.msra.gmra.mrb[14].mxu0 %vm767_vm3, %v2217_v36 }
 0xa26   : > { %v2296_v45 = vpop.f32.mrb[17].mxu1  ;;  %v2306_v54 = vmul.f32 0.35355338, %v3518_v37 }
 0xa27   : > { %v2305_v46 = vmul.f32 0.35355338, %v2296_v45  ;;  %v3850_v45 = vld [vmem:[%s3990_s16 + $0x8] sm:$0x1] }
 0xa28   : > { %v2308_v63 = vadd.f32 %v2306_v54, %v4062_v61 }
 0xa29   : > { %v2307_v59 = vadd.f32 %v2305_v46, %v4060_v57 }
 0xa2a   : > { %v2312_v0 = vsel %vm859_vm11, %v2308_v63, -inf }
 0xa2b   : > { %v2309_v62 = vsel %vm855_vm10, %v2307_v59, -inf }
 0xaf8   : > { %v3523_v50 = vpop.f32.mrb[14].mxu0 }
 0xaf9   : > { %v2411_v51 = vmul.f32 0.35355338, %v3523_v50  ;;  %v2401_v52 = vpop.f32.mrb[15].mxu0 }
 0xafa   : > { %v2410_v53 = vmul.f32 0.35355338, %v2401_v52 }
 0xafb   : > { %v2415_v55 = vsel %vm965_vm5, %v2411_v51, -inf }
 0xafc   : > { %2416 = vmax.xlane.f32.xlu0 %v2415_v55  ;;  %v2412_v60 = vsel %vm961_vm6, %v2410_v53, -inf }
 0xafd   : > { %2413 = vmax.xlane.f32.xlu1 %v2412_v60  ;;  %v2723_v60 = vld [vmem:[%s4350_s9] sm:$0xff] }
 0xb00   : > { %2310 = vmax.xlane.f32.xlu0 %v2309_v62  ;;  %v2724_v62 = vld [vmem:[%s4350_s9 + $0x8] sm:$0xff] }
 0xb04   : > { %2313 = vmax.xlane.f32.xlu0 %v2312_v0  ;;  %v3644_v0 = vpack.c.bf16 %v2724_v62, %v2723_v60 }
 0xb89   : > { %v2417_v1 = vpop.xlane.xlu0 %2416 }
 0xb8a   : > { %v2414_v4 = vpop.xlane.xlu1 %2413  ;;  %v2419_v9 = vsub.f32 %v2411_v51, %v2417_v1  ;;  %v3851_v51 = vld [vmem:[%s3990_s16] sm:$0xff]  ;;  %v2726_v1 = vld [vmem:[%s4350_s9 + $0x18] sm:$0xff] }
 0xb8b   : > { %v2418_v5 = vsub.f32 %v2410_v53, %v2414_v4 }
 0xb8c   : > { %v2422_v13 = vmul.f32 1.442695, %v2419_v9 }
 0xb8d   : > { %v2311_v7 = vpop.xlane.xlu0 %2310  ;;  %v2420_v10 = vmul.f32 1.442695, %v2418_v5 }
 0xb8e   : > { %v2315_v8 = vsub.f32 %v2307_v59, %v2311_v7 }
 0xb90   : > { %v2317_v57 = vmul.f32 1.442695, %v2315_v8 }
 0xb91   : > { %v2314_v11 = vpop.xlane.xlu0 %2313 }
 0xb92   : > { %3814 = vpow2.f32 %v2317_v57  ;;  %v2316_v12 = vsub.f32 %v2308_v63, %v2314_v11  ;;  %v2725_v63 = vld [vmem:[%s4350_s9 + $0x10] sm:$0xff] }
 0xb93   : > { %3816 = vpow2.f32 %v2420_v10  ;;  %v3648_v4 = vpack.c.bf16 %v2726_v1, %v2725_v63 }
 0xb94   : > { %v2319_v15 = vmul.f32 1.442695, %v2316_v12 }
 0xb96   : > { %3818 = vpow2.f32 %v2319_v15 }
 0xb97   : > { %3820 = vpow2.f32 %v2422_v13  ;;  %v3286_v13 = vld [vmem:[%s4349_s8] ss:$0 sm:$0xff] }
 0xb9c   : > { %v3815_v61 = vpop.eup %3814 }
 0xb9d   : > { %v2321_v16 = vsel %vm855_vm10, %v3815_v61, 0.0  ;;  %v3817_v17 = vpop.eup %3816 }
 0xb9e   : > { %2322 = vadd.xlane.f32.xlu1 %v2321_v16  ;;  %v2424_v58 = vsel %vm961_vm6, %v3817_v17, 0.0 }
 0xba0   : > { %v3819_v18 = vpop.eup %3818 }
 0xba1   : > { %v2324_v56 = vsel %vm859_vm11, %v3819_v18, 0.0  ;;  %v3821_v2 = vpop.eup %3820 }
 0xba2   : > { %2325 = vadd.xlane.f32.xlu0 %v2324_v56  ;;  %2425 = vadd.xlane.f32.xlu1 %v2424_v58  ;;  %v2427_v3 = vsel %vm965_vm5, %v3821_v2, 0.0  ;;  %v2833_v56 = vld [vmem:[%s4351_s10 + $0x8] sm:$0xff]  ;;  %v2834_v58 = vld [vmem:[%s4351_s10 + $0x10] sm:$0xff] }
 0xba6   : > { %2428 = vadd.xlane.f32.xlu0 %v2427_v3  ;;  %v2835_v3 = vld [vmem:[%s4351_s10 + $0x18] sm:$0xff] }
 0xba7   : > { %v3656_v31 = vpack.c.bf16 %v2835_v3, %v2834_v58 }
 0xbb3   : > { %3753 = vrot.lane.b32.xlu1 %v4020_v33, %s3878_s23 }
 0xbb7   : > { %2520 = vperm.xlu1 %3757, %v4127_v43  }
 0xbbb   : > { %3758 = vset.pattern.permute.xlu1 %v3870_v14 }
 0xbbc   : > { %2434 = vrot.lane.b32.xlu0 %v4005_v28, %s3878_s23  ;;  %s542_s23 = scalar_lea.vmem %s4355_s14, %s4362_s19 }
 0xc2b   : > { %v2323_v32 = vpop.xlane.xlu1 %2322 }
 0xc2c   : > { %3822 = vrcp.f32 %v2323_v32  ;;  %v2836_v32 = vld [vmem:[%s4351_s10 + $0x20] sm:$0xff] }
 0xc2f   : > { %v2326_v19 = vpop.xlane.xlu0 %2325  ;;  %v2426_v20 = vpop.xlane.xlu1 %2425 }
 0xc30   : > { %3824 = vrcp.f32 %v2326_v19  ;;  %v2837_v19 = vld [vmem:[%s4351_s10 + $0x28] sm:$0xff] }
 0xc31   : > { %3826 = vrcp.f32 %v2426_v20  ;;  %v3660_v20 = vpack.c.bf16 %v2837_v19, %v2836_v32 }
 0xc33   : > { %v2429_v21 = vpop.xlane.xlu0 %2428  ;;  %v3754_v22 = vpop.permute.xlu1 %3753 }
 0xc34   : > { %3828 = vrcp.f32 %v2429_v21  ;;  %v3756_v23 = vunpack.i.h.bf16 %v3754_v22  ;;  %v3755_v25 = vunpack.i.l.bf16 %v3754_v22  ;;  %v2838_v21 = vld [vmem:[%s4351_s10 + $0x30] sm:$0xff]  ;;  %v2839_v22 = vld [vmem:[%s4351_s10 + $0x38] sm:$0xff] }
 0xc36   : > { %v3823_v33 = vpop.eup %3822  ;;  %v3638_v26 = vpack.c.bf16 %v3756_v23, %v3755_v25  ;;  %v3664_v23 = vpack.c.bf16 %v2839_v22, %v2838_v21 }
 0xc37   : > { %v2435_v28 = vpop.permute.xlu0 %2434  ;;  %v2329_v27 = vmul.f32 %v3823_v33, %v3815_v61  ;;  %v2521_v39 = vpop.permute.xlu1 %2520 }
 0xc38   : > { %3524 = vmatprep.subr.msk.mxu1 %vm993_vm13, %v2435_v28  ;;  %3640 = vmatprep.subr.msk.bf16.mxu0 %vm4074_vm15, %v3638_v26 }
 0xc39   : > { %3525 = vmatpush3.msk.msra.mxu1 %vm993_vm13, %v2435_v28  ;;  %3643 = vmatpush3.bf16.msk.msra.mxu0 %vm4074_vm15, %v3638_v26 }
 0xc3a   : > { %v3825_v14 = vpop.eup %3824  ;;  %3533 = vmatprep.mubr.msk.f32.mxu0 %vm855_vm10, %v2329_v27  ;;  %3536 = vmatprep.subr.mxu0 %v760_v24 }
 0xc3b   : > { %v3827_v43 = vpop.eup %3826  ;;  %v2330_v29 = vmul.f32 %v3825_v14, %v3819_v18  ;;  %3645 = vmatprep.subr.bf16.mxu1 %v3644_v0  ;;  %v2832_v18 = vld [vmem:[%s4351_s10] sm:$0xff] }
 0xc3c   : > { %v2432_v30 = vmul.f32 %v3827_v43, %v3817_v17 }
 0xc3d   : > { %3534 = vmatmul.mubr.msk.f32.vlgmr.msra.gmra.mrb[16].mxu0 %vm855_vm10, %v2330_v29 }
 0xc3e   : > { %v3829_v34 = vpop.eup %3828  ;;  %3526 = vmatprep.mubr.msk.f32.mxu1 %vm961_vm6, %v2432_v30  ;;  %3537 = vmatpush3.msra.mxu0 %v760_v24 }
 0xc3f   : > { %v2433_v35 = vmul.f32 %v3829_v34, %v3821_v2  ;;  %v3652_v2 = vpack.c.bf16 %v2833_v56, %v2832_v18 }
 0xc41   : > { %3527 = vmatmul.mubr.msk.f32.vlgmr.msra.gmra.mrb[18].mxu1 %vm961_vm6, %v2433_v35  ;;  %3653 = vmatprep.subr.bf16.mxu0 %v3652_v2 }
 0xc42   : > { %3647 = vmatpush3.bf16.msra.mxu1 %v3644_v0 }
 0xc43   : > { %3649 = vmatprep.subr.bf16.mxu1 %v3648_v4 }
 0xc46   : > { %3651 = vmatpush3.bf16.msra.mxu1 %v3648_v4 }
 0xd10   : > { %v3535_v36 = vpop.f32.mrb[16].mxu0 }
 0xd11   : > { %v2604_v38 = vpop.f32.mrb[17].mxu0 }
 0xd14   : > { %v3528_v40 = vpop.f32.mrb[18].mxu1 }
 0xd15   : > { %v2524_v41 = vmul.f32 %v3528_v40, %v2521_v39  ;;  %v2510_v42 = vpop.f32.mrb[19].mxu1 }
 0xd16   : > { %v2523_v47 = vmul.f32 %v2521_v39, %v2510_v42 }
 0xd17   : > { %v2610_v49 = vadd.f32 %v3535_v36, %v2524_v41 }
 0xd18   : > { %v2605_v44 = vadd.f32 %v2604_v38, %v2523_v47 }
 0xd1a   : > { %3538 = vmatprep.mubr.msk.f32.mxu0 %vm767_vm3, %v2605_v44 }
 0xd1b   : > { %3539 = vmatmul.mubr.msk.f32.vlgmr.msra.gmra.mrb[8].mxu0 %vm767_vm3, %v2610_v49  ;;  %vm3059_vm3 = vcmask 7168  }
 0xd1c   : > { %3655 = vmatpush3.bf16.msra.mxu0 %v3652_v2 }
 0xd1d   : > { %3657 = vmatprep.subr.bf16.mxu0 %v3656_v31 }
 0xd20   : > { %3659 = vmatpush3.bf16.msra.mxu0 %v3656_v31 }
 0xd21   : > { %3661 = vmatprep.subr.bf16.mxu0 %v3660_v20 }
 0xd24   : > { %3663 = vmatpush3.bf16.msra.mxu0 %v3660_v20 }
 0xd25   : > { %3665 = vmatprep.subr.bf16.mxu0 %v3664_v23 }
 0xd28   : > { %3667 = vmatpush3.bf16.msra.mxu0 %v3664_v23 }
 0xdee   : > { %v3540_v37 = vpop.f32.mrb[8].mxu0 }
 0xdef   : > { %v4243_v46 = vadd.f32 %v3850_v45, %v3540_v37  ;;  %v2685_v50 = vpop.f32.mrb[9].mxu0 }
 0xdf0   : > { %v4246_v52 = vadd.f32 %v3851_v51, %v2685_v50  ;;  %v3036_v51 = vld [vmem:[%s534_s20 + $0x1] sm:$0xff] }
 0xdf1   : > { %v2700_v53 = vmul.f32 %v4243_v46, %v4243_v46 }
 0xdf2   : > { %v2699_v54 = vmul.f32 %v4246_v52, %v4246_v52 }
 0xdf3   : > { %v2704_v55 = vsel %vm575_vm2, %v2700_v53, 0.0  ;;  %v2951_v53 = vld [vmem:[%s4353_s12 + $0x10] sm:$0xff] }
 0xdf4   : > { %2705 = vadd.xlane.f32.xlu0 %v2704_v55  ;;  %v2701_v59 = vsel %vm571_vm1, %v2699_v54, 0.0  ;;  %v2952_v55 = vld [vmem:[%s4353_s12 + $0x18] sm:$0xff] }
 0xdf5   : > { %2702 = vadd.xlane.f32.xlu1 %v2701_v59  ;;  %v3672_v59 = vpack.c.bf16 %v2952_v55, %v2951_v53 }
 0xe81   : > { %v2706_v5 = vpop.xlane.xlu0 %2705 }
 0xe82   : > { %v2708_v7 = vmul.f32 0.03125, %v2706_v5  ;;  %v2703_v8 = vpop.xlane.xlu1 %2702 }
 0xe83   : > { %v2707_v9 = vmul.f32 0.03125, %v2703_v8  ;;  %v3293_v8 = vld [vmem:[%s4352_s11] ss:$0 sm:$0xff] }
 0xe84   : > { %v2710_v10 = vadd.f32 1e-06, %v2708_v7 }
 0xe85   : > { %v2709_v57 = vadd.f32 1e-06, %v2707_v9 }
 0xe86   : > { %3830 = vrsqrt.f32 %v2710_v10 }
 0xe87   : > { %3832 = vrsqrt.f32 %v2709_v57 }
 0xe90   : > { %v3831_v11 = vpop.eup %3830 }
 0xe91   : > { %v3833_v12 = vpop.eup %3832  ;;  %v2714_v15 = vmul.f32 %v3831_v11, %v4243_v46 }
 0xe92   : > { %v2713_v61 = vmul.f32 %v3833_v12, %v4246_v52 }
 0xe93   : > { %v2722_v17 = vmul.f32 %v3286_v13, %v2714_v15 }
 0xe94   : > { %v2721_v16 = vmul.f32 %v3286_v13, %v2713_v61 }
 0xe96   : > { %3549 = vmatprep.mubr.msk.f32.mxu1 %vm571_vm1, %v2721_v16 }
 0xe97   : > { %3550 = vmatmul.mubr.msk.f32.vlgmr.msra.gmra.mrb[20].mxu1 %vm571_vm1, %v2722_v17 }
 0xf6a   : > { %v3551_v25 = vpop.f32.mrb[20].mxu1 }
 0xf6b   : > { %2826 = vrot.lane.b32.xlu1 %v3551_v25, %s3864_s24  ;;  %v2799_v33 = vpop.f32.mrb[21].mxu1  ;;  %v3290_v28 = vmul.f32 -1.442695, %v3551_v25 }
 0xf6c   : > { %2824 = vrot.lane.b32.xlu0 %v2799_v33, %s3864_s24  ;;  %v3289_v26 = vmul.f32 -1.442695, %v2799_v33 }
 0xf6e   : > { %3834 = vpow2.f32 %v3289_v26 }
 0xf6f   : > { %3836 = vpow2.f32 %v3290_v28 }
 0xf78   : > { %v3835_v27 = vpop.eup %3834 }
 0xf79   : > { %v3837_v14 = vpop.eup %3836  ;;  %v2814_v43 = vadd.f32 1.0, %v3835_v27 }
 0xf7a   : > { %v2815_v29 = vadd.f32 1.0, %v3837_v14 }
 0xf7b   : > { %3838 = vrcp.f32 %v2814_v43 }
 0xf7c   : > { %3840 = vrcp.f32 %v2815_v29 }
 0xf85   : > { %v3839_v30 = vpop.eup %3838 }
 0xf86   : > { %v3841_v34 = vpop.eup %3840  ;;  %v2820_v24 = vmul.f32 %v3839_v30, %v2799_v33 }
 0xf87   : > { %v2821_v36 = vmul.f32 %v3841_v34, %v3551_v25 }
 0xfdd   : > { %v2827_v35 = vpop.permute.xlu1 %2826 }
 0xfde   : > { %v2825_v38 = vpop.permute.xlu0 %2824  ;;  %v2831_v40 = vmul.f32 %v2827_v35, %v2821_v36 }
 0xfdf   : > { %v2830_v39 = vmul.f32 %v2825_v38, %v2820_v24 }
 0xfe1   : > { %3568 = vmatprep.mubr.msk.f32.mxu0 %vm2840_vm0, %v2830_v39 }
 0xfe2   : > { %3569 = vmatmul.mubr.msk.f32.vlgmr.msra.gmra.mrb[18].mxu0 %vm2840_vm0, %v2831_v40 }
0x10b5   : > { %v3570_v41 = vpop.f32.mrb[18].mxu0 }
0x10b6   : > { %v2923_v42 = vadd.f32 %v3570_v41, %v4243_v46  ;;  %v2913_v47 = vpop.f32.mrb[19].mxu0  ;;  %v2949_v46 = vld [vmem:[%s4353_s12] sm:$0xff] }
0x10b7   : > { %v2922_v49 = vadd.f32 %v2913_v47, %v4246_v52  ;;  %v2950_v52 = vld [vmem:[%s4353_s12 + $0x8] sm:$0xff] }
0x10b8   : > { %v2926_v44 = vmul.f32 %v2923_v42, %v2923_v42  ;;  %v3668_v54 = vpack.c.bf16 %v2950_v52, %v2949_v46 }
0x10b9   : > { %v2925_v37 = vmul.f32 %v2922_v49, %v2922_v49 }
0x10ba   : > { %v2930_v45 = vsel %vm575_vm2, %v2926_v44, 0.0  ;;  %3669 = vmatprep.subr.bf16.mxu1 %v3668_v54 }
0x10bb   : > { %2931 = vadd.xlane.f32.xlu0 %v2930_v45  ;;  %v2927_v50 = vsel %vm571_vm1, %v2925_v37, 0.0  ;;  %3671 = vmatpush3.bf16.msra.mxu1 %v3668_v54 }
0x10bc   : > { %2928 = vadd.xlane.f32.xlu1 %v2927_v50  ;;  %3673 = vmatprep.subr.bf16.mxu1 %v3672_v59 }
0x10bf   : > { %3675 = vmatpush3.bf16.msra.mxu1 %v3672_v59 }
0x10cd   : > { %3048 = vperm.xlu1 %3758, %v3036_v51  }
0x1148   : > { %v2932_v60 = vpop.xlane.xlu0 %2931 }
0x1149   : > { %v2934_v62 = vmul.f32 0.03125, %v2932_v60  ;;  %v2929_v63 = vpop.xlane.xlu1 %2928 }
0x114a   : > { %v2933_v0 = vmul.f32 0.03125, %v2929_v63 }
0x114b   : > { %v2936_v1 = vadd.f32 1e-06, %v2934_v62 }
0x114c   : > { %v2935_v4 = vadd.f32 1e-06, %v2933_v0 }
0x114d   : > { %3842 = vrsqrt.f32 %v2936_v1  ;;  %v3049_v17 = vpop.permute.xlu1 %3048 }
0x114e   : > { %3844 = vrsqrt.f32 %v2935_v4  ;;  %vm3050_vm2 = vcmp.eq.s32.totalorder %v4051_v48, %v3049_v17 }
0x1157   : > { %v3843_v5 = vpop.eup %3842 }
0x1158   : > { %v3845_v7 = vpop.eup %3844  ;;  %v2940_v9 = vmul.f32 %v3843_v5, %v2923_v42 }
0x1159   : > { %v2939_v10 = vmul.f32 %v3845_v7, %v2922_v49 }
0x115a   : > { %v2948_v11 = vmul.f32 %v3293_v8, %v2940_v9 }
0x115b   : > { %v2947_v57 = vmul.f32 %v3293_v8, %v2939_v10 }
0x115d   : > { %3579 = vmatprep.mubr.msk.f32.mxu1 %vm571_vm1, %v2947_v57 }
0x115e   : > { %3580 = vmatmul.mubr.msk.f32.vlgmr.msra.gmra.mrb[22].mxu1 %vm571_vm1, %v2948_v11  ;;  %vm3054_vm1 = vcmp.ne.s32.totalorder %v3036_v51, 4294967196 }
0x115f   : > { %v3296_v32 = vsel %vm3054_vm1, 1.0, %v3862_v6 }
0x1160   : > { %v3073_v23 = vsel %vm3059_vm3, %v3296_v32, 0.0 }
0x1231   : > { %v3581_v12 = vpop.f32.mrb[22].mxu1 }
0x1232   : > { %3035 = vst [vmem:[%s539_s21 + $0x8] sm:$0x1] %v3581_v12  ;;  %v3025_v13 = vpop.f32.mrb[23].mxu1 }
0x1233   : > { %3034 = vst [vmem:[%s539_s21] sm:$0xff] %v3025_v13  ;;  %3037 = vmax.xlane.f32.xlu0 %v3025_v13  ;;  %v3051_v56 = vsel %vm3050_vm2, %v3025_v13, 0.0 }
0x12c0   : > { %v3038_v15 = vpop.xlane.xlu0 %3037 }
0x12c1   : > { %v3039_v61 = vsub.f32 %v3025_v13, %v3038_v15 }
0x12c3   : > { %v3040_v16 = vmul.f32 1.442695, %v3039_v61 }
0x12c5   : > { %3846 = vpow2.f32 %v3040_v16 }
0x12cf   : > { %v3847_v18 = vpop.eup %3846 }
0x12d0   : > { %3042 = vadd.xlane.f32.xlu0 %v3847_v18 }
0x12d4   : > { %3052 = vadd.xlane.f32.xlu0 %v3051_v56 }
0x135d   : > { %v3043_v58 = vpop.xlane.xlu0 %3042 }
0x135e   : > { %3848 = vlog2.f32 %v3043_v58 }
0x1361   : > { %v3053_v19 = vpop.xlane.xlu0 %3052 }
0x1368   : > { %v3849_v2 = vpop.eup %3848 }
0x1369   : > { %v3045_v3 = vmul.f32 0.6931472, %v3849_v2 }
0x136b   : > { %v3046_v31 = vadd.f32 %v3045_v3, %v3038_v15 }
0x136d   : > { %v3057_v20 = vsub.f32 %v3046_v31, %v3053_v19 }
0x136f   : > { %v3058_v21 = vmul.f32 %v3296_v32, %v3057_v20 }
0x1371   : > { %v3060_v22 = vsel %vm3059_vm3, %v3058_v21, 0.0 }
0x1372   : > { %3061 = vadd.xlane.f32.xlu0 %v3060_v22 }
0x1376   : > { %3074 = vadd.xlane.f32.xlu0 %v3073_v23 }
0x13ff   : > { %v3062_v48 = vpop.xlane.xlu0 %3061 }
0x1400   : > { %v3063_v25 = vrot.slane %v3062_v48, 4 }
0x1402   : > { %v3064_v33 = vadd.f32 %v3063_v25, %v3062_v48 }
0x1403   : > { %v3075_v26 = vpop.xlane.xlu0 %3074 }
0x1404   : > { %v3065_v28 = vrot.slane %v3064_v33, 2  ;;  %v3076_v27 = vrot.slane %v3075_v26, 4 }
0x1406   : > { %v3077_v14 = vadd.f32 %v3076_v27, %v3075_v26  ;;  %v3066_v43 = vadd.f32 %v3065_v28, %v3064_v33 }
0x1408   : > { %v3078_v29 = vrot.slane %v3077_v14, 2  ;;  %v3067_v6 = vrot.slane %v3066_v43, 1 }
0x140a   : > { %v3079_v30 = vadd.f32 %v3078_v29, %v3077_v14  ;;  %v3068_v34 = vadd.f32 %v3067_v6, %v3066_v43 }
0x140c   : > { %3682 = vpush %v3068_v34  ;;  %v3080_v35 = vrot.slane %v3079_v30, 1 }
0x140e   : > { %v3081_v24 = vadd.f32 %v3080_v35, %v3079_v30 }
0x1410   : > { %3684 = vpush %v3081_v24 }
0x143d   : > { %s3683_s25 = spop %3682 }
0x143e   : > { %v3070_v36 = vstv %s3683_s25 }
0x143f   : > { %3072 = vst.msk [vmem:[%s542_s23] sm:$0x1] %vm3071_vm4, %v3070_v36 }
0x1441   : > { %s3685_s30 = spop %3684 }
0x1442   : > { %v3083_v38 = vstv %s3685_s30 }
0x1443   : > { %3084 = vst.msk [vmem:[%s545_s29] sm:$0x1] %vm3071_vm4, %v3083_v38 }
0x1444 PF: > { %s26_s18 = sadd.s32 1, %s3858_s18  }
0x1445   : > { %p23_p4 = scmp.ge.s32.totalorder %s26_s18, 4  }
0x1447   :  { %25 = sbr.rel (!%p23_p4) target bundleno = 1 (0x1), region = 132 }

</bundles_post_ra>
